<compile_context>
chip_gen: v7x
topology: tpu7x:2x2x1
jax: 0.10.0
libtpu: 0.0.40
codegen_flags: <defaults>
</compile_context>

<pallas_src>
from math import sqrt

import numpy as np
import jax
import jax.numpy as jnp
from jax import lax
from jax.experimental import pallas as pl
from jax.experimental.pallas import tpu as pltpu  # noqa: F401

BN_EPS = 1e-5


# ---------------------------------------------------------------------------
# Pallas kernels (gridless: every operand is a few hundred KiB, far below the
# VMEM scoped limit on v5e/v6e/v7x, so a single full-size block avoids all
# per-step pipeline overhead).
# ---------------------------------------------------------------------------
def _make_stage1_kernel(m):
    """conv1(as one merged-phase matmul) + folded-BN shift + ReLU + 2x2 pool."""
    def kernel(p_ref, w_ref, s_ref, o_ref):
        # p_ref: [4*m, K] phase-major im2col patches, w_ref: [K, 16],
        # s_ref: [1, 16] folded shift, o_ref: [m, 16] pooled rows.
        y = jnp.dot(p_ref[...], w_ref[...], preferred_element_type=jnp.float32)
        y = jnp.maximum(y + s_ref[...], 0.0)
        o_ref[...] = jnp.maximum(jnp.maximum(y[0 * m:1 * m], y[1 * m:2 * m]),
                                 jnp.maximum(y[2 * m:3 * m], y[3 * m:4 * m]))
    return kernel


def _make_stage2_kernel(n, m, nfeat):
    """conv2+bn2+relu+pool, conv3+bn3+relu (as position-expanded FC), fc_1."""
    def kernel(p_ref, w2_ref, s2_ref, w3_ref, s3_ref, wf_ref, bf_ref, o_ref):
        # conv2: one merged-phase matmul + shift + ReLU, then pool-phase max.
        y = jnp.dot(p_ref[...], w2_ref[...], preferred_element_type=jnp.float32)
        y = jnp.maximum(y + s2_ref[...], 0.0)                       # [4m, 64]
        pooled = jnp.maximum(jnp.maximum(y[0 * m:1 * m], y[1 * m:2 * m]),
                             jnp.maximum(y[2 * m:3 * m], y[3 * m:4 * m]))
        # pooled: [16*n, 64], rows ordered (hw, batch) with hw = u*4 + v.
        # conv3 as 4 position-specific FC layers over the whole 4x4x64 map:
        # one MXU matmul, then 16 diagonal-block accumulations (VPU adds).
        t = jnp.dot(pooled, w3_ref[...], preferred_element_type=jnp.float32)
        acc = jnp.zeros((n, nfeat), jnp.float32)
        for hw in range(16):
            acc = acc + t[hw * n:(hw + 1) * n, hw * nfeat:(hw + 1) * nfeat]
        f3 = jnp.maximum(acc + s3_ref[...], 0.0)                    # [n, 32]
        o_ref[...] = (jnp.dot(f3, wf_ref[...],
                              preferred_element_type=jnp.float32) + bf_ref[...])
    return kernel


def conv_bn_relu_pool(p_phased, w_fold, shift_row):
    m4, k = p_phased.shape
    m = m4 // 4
    cout = w_fold.shape[1]
    return pl.pallas_call(
        _make_stage1_kernel(m),
        out_shape=jax.ShapeDtypeStruct((m, cout), jnp.float32),
        in_specs=[
            pl.BlockSpec((m4, k), lambda: (0, 0)),
            pl.BlockSpec((k, cout), lambda: (0, 0)),
            pl.BlockSpec((1, cout), lambda: (0, 0)),
        ],
        out_specs=pl.BlockSpec((m, cout), lambda: (0, 0)),
    )(p_phased, w_fold, shift_row)


def conv2_conv3_fc(p_phased, w2, s2, w3perm, s3e, wfcT, bfc, batch):
    m4, k = p_phased.shape
    m = m4 // 4
    nfeat = s3e.shape[1]          # 32 = 8 channels * 2 * 2 positions
    nout = bfc.shape[1]           # 2
    return pl.pallas_call(
        _make_stage2_kernel(batch, m, nfeat),
        out_shape=jax.ShapeDtypeStruct((batch, nout), jnp.float32),
        in_specs=[
            pl.BlockSpec((m4, k), lambda: (0, 0)),
            pl.BlockSpec(w2.shape, lambda: (0, 0)),
            pl.BlockSpec(s2.shape, lambda: (0, 0)),
            pl.BlockSpec(w3perm.shape, lambda: (0, 0)),
            pl.BlockSpec(s3e.shape, lambda: (0, 0)),
            pl.BlockSpec(wfcT.shape, lambda: (0, 0)),
            pl.BlockSpec(bfc.shape, lambda: (0, 0)),
        ],
        out_specs=pl.BlockSpec((batch, nout), lambda: (0, 0)),
    )(p_phased, w2, s2, w3perm, s3e, wfcT, bfc)


# ---------------------------------------------------------------------------
# XLA-side glue: phased im2col (built directly in pool-phase-major order).
# ---------------------------------------------------------------------------
def phased_pool_patches(x_nhwc, spatial_major):
    """im2col patches for conv(k=5, s=2, p=2) followed by a 2x2 max-pool.

    Returns [4 * N*Hp*Wp, 25*C]: the four pool phases stacked major, so the
    kernel can run ONE matmul over all phases and max-reduce afterwards.
    Within a phase, rows are (n, hp, wp) if spatial_major is False, else
    (hp, wp, n).  Tap order in the K dim is (dy, dx, c).
    """
    N, H, W, C = x_nhwc.shape
    Hp, Wp = H // 4, W // 4
    xp = jnp.pad(x_nhwc, ((0, 0), (2, 2), (2, 2), (0, 0)))
    phases = []
    for a in range(2):
        for b in range(2):
            taps = []
            for dy in range(5):
                for dx in range(5):
                    r0, c0 = 2 * a + dy, 2 * b + dx
                    taps.append(xp[:, r0:r0 + 4 * (Hp - 1) + 1:4,
                                   c0:c0 + 4 * (Wp - 1) + 1:4, :])
            t = jnp.stack(taps, axis=3).reshape(N, Hp, Wp, 25 * C)
            if spatial_major:
                t = jnp.transpose(t, (1, 2, 0, 3))
            phases.append(t.reshape(N * Hp * Wp, 25 * C))
    return jnp.concatenate(phases, axis=0)


def pad_cols(x, to):
    return jnp.pad(x, ((0, 0), (0, to - x.shape[1]))) if x.shape[1] != to else x


# ---------------------------------------------------------------------------
# Parameters: init (mirroring Challenge.init_weights) and one-time host prep.
# ---------------------------------------------------------------------------
def init_params(key):
    k1, k2, k3, k4 = jax.random.split(key, 4)

    def kaiming_conv(k, cout, cin, kh, kw):
        fan_out = cout * kh * kw                      # mode='fan_out', relu gain
        return jax.random.normal(k, (cout, cin, kh, kw), jnp.float32) * sqrt(2.0 / fan_out)

    params = {
        "w1": kaiming_conv(k1, 16, 3, 5, 5), "b1": jnp.zeros(16, jnp.float32),
        "w2": kaiming_conv(k2, 64, 16, 5, 5), "b2": jnp.zeros(64, jnp.float32),
        "w3": kaiming_conv(k3, 8, 64, 5, 5), "b3": jnp.zeros(8, jnp.float32),
        "wfc": jax.random.normal(k4, (2, 32), jnp.float32) * sqrt(2.0 / (32 + 2)),
        "bfc": jnp.zeros(2, jnp.float32),
    }
    for name, c in (("bn1", 16), ("bn2", 64), ("bn3", 8)):
        params[name + "_gamma"] = jnp.ones(c, jnp.float32)
        params[name + "_beta"] = jnp.zeros(c, jnp.float32)
        params[name + "_mean"] = jnp.zeros(c, jnp.float32)
        params[name + "_var"] = jnp.ones(c, jnp.float32)
    return params


def prepare_params(p):
    """Host-side (one-time) prep: BN-folded im2col weight matrices, K padding,
    and the position-expanded conv3->FC weight matrix."""
    def fold(idx):
        w = np.asarray(p[f"w{idx}"], np.float32)                 # [Cout,Cin,5,5]
        cout = w.shape[0]
        scale = (np.asarray(p[f"bn{idx}_gamma"], np.float32)
                 / np.sqrt(np.asarray(p[f"bn{idx}_var"], np.float32) + BN_EPS))
        shift = (np.asarray(p[f"bn{idx}_beta"], np.float32)
                 - np.asarray(p[f"bn{idx}_mean"], np.float32) * scale
                 + np.asarray(p[f"b{idx}"], np.float32) * scale)
        wmat = np.transpose(w, (2, 3, 1, 0)).reshape(-1, cout) * scale[None, :]
        wscaled = w * scale[:, None, None, None]
        return wmat.astype(np.float32), shift.astype(np.float32), wscaled

    out = {}
    w1m, s1, _ = fold(1)                                          # K: 75 -> 128
    out["w1m"] = jnp.asarray(np.pad(w1m, ((0, 128 - w1m.shape[0]), (0, 0))))
    out["s1"] = jnp.asarray(s1.reshape(1, -1))
    w2m, s2, _ = fold(2)                                          # K: 400 -> 512
    out["w2m"] = jnp.asarray(np.pad(w2m, ((0, 512 - w2m.shape[0]), (0, 0))))
    out["s2"] = jnp.asarray(s2.reshape(1, -1))

    # conv3: output spatial is only 2x2 from a (padded) 4x4 map, so each output
    # position is a fully-connected layer over the whole 4x4x64 pooled map.
    # w3perm[c, hw*32 + j] with hw = u*4 + v (conv3-input position) and
    # j = co*4 + ho*2 + wo (matches PyTorch's (c, h, w) flatten before fc_1).
    _, s3, w3s = fold(3)                                          # w3s: [8,64,5,5]
    cin3 = w3s.shape[1]
    w3perm = np.zeros((cin3, 16 * 32), np.float32)
    s3e = np.zeros((1, 32), np.float32)
    for co in range(8):
        for ho in range(2):
            for wo in range(2):
                j = co * 4 + ho * 2 + wo
                s3e[0, j] = s3[co]
                for u in range(4):
                    for v in range(4):
                        dy, dx = u - 2 * ho + 2, v - 2 * wo + 2
                        if 0 <= dy < 5 and 0 <= dx < 5:
                            w3perm[:, (u * 4 + v) * 32 + j] = w3s[co, :, dy, dx]
    out["w3perm"] = jnp.asarray(w3perm)
    out["s3e"] = jnp.asarray(s3e)
    out["wfcT"] = jnp.asarray(np.asarray(p["wfc"], np.float32).T)
    out["bfc"] = jnp.asarray(np.asarray(p["bfc"], np.float32).reshape(1, -1))
    return out


# ---------------------------------------------------------------------------
# Forward pass (single jit, two pallas_calls) and a pure-JAX reference.
# ---------------------------------------------------------------------------
@jax.jit
def forward(x_nchw, p):
    n = x_nchw.shape[0]
    x = jnp.transpose(x_nchw, (0, 2, 3, 1))                       # NCHW -> NHWC
    # stage 1: conv1 + bn1 + relu + (dropout=id) + 2x2 maxpool
    p1 = pad_cols(phased_pool_patches(x, spatial_major=False), 128)
    pooled1 = conv_bn_relu_pool(p1, p["w1m"], p["s1"])             # [n*256, 16]
    x1 = pooled1.reshape(n, 16, 16, 16)
    # stage 2: conv2+bn2+relu+pool, conv3+bn3+relu, fc_1 — all fused
    p2 = pad_cols(phased_pool_patches(x1, spatial_major=True), 512)
    return conv2_conv3_fc(p2, p["w2m"], p["s2"], p["w3perm"], p["s3e"],
                          p["wfcT"], p["bfc"], n)


def reference(x_nchw, p):
    """Pure-JAX reference (eval-mode semantics) for the correctness check."""
    def conv(x, w, b):
        y = lax.conv_general_dilated(
            x, w, window_strides=(2, 2), padding=((2, 2), (2, 2)),
            dimension_numbers=("NCHW", "OIHW", "NCHW"))
        return y + b[None, :, None, None]

    def bn_relu(x, g, bt, mu, var):
        scale = g / jnp.sqrt(var + BN_EPS)
        shift = bt - mu * scale
        return jnp.maximum(x * scale[None, :, None, None]
                           + shift[None, :, None, None], 0.0)

    def pool(x):
        return lax.reduce_window(x, -jnp.inf, lax.max,
                                 (1, 1, 2, 2), (1, 1, 2, 2), "VALID")

    x = pool(bn_relu(conv(x_nchw, p["w1"], p["b1"]), p["bn1_gamma"],
                     p["bn1_beta"], p["bn1_mean"], p["bn1_var"]))
    x = pool(bn_relu(conv(x, p["w2"], p["b2"]), p["bn2_gamma"],
                     p["bn2_beta"], p["bn2_mean"], p["bn2_var"]))
    x = bn_relu(conv(x, p["w3"], p["b3"]), p["bn3_gamma"],
                p["bn3_beta"], p["bn3_mean"], p["bn3_var"])
    x = x.reshape(x.shape[0], -1)
    return x @ p["wfc"].T + p["bfc"]


if __name__ == "__main__":
    key = jax.random.PRNGKey(0)
    kx, kp = jax.random.split(key)
    # fc_1 expects 8*2*2 features after 3 stride-2 convs + 2 pools -> 64x64 input
    x = jax.random.normal(kx, (2, 3, 64, 64), jnp.float32)
    raw = init_params(kp)
    params = prepare_params(raw)

    out = jax.block_until_ready(forward(x, params))
    ref = jax.block_until_ready(reference(x, raw))
    assert out.shape == (2, 2), out.shape
    assert jnp.allclose(out, ref, rtol=1e-3, atol=1e-3), (out, ref)
    print("KERNEL_OK")
</pallas_src>

<mosaic_0001>
module attributes {stable_mosaic.version = 11 : i64} {
  func.func @kernel(%arg0: memref<2048x128xf32, #tpu.memory_space<vmem>>, %arg1: memref<128x16xf32, #tpu.memory_space<vmem>>, %arg2: memref<1x16xf32, #tpu.memory_space<vmem>>, %arg3: memref<512x16xf32, #tpu.memory_space<vmem>>) attributes {dimension_semantics = [], scalar_prefetch = 0 : i64, scratch_operands = 0 : i64, tpu.core_type = #tpu.core_type<tc>} {
    %c0 = arith.constant 0 : index
    %c0_0 = arith.constant 0 : index
    %0 = vector.load %arg0[%c0, %c0_0] : memref<2048x128xf32, #tpu.memory_space<vmem>>, vector<2048x128xf32>
    %c0_1 = arith.constant 0 : index
    %c0_2 = arith.constant 0 : index
    %1 = vector.load %arg1[%c0_1, %c0_2] : memref<128x16xf32, #tpu.memory_space<vmem>>, vector<128x16xf32>
    %cst = arith.constant dense<0.000000e+00> : vector<2048x16xf32>
    %2 = tpu.matmul %0, %1, %cst {dimension_numbers = #tpu.dot_dimension_numbers<[1], [0], [0], [1], [0, 0, 1, 1], [], []>} : vector<2048x128xf32>, vector<128x16xf32>, vector<2048x16xf32> -> vector<2048x16xf32>
    %c0_3 = arith.constant 0 : index
    %c0_4 = arith.constant 0 : index
    %3 = vector.load %arg2[%c0_3, %c0_4] : memref<1x16xf32, #tpu.memory_space<vmem>>, vector<1x16xf32>
    %4 = vector.broadcast %3 : vector<1x16xf32> to vector<2048x16xf32>
    %5 = arith.addf %2, %4 : vector<2048x16xf32>
    %cst_5 = arith.constant 0.000000e+00 : f32
    %6 = vector.broadcast %cst_5 : f32 to vector<2048x16xf32>
    %7 = arith.maximumf %5, %6 : vector<2048x16xf32>
    %8 = vector.extract_strided_slice %7 {offsets = [0, 0], sizes = [512, 16], strides = [1, 1]} : vector<2048x16xf32> to vector<512x16xf32>
    %9 = vector.extract_strided_slice %7 {offsets = [512, 0], sizes = [512, 16], strides = [1, 1]} : vector<2048x16xf32> to vector<512x16xf32>
    %10 = arith.maximumf %8, %9 : vector<512x16xf32>
    %11 = vector.extract_strided_slice %7 {offsets = [1024, 0], sizes = [512, 16], strides = [1, 1]} : vector<2048x16xf32> to vector<512x16xf32>
    %12 = vector.extract_strided_slice %7 {offsets = [1536, 0], sizes = [512, 16], strides = [1, 1]} : vector<2048x16xf32> to vector<512x16xf32>
    %13 = arith.maximumf %11, %12 : vector<512x16xf32>
    %14 = arith.maximumf %10, %13 : vector<512x16xf32>
    %c0_6 = arith.constant 0 : index
    %c0_7 = arith.constant 0 : index
    %15 = vector.load %arg3[%c0_6, %c0_7] : memref<512x16xf32, #tpu.memory_space<vmem>>, vector<512x16xf32>
    tpu.vector_store %arg3[%c0_6, %c0_7], %14 {strides = array<i32>} : memref<512x16xf32, #tpu.memory_space<vmem>>, vector<512x16xf32>,
    return
  }
}

module attributes {stable_mosaic.version = 11 : i64} {
  func.func @kernel(%arg0: memref<128x512xf32, #tpu.memory_space<vmem>>, %arg1: memref<512x64xf32, #tpu.memory_space<vmem>>, %arg2: memref<1x64xf32, #tpu.memory_space<vmem>>, %arg3: memref<64x512xf32, #tpu.memory_space<vmem>>, %arg4: memref<1x32xf32, #tpu.memory_space<vmem>>, %arg5: memref<32x2xf32, #tpu.memory_space<vmem>>, %arg6: memref<1x2xf32, #tpu.memory_space<vmem>>, %arg7: memref<2x2xf32, #tpu.memory_space<vmem>>) attributes {dimension_semantics = [], scalar_prefetch = 0 : i64, scratch_operands = 0 : i64, tpu.core_type = #tpu.core_type<tc>} {
    %c0 = arith.constant 0 : index
    %c0_0 = arith.constant 0 : index
    %0 = vector.load %arg0[%c0, %c0_0] : memref<128x512xf32, #tpu.memory_space<vmem>>, vector<128x512xf32>
    %c0_1 = arith.constant 0 : index
    %c0_2 = arith.constant 0 : index
    %1 = vector.load %arg1[%c0_1, %c0_2] : memref<512x64xf32, #tpu.memory_space<vmem>>, vector<512x64xf32>
    %cst = arith.constant dense<0.000000e+00> : vector<128x64xf32>
    %2 = tpu.matmul %0, %1, %cst {dimension_numbers = #tpu.dot_dimension_numbers<[1], [0], [0], [1], [0, 0, 1, 1], [], []>} : vector<128x512xf32>, vector<512x64xf32>, vector<128x64xf32> -> vector<128x64xf32>
    %c0_3 = arith.constant 0 : index
    %c0_4 = arith.constant 0 : index
    %3 = vector.load %arg2[%c0_3, %c0_4] : memref<1x64xf32, #tpu.memory_space<vmem>>, vector<1x64xf32>
    %4 = vector.broadcast %3 : vector<1x64xf32> to vector<128x64xf32>
    %5 = arith.addf %2, %4 : vector<128x64xf32>
    %cst_5 = arith.constant 0.000000e+00 : f32
    %6 = vector.broadcast %cst_5 : f32 to vector<128x64xf32>
    %7 = arith.maximumf %5, %6 : vector<128x64xf32>
    %8 = vector.extract_strided_slice %7 {offsets = [0, 0], sizes = [32, 64], strides = [1, 1]} : vector<128x64xf32> to vector<32x64xf32>
    %9 = vector.extract_strided_slice %7 {offsets = [32, 0], sizes = [32, 64], strides = [1, 1]} : vector<128x64xf32> to vector<32x64xf32>
    %10 = arith.maximumf %8, %9 : vector<32x64xf32>
    %11 = vector.extract_strided_slice %7 {offsets = [64, 0], sizes = [32, 64], strides = [1, 1]} : vector<128x64xf32> to vector<32x64xf32>
    %12 = vector.extract_strided_slice %7 {offsets = [96, 0], sizes = [32, 64], strides = [1, 1]} : vector<128x64xf32> to vector<32x64xf32>
    %13 = arith.maximumf %11, %12 : vector<32x64xf32>
    %14 = arith.maximumf %10, %13 : vector<32x64xf32>
    %c0_6 = arith.constant 0 : index
    %c0_7 = arith.constant 0 : index
    %15 = vector.load %arg3[%c0_6, %c0_7] : memref<64x512xf32, #tpu.memory_space<vmem>>, vector<64x512xf32>
    %cst_8 = arith.constant dense<0.000000e+00> : vector<32x512xf32>
    %16 = tpu.matmul %14, %15, %cst_8 {dimension_numbers = #tpu.dot_dimension_numbers<[1], [0], [0], [1], [0, 0, 1, 1], [], []>} : vector<32x64xf32>, vector<64x512xf32>, vector<32x512xf32> -> vector<32x512xf32>
    %cst_9 = arith.constant 0.000000e+00 : f32
    %17 = vector.broadcast %cst_9 : f32 to vector<2x32xf32>
    %18 = vector.extract_strided_slice %16 {offsets = [0, 0], sizes = [2, 32], strides = [1, 1]} : vector<32x512xf32> to vector<2x32xf32>
    %19 = arith.addf %17, %18 : vector<2x32xf32>
    %20 = vector.extract_strided_slice %16 {offsets = [2, 32], sizes = [2, 32], strides = [1, 1]} : vector<32x512xf32> to vector<2x32xf32>
    %21 = arith.addf %19, %20 : vector<2x32xf32>
    %22 = vector.extract_strided_slice %16 {offsets = [4, 64], sizes = [2, 32], strides = [1, 1]} : vector<32x512xf32> to vector<2x32xf32>
    %23 = arith.addf %21, %22 : vector<2x32xf32>
    %24 = vector.extract_strided_slice %16 {offsets = [6, 96], sizes = [2, 32], strides = [1, 1]} : vector<32x512xf32> to vector<2x32xf32>
    %25 = arith.addf %23, %24 : vector<2x32xf32>
    %26 = vector.extract_strided_slice %16 {offsets = [8, 128], sizes = [2, 32], strides = [1, 1]} : vector<32x512xf32> to vector<2x32xf32>
    %27 = arith.addf %25, %26 : vector<2x32xf32>
    %28 = vector.extract_strided_slice %16 {offsets = [10, 160], sizes = [2, 32], strides = [1, 1]} : vector<32x512xf32> to vector<2x32xf32>
    %29 = arith.addf %27, %28 : vector<2x32xf32>
    %30 = vector.extract_strided_slice %16 {offsets = [12, 192], sizes = [2, 32], strides = [1, 1]} : vector<32x512xf32> to vector<2x32xf32>
    %31 = arith.addf %29, %30 : vector<2x32xf32>
    %32 = vector.extract_strided_slice %16 {offsets = [14, 224], sizes = [2, 32], strides = [1, 1]} : vector<32x512xf32> to vector<2x32xf32>
    %33 = arith.addf %31, %32 : vector<2x32xf32>
    %34 = vector.extract_strided_slice %16 {offsets = [16, 256], sizes = [2, 32], strides = [1, 1]} : vector<32x512xf32> to vector<2x32xf32>
    %35 = arith.addf %33, %34 : vector<2x32xf32>
    %36 = vector.extract_strided_slice %16 {offsets = [18, 288], sizes = [2, 32], strides = [1, 1]} : vector<32x512xf32> to vector<2x32xf32>
    %37 = arith.addf %35, %36 : vector<2x32xf32>
    %38 = vector.extract_strided_slice %16 {offsets = [20, 320], sizes = [2, 32], strides = [1, 1]} : vector<32x512xf32> to vector<2x32xf32>
    %39 = arith.addf %37, %38 : vector<2x32xf32>
    %40 = vector.extract_strided_slice %16 {offsets = [22, 352], sizes = [2, 32], strides = [1, 1]} : vector<32x512xf32> to vector<2x32xf32>
    %41 = arith.addf %39, %40 : vector<2x32xf32>
    %42 = vector.extract_strided_slice %16 {offsets = [24, 384], sizes = [2, 32], strides = [1, 1]} : vector<32x512xf32> to vector<2x32xf32>
    %43 = arith.addf %41, %42 : vector<2x32xf32>
    %44 = vector.extract_strided_slice %16 {offsets = [26, 416], sizes = [2, 32], strides = [1, 1]} : vector<32x512xf32> to vector<2x32xf32>
    %45 = arith.addf %43, %44 : vector<2x32xf32>
    %46 = vector.extract_strided_slice %16 {offsets = [28, 448], sizes = [2, 32], strides = [1, 1]} : vector<32x512xf32> to vector<2x32xf32>
    %47 = arith.addf %45, %46 : vector<2x32xf32>
    %48 = vector.extract_strided_slice %16 {offsets = [30, 480], sizes = [2, 32], strides = [1, 1]} : vector<32x512xf32> to vector<2x32xf32>
    %49 = arith.addf %47, %48 : vector<2x32xf32>
    %c0_10 = arith.constant 0 : index
    %c0_11 = arith.constant 0 : index
    %50 = vector.load %arg4[%c0_10, %c0_11] : memref<1x32xf32, #tpu.memory_space<vmem>>, vector<1x32xf32>
    %51 = vector.broadcast %50 : vector<1x32xf32> to vector<2x32xf32>
    %52 = arith.addf %49, %51 : vector<2x32xf32>
    %cst_12 = arith.constant 0.000000e+00 : f32
    %53 = vector.broadcast %cst_12 : f32 to vector<2x32xf32>
    %54 = arith.maximumf %52, %53 : vector<2x32xf32>
    %c0_13 = arith.constant 0 : index
    %c0_14 = arith.constant 0 : index
    %55 = vector.load %arg5[%c0_13, %c0_14] : memref<32x2xf32, #tpu.memory_space<vmem>>, vector<32x2xf32>
    %cst_15 = arith.constant dense<0.000000e+00> : vector<2x2xf32>
    %56 = tpu.matmul %54, %55, %cst_15 {dimension_numbers = #tpu.dot_dimension_numbers<[1], [0], [0], [1], [0, 0, 1, 1], [], []>} : vector<2x32xf32>, vector<32x2xf32>, vector<2x2xf32> -> vector<2x2xf32>
    %c0_16 = arith.constant 0 : index
    %c0_17 = arith.constant 0 : index
    %57 = vector.load %arg6[%c0_16, %c0_17] : memref<1x2xf32, #tpu.memory_space<vmem>>, vector<1x2xf32>
    %58 = vector.broadcast %57 : vector<1x2xf32> to vector<2x2xf32>
    %59 = arith.addf %56, %58 : vector<2x2xf32>
    %c0_18 = arith.constant 0 : index
    %c0_19 = arith.constant 0 : index
    %60 = vector.load %arg7[%c0_18, %c0_19] : memref<2x2xf32, #tpu.memory_space<vmem>>, vector<2x2xf32>
    tpu.vector_store %arg7[%c0_18, %c0_19], %59 {strides = array<i32>} : memref<2x2xf32, #tpu.memory_space<vmem>>, vector<2x2xf32>,
    return
  }
}

</mosaic_0001>

<bundles_post_ra>
// kernel: forward.2
= control target key start
LH: loop header
LB: loop body
LE: loop exit
PB: predicated region body
PF: predicated region fallthrough
CT: control target
= control target key end

     0   :  { %vm2086_vm0 = vcmask 130048   ;;  %s5261_s1 = inlined_call_operand.vmem [shape: f32[128,16], index: 1, kind: input, shape index: {}]   ;;  %s5262_s0 = inlined_call_operand.vmem [shape: f32[2048,128], index: 0, kind: input, shape index: {}]   ;;  %s5263_s2 = inlined_call_operand.vmem [shape: f32[1,16], index: 2, kind: input, shape index: {}]   ;;  %s5264_s3 = inlined_call_operand.vmem [shape: f32[512,16], index: 3, kind: output, shape index: {}]  }
   0x1   :  { %v270_v0 = vld [vmem:[%s5261_s1] sm:$0xff]  ;;  %v271_v1 = vld [vmem:[%s5261_s1 + $0x8] sm:$0xff]  ;;  %v272_v2 = vld [vmem:[%s5261_s1 + $0x10] sm:$0xff] }
   0x2   :  { %v2844_v3 = vpack.c.bf16 %v271_v1, %v270_v0  ;;  %v273_v4 = vld [vmem:[%s5261_s1 + $0x18] sm:$0xff]  ;;  %v274_v6 = vld [vmem:[%s5261_s1 + $0x20] sm:$0xff]  ;;  %v275_v7 = vld [vmem:[%s5261_s1 + $0x28] sm:$0xff] }
   0x3   :  { %v2848_v5 = vpack.c.bf16 %v273_v4, %v272_v2  ;;  %v2852_v8 = vpack.c.bf16 %v275_v7, %v274_v6  ;;  %v14_v9 = vld [vmem:[%s5262_s0] sm:$0xff]  ;;  %v276_v11 = vld [vmem:[%s5261_s1 + $0x30] sm:$0xff]  ;;  %v277_v12 = vld [vmem:[%s5261_s1 + $0x38] sm:$0xff] }
   0x4   :  { %2845 = vmatprep.subr.bf16.mxu0 %v2844_v3  ;;  %2876 = vmatprep.subr.bf16.mxu1 %v2844_v3  ;;  %v142_v10 = vld [vmem:[%s5262_s0 + $0x400] sm:$0xff]  ;;  %v2856_v13 = vpack.c.bf16 %v277_v12, %v276_v11  ;;  %v279_v15 = vld [vmem:[%s5261_s1 + $0x48] sm:$0xff]  ;;  %v280_v17 = vld [vmem:[%s5261_s1 + $0x50] sm:$0xff] }
   0x5   :  { %2847 = vmatpush3.bf16.msra.mxu0 %v2844_v3  ;;  %2884 = vmatpush3.bf16.msra.mxu1 %v2844_v3  ;;  %v278_v14 = vld [vmem:[%s5261_s1 + $0x40] sm:$0xff]  ;;  %v281_v18 = vld [vmem:[%s5261_s1 + $0x58] sm:$0xff]  ;;  %v283_v21 = vld [vmem:[%s5261_s1 + $0x68] sm:$0xff] }
   0x6   :  { %2849 = vmatprep.subr.bf16.mxu0 %v2848_v5  ;;  %2877 = vmatprep.subr.bf16.mxu1 %v2848_v5  ;;  %v2860_v16 = vpack.c.bf16 %v279_v15, %v278_v14  ;;  %v2864_v19 = vpack.c.bf16 %v281_v18, %v280_v17  ;;  %v282_v20 = vld [vmem:[%s5261_s1 + $0x60] sm:$0xff]  ;;  %v284_v23 = vld [vmem:[%s5261_s1 + $0x70] sm:$0xff]  ;;  %v285_v24 = vld [vmem:[%s5261_s1 + $0x78] sm:$0xff] }
   0x7   :  { %2460 = vmatprep.mubr.f32.mxu0 %v14_v9  ;;  %2652 = vmatprep.mubr.f32.mxu1 %v142_v10  ;;  %v2868_v22 = vpack.c.bf16 %v283_v21, %v282_v20  ;;  %v2872_v25 = vpack.c.bf16 %v285_v24, %v284_v23  ;;  %v15_v26 = vld [vmem:[%s5262_s0 + $0x8] sm:$0xff]  ;;  %v16_v28 = vld [vmem:[%s5262_s0 + $0x10] sm:$0xff]  ;;  %v17_v30 = vld [vmem:[%s5262_s0 + $0x18] sm:$0xff] }
   0x8   :  { %v143_v27 = vld [vmem:[%s5262_s0 + $0x408] sm:$0xff]  ;;  %v144_v29 = vld [vmem:[%s5262_s0 + $0x410] sm:$0xff]  ;;  %v145_v31 = vld [vmem:[%s5262_s0 + $0x418] sm:$0xff] }
   0x9   :  { %2851 = vmatpush3.bf16.msra.mxu0 %v2848_v5  ;;  %2885 = vmatpush3.bf16.msra.mxu1 %v2848_v5  ;;  %v18_v32 = vld [vmem:[%s5262_s0 + $0x20] sm:$0xff]  ;;  %v19_v34 = vld [vmem:[%s5262_s0 + $0x28] sm:$0xff]  ;;  %v20_v36 = vld [vmem:[%s5262_s0 + $0x30] sm:$0xff] }
   0xa   :  { %2853 = vmatprep.subr.bf16.mxu0 %v2852_v8  ;;  %2878 = vmatprep.subr.bf16.mxu1 %v2852_v8  ;;  %v146_v33 = vld [vmem:[%s5262_s0 + $0x420] sm:$0xff]  ;;  %v147_v35 = vld [vmem:[%s5262_s0 + $0x428] sm:$0xff]  ;;  %v148_v37 = vld [vmem:[%s5262_s0 + $0x430] sm:$0xff] }
   0xb   :  { %v21_v38 = vld [vmem:[%s5262_s0 + $0x38] sm:$0xff]  ;;  %v22_v40 = vld [vmem:[%s5262_s0 + $0x40] sm:$0xff]  ;;  %v23_v42 = vld [vmem:[%s5262_s0 + $0x48] sm:$0xff] }
   0xc   :  { %v149_v39 = vld [vmem:[%s5262_s0 + $0x438] sm:$0xff]  ;;  %v150_v41 = vld [vmem:[%s5262_s0 + $0x440] sm:$0xff]  ;;  %v151_v43 = vld [vmem:[%s5262_s0 + $0x448] sm:$0xff] }
   0xd   :  { %2855 = vmatpush3.bf16.msra.mxu0 %v2852_v8  ;;  %2886 = vmatpush3.bf16.msra.mxu1 %v2852_v8  ;;  %v24_v44 = vld [vmem:[%s5262_s0 + $0x50] sm:$0xff]  ;;  %v25_v46 = vld [vmem:[%s5262_s0 + $0x58] sm:$0xff]  ;;  %v26_v48 = vld [vmem:[%s5262_s0 + $0x60] sm:$0xff] }
   0xe   :  { %2857 = vmatprep.subr.bf16.mxu0 %v2856_v13  ;;  %2879 = vmatprep.subr.bf16.mxu1 %v2856_v13  ;;  %v152_v45 = vld [vmem:[%s5262_s0 + $0x450] sm:$0xff]  ;;  %v153_v47 = vld [vmem:[%s5262_s0 + $0x458] sm:$0xff]  ;;  %v154_v49 = vld [vmem:[%s5262_s0 + $0x460] sm:$0xff] }
   0xf   :  { %v27_v50 = vld [vmem:[%s5262_s0 + $0x68] sm:$0xff]  ;;  %v28_v52 = vld [vmem:[%s5262_s0 + $0x70] sm:$0xff]  ;;  %v29_v54 = vld [vmem:[%s5262_s0 + $0x78] sm:$0xff] }
  0x10   :  { %v155_v51 = vld [vmem:[%s5262_s0 + $0x468] sm:$0xff]  ;;  %v156_v53 = vld [vmem:[%s5262_s0 + $0x470] sm:$0xff]  ;;  %v157_v55 = vld [vmem:[%s5262_s0 + $0x478] sm:$0xff] }
  0x11   :  { %2859 = vmatpush3.bf16.msra.mxu0 %v2856_v13  ;;  %2887 = vmatpush3.bf16.msra.mxu1 %v2856_v13  ;;  %v30_v56 = vld [vmem:[%s5262_s0 + $0x80] sm:$0xff]  ;;  %v31_v58 = vld [vmem:[%s5262_s0 + $0x88] sm:$0xff]  ;;  %v32_v60 = vld [vmem:[%s5262_s0 + $0x90] sm:$0xff] }
  0x12   :  { %2861 = vmatprep.subr.bf16.mxu0 %v2860_v16  ;;  %2880 = vmatprep.subr.bf16.mxu1 %v2860_v16  ;;  %v158_v57 = vld [vmem:[%s5262_s0 + $0x480] sm:$0xff]  ;;  %v159_v59 = vld [vmem:[%s5262_s0 + $0x488] sm:$0xff]  ;;  %v160_v61 = vld [vmem:[%s5262_s0 + $0x490] sm:$0xff] }
  0x13   :  { %v33_v62 = vld [vmem:[%s5262_s0 + $0x98] sm:$0xff]  ;;  %v34_v0 = vld [vmem:[%s5262_s0 + $0xa0] sm:$0xff]  ;;  %v35_v2 = vld [vmem:[%s5262_s0 + $0xa8] sm:$0xff] }
  0x14   :  { %v161_v63 = vld [vmem:[%s5262_s0 + $0x498] sm:$0xff]  ;;  %v162_v1 = vld [vmem:[%s5262_s0 + $0x4a0] sm:$0xff]  ;;  %v163_v3 = vld [vmem:[%s5262_s0 + $0x4a8] sm:$0xff] }
  0x15   :  { %2863 = vmatpush3.bf16.msra.mxu0 %v2860_v16  ;;  %2888 = vmatpush3.bf16.msra.mxu1 %v2860_v16  ;;  %v36_v4 = vld [vmem:[%s5262_s0 + $0xb0] sm:$0xff]  ;;  %v37_v6 = vld [vmem:[%s5262_s0 + $0xb8] sm:$0xff]  ;;  %v38_v8 = vld [vmem:[%s5262_s0 + $0xc0] sm:$0xff] }
  0x16   :  { %2865 = vmatprep.subr.bf16.mxu0 %v2864_v19  ;;  %2881 = vmatprep.subr.bf16.mxu1 %v2864_v19  ;;  %v164_v5 = vld [vmem:[%s5262_s0 + $0x4b0] sm:$0xff]  ;;  %v165_v7 = vld [vmem:[%s5262_s0 + $0x4b8] sm:$0xff]  ;;  %v166_v9 = vld [vmem:[%s5262_s0 + $0x4c0] sm:$0xff] }
  0x17   :  { %v39_v10 = vld [vmem:[%s5262_s0 + $0xc8] sm:$0xff]  ;;  %v40_v12 = vld [vmem:[%s5262_s0 + $0xd0] sm:$0xff]  ;;  %v41_v14 = vld [vmem:[%s5262_s0 + $0xd8] sm:$0xff] }
  0x18   :  { %v167_v11 = vld [vmem:[%s5262_s0 + $0x4c8] sm:$0xff]  ;;  %v168_v13 = vld [vmem:[%s5262_s0 + $0x4d0] sm:$0xff]  ;;  %v169_v15 = vld [vmem:[%s5262_s0 + $0x4d8] sm:$0xff] }
  0x19   :  { %2867 = vmatpush3.bf16.msra.mxu0 %v2864_v19  ;;  %2889 = vmatpush3.bf16.msra.mxu1 %v2864_v19  ;;  %v42_v16 = vld [vmem:[%s5262_s0 + $0xe0] sm:$0xff]  ;;  %v43_v18 = vld [vmem:[%s5262_s0 + $0xe8] sm:$0xff]  ;;  %v44_v20 = vld [vmem:[%s5262_s0 + $0xf0] sm:$0xff] }
  0x1a   :  { %2869 = vmatprep.subr.bf16.mxu0 %v2868_v22  ;;  %2882 = vmatprep.subr.bf16.mxu1 %v2868_v22  ;;  %v170_v17 = vld [vmem:[%s5262_s0 + $0x4e0] sm:$0xff]  ;;  %v171_v19 = vld [vmem:[%s5262_s0 + $0x4e8] sm:$0xff]  ;;  %v172_v21 = vld [vmem:[%s5262_s0 + $0x4f0] sm:$0xff] }
  0x1b   :  { %v173_v23 = vld [vmem:[%s5262_s0 + $0x4f8] sm:$0xff]  ;;  %v46_v24 = vld [vmem:[%s5262_s0 + $0x100] sm:$0xff] }
  0x1d   :  { %2871 = vmatpush3.bf16.msra.mxu0 %v2868_v22  ;;  %2890 = vmatpush3.bf16.msra.mxu1 %v2868_v22  ;;  %v45_v22 = vld [vmem:[%s5262_s0 + $0xf8] sm:$0xff] }
  0x1e   :  { %2873 = vmatprep.subr.bf16.mxu0 %v2872_v25  ;;  %2883 = vmatprep.subr.bf16.mxu1 %v2872_v25 }
  0x21   :  { %2875 = vmatpush3.bf16.msra.mxu0 %v2872_v25  ;;  %2891 = vmatpush3.bf16.msra.mxu1 %v2872_v25  ;;  %v174_v25 = vld [vmem:[%s5262_s0 + $0x500] sm:$0xff] }
  0x24   :  { %2461 = vmatmul.mubr.f32.vlgmr.msra.gmra.mrb[0].mxu0 %v15_v26  ;;  %2653 = vmatmul.mubr.f32.vlgmr.msra.gmra.mrb[0].mxu1 %v143_v27  ;;  %v47_v26 = vld [vmem:[%s5262_s0 + $0x108] sm:$0xff] }
  0x25   :  { %2463 = vmatprep.mubr.f32.mxu0 %v16_v28  ;;  %2655 = vmatprep.mubr.f32.mxu1 %v144_v29  ;;  %v175_v27 = vld [vmem:[%s5262_s0 + $0x508] sm:$0xff]  ;;  %v48_v28 = vld [vmem:[%s5262_s0 + $0x110] sm:$0xff] }
  0x26   :  { %v176_v29 = vld [vmem:[%s5262_s0 + $0x510] sm:$0xff] }
  0x28   :  { %2464 = vmatmul.mubr.f32.gmra.mrb[2].mxu0 %v17_v30  ;;  %2656 = vmatmul.mubr.f32.gmra.mrb[2].mxu1 %v145_v31  ;;  %v49_v30 = vld [vmem:[%s5262_s0 + $0x118] sm:$0xff] }
  0x29   :  { %2466 = vmatprep.mubr.f32.mxu0 %v18_v32  ;;  %2658 = vmatprep.mubr.f32.mxu1 %v146_v33  ;;  %v177_v31 = vld [vmem:[%s5262_s0 + $0x518] sm:$0xff]  ;;  %v50_v32 = vld [vmem:[%s5262_s0 + $0x120] sm:$0xff] }
  0x2a   :  { %v178_v33 = vld [vmem:[%s5262_s0 + $0x520] sm:$0xff] }
  0x2c   :  { %2467 = vmatmul.mubr.f32.gmra.mrb[4].mxu0 %v19_v34  ;;  %2659 = vmatmul.mubr.f32.gmra.mrb[4].mxu1 %v147_v35  ;;  %v51_v34 = vld [vmem:[%s5262_s0 + $0x128] sm:$0xff] }
  0x2d   :  { %2469 = vmatprep.mubr.f32.mxu0 %v20_v36  ;;  %2661 = vmatprep.mubr.f32.mxu1 %v148_v37  ;;  %v179_v35 = vld [vmem:[%s5262_s0 + $0x528] sm:$0xff]  ;;  %v52_v36 = vld [vmem:[%s5262_s0 + $0x130] sm:$0xff] }
  0x2e   :  { %v180_v37 = vld [vmem:[%s5262_s0 + $0x530] sm:$0xff] }
  0x30   :  { %2470 = vmatmul.mubr.f32.gmra.mrb[6].mxu0 %v21_v38  ;;  %2662 = vmatmul.mubr.f32.gmra.mrb[6].mxu1 %v149_v39  ;;  %v53_v38 = vld [vmem:[%s5262_s0 + $0x138] sm:$0xff] }
  0x31   :  { %2472 = vmatprep.mubr.f32.mxu0 %v22_v40  ;;  %2664 = vmatprep.mubr.f32.mxu1 %v150_v41  ;;  %v181_v39 = vld [vmem:[%s5262_s0 + $0x538] sm:$0xff]  ;;  %v54_v40 = vld [vmem:[%s5262_s0 + $0x140] sm:$0xff] }
  0x32   :  { %v182_v41 = vld [vmem:[%s5262_s0 + $0x540] sm:$0xff] }
  0x34   :  { %2473 = vmatmul.mubr.f32.gmra.mrb[8].mxu0 %v23_v42  ;;  %2665 = vmatmul.mubr.f32.gmra.mrb[8].mxu1 %v151_v43  ;;  %v55_v42 = vld [vmem:[%s5262_s0 + $0x148] sm:$0xff] }
  0x35   :  { %2475 = vmatprep.mubr.f32.mxu0 %v24_v44  ;;  %2667 = vmatprep.mubr.f32.mxu1 %v152_v45  ;;  %v183_v43 = vld [vmem:[%s5262_s0 + $0x548] sm:$0xff]  ;;  %v56_v44 = vld [vmem:[%s5262_s0 + $0x150] sm:$0xff] }
  0x36   :  { %v184_v45 = vld [vmem:[%s5262_s0 + $0x550] sm:$0xff] }
  0x38   :  { %2476 = vmatmul.mubr.f32.gmra.mrb[10].mxu0 %v25_v46  ;;  %2668 = vmatmul.mubr.f32.gmra.mrb[10].mxu1 %v153_v47  ;;  %v57_v46 = vld [vmem:[%s5262_s0 + $0x158] sm:$0xff] }
  0x39   :  { %2478 = vmatprep.mubr.f32.mxu0 %v26_v48  ;;  %2670 = vmatprep.mubr.f32.mxu1 %v154_v49  ;;  %v185_v47 = vld [vmem:[%s5262_s0 + $0x558] sm:$0xff]  ;;  %v58_v48 = vld [vmem:[%s5262_s0 + $0x160] sm:$0xff] }
  0x3a   :  { %v186_v49 = vld [vmem:[%s5262_s0 + $0x560] sm:$0xff] }
  0x3c   :  { %2479 = vmatmul.mubr.f32.gmra.mrb[12].mxu0 %v27_v50  ;;  %2671 = vmatmul.mubr.f32.gmra.mrb[12].mxu1 %v155_v51  ;;  %v59_v50 = vld [vmem:[%s5262_s0 + $0x168] sm:$0xff] }
  0x3d   :  { %2481 = vmatprep.mubr.f32.mxu0 %v28_v52  ;;  %2673 = vmatprep.mubr.f32.mxu1 %v156_v53  ;;  %v187_v51 = vld [vmem:[%s5262_s0 + $0x568] sm:$0xff]  ;;  %v60_v52 = vld [vmem:[%s5262_s0 + $0x170] sm:$0xff] }
  0x3e   :  { %v188_v53 = vld [vmem:[%s5262_s0 + $0x570] sm:$0xff] }
  0x40   :  { %2482 = vmatmul.mubr.f32.gmra.mrb[14].mxu0 %v29_v54  ;;  %2674 = vmatmul.mubr.f32.gmra.mrb[14].mxu1 %v157_v55  ;;  %v61_v54 = vld [vmem:[%s5262_s0 + $0x178] sm:$0xff] }
  0x41   :  { %2484 = vmatprep.mubr.f32.mxu0 %v30_v56  ;;  %2676 = vmatprep.mubr.f32.mxu1 %v158_v57  ;;  %v189_v55 = vld [vmem:[%s5262_s0 + $0x578] sm:$0xff]  ;;  %v62_v56 = vld [vmem:[%s5262_s0 + $0x180] sm:$0xff] }
  0x42   :  { %v190_v57 = vld [vmem:[%s5262_s0 + $0x580] sm:$0xff] }
  0x44   :  { %2485 = vmatmul.mubr.f32.gmra.mrb[16].mxu0 %v31_v58  ;;  %2677 = vmatmul.mubr.f32.gmra.mrb[16].mxu1 %v159_v59  ;;  %v63_v58 = vld [vmem:[%s5262_s0 + $0x188] sm:$0xff] }
  0x45   :  { %2487 = vmatprep.mubr.f32.mxu0 %v32_v60  ;;  %2679 = vmatprep.mubr.f32.mxu1 %v160_v61  ;;  %v191_v59 = vld [vmem:[%s5262_s0 + $0x588] sm:$0xff]  ;;  %v64_v60 = vld [vmem:[%s5262_s0 + $0x190] sm:$0xff] }
  0x46   :  { %v192_v61 = vld [vmem:[%s5262_s0 + $0x590] sm:$0xff] }
  0x48   :  { %2488 = vmatmul.mubr.f32.gmra.mrb[18].mxu0 %v33_v62  ;;  %2680 = vmatmul.mubr.f32.gmra.mrb[18].mxu1 %v161_v63  ;;  %v65_v62 = vld [vmem:[%s5262_s0 + $0x198] sm:$0xff] }
  0x49   :  { %2490 = vmatprep.mubr.f32.mxu0 %v34_v0  ;;  %2682 = vmatprep.mubr.f32.mxu1 %v162_v1  ;;  %v193_v63 = vld [vmem:[%s5262_s0 + $0x598] sm:$0xff]  ;;  %v66_v0 = vld [vmem:[%s5262_s0 + $0x1a0] sm:$0xff] }
  0x4a   :  { %v194_v1 = vld [vmem:[%s5262_s0 + $0x5a0] sm:$0xff] }
  0x4c   :  { %2491 = vmatmul.mubr.f32.gmra.mrb[20].mxu0 %v35_v2  ;;  %2683 = vmatmul.mubr.f32.gmra.mrb[20].mxu1 %v163_v3  ;;  %v67_v2 = vld [vmem:[%s5262_s0 + $0x1a8] sm:$0xff] }
  0x4d   :  { %2493 = vmatprep.mubr.f32.mxu0 %v36_v4  ;;  %2685 = vmatprep.mubr.f32.mxu1 %v164_v5  ;;  %v195_v3 = vld [vmem:[%s5262_s0 + $0x5a8] sm:$0xff]  ;;  %v68_v4 = vld [vmem:[%s5262_s0 + $0x1b0] sm:$0xff] }
  0x4e   :  { %v196_v5 = vld [vmem:[%s5262_s0 + $0x5b0] sm:$0xff] }
  0x50   :  { %2494 = vmatmul.mubr.f32.gmra.mrb[22].mxu0 %v37_v6  ;;  %2686 = vmatmul.mubr.f32.gmra.mrb[22].mxu1 %v165_v7  ;;  %v69_v6 = vld [vmem:[%s5262_s0 + $0x1b8] sm:$0xff] }
  0x51   :  { %2496 = vmatprep.mubr.f32.mxu0 %v38_v8  ;;  %2688 = vmatprep.mubr.f32.mxu1 %v166_v9  ;;  %v197_v7 = vld [vmem:[%s5262_s0 + $0x5b8] sm:$0xff]  ;;  %v70_v8 = vld [vmem:[%s5262_s0 + $0x1c0] sm:$0xff] }
  0x52   :  { %v198_v9 = vld [vmem:[%s5262_s0 + $0x5c0] sm:$0xff] }
  0x54   :  { %2497 = vmatmul.mubr.f32.gmra.mrb[24].mxu0 %v39_v10  ;;  %2689 = vmatmul.mubr.f32.gmra.mrb[24].mxu1 %v167_v11  ;;  %v71_v10 = vld [vmem:[%s5262_s0 + $0x1c8] sm:$0xff] }
  0x55   :  { %2499 = vmatprep.mubr.f32.mxu0 %v40_v12  ;;  %2691 = vmatprep.mubr.f32.mxu1 %v168_v13  ;;  %v199_v11 = vld [vmem:[%s5262_s0 + $0x5c8] sm:$0xff]  ;;  %v72_v12 = vld [vmem:[%s5262_s0 + $0x1d0] sm:$0xff] }
  0x56   :  { %v200_v13 = vld [vmem:[%s5262_s0 + $0x5d0] sm:$0xff] }
  0x58   :  { %2500 = vmatmul.mubr.f32.gmra.mrb[26].mxu0 %v41_v14  ;;  %2692 = vmatmul.mubr.f32.gmra.mrb[26].mxu1 %v169_v15  ;;  %v73_v14 = vld [vmem:[%s5262_s0 + $0x1d8] sm:$0xff] }
  0x59   :  { %2502 = vmatprep.mubr.f32.mxu0 %v42_v16  ;;  %2694 = vmatprep.mubr.f32.mxu1 %v170_v17  ;;  %v201_v15 = vld [vmem:[%s5262_s0 + $0x5d8] sm:$0xff]  ;;  %v74_v16 = vld [vmem:[%s5262_s0 + $0x1e0] sm:$0xff] }
  0x5a   :  { %v202_v17 = vld [vmem:[%s5262_s0 + $0x5e0] sm:$0xff] }
  0x5c   :  { %2503 = vmatmul.mubr.f32.gmra.mrb[28].mxu0 %v43_v18  ;;  %2695 = vmatmul.mubr.f32.gmra.mrb[28].mxu1 %v171_v19  ;;  %v75_v18 = vld [vmem:[%s5262_s0 + $0x1e8] sm:$0xff] }
  0x5d   :  { %2505 = vmatprep.mubr.f32.mxu0 %v44_v20  ;;  %2697 = vmatprep.mubr.f32.mxu1 %v172_v21  ;;  %v203_v19 = vld [vmem:[%s5262_s0 + $0x5e8] sm:$0xff]  ;;  %v76_v20 = vld [vmem:[%s5262_s0 + $0x1f0] sm:$0xff] }
  0x5e   :  { %v204_v21 = vld [vmem:[%s5262_s0 + $0x5f0] sm:$0xff] }
  0x60   :  { %2506 = vmatmul.mubr.f32.gmra.mrb[30].mxu0 %v45_v22  ;;  %2698 = vmatmul.mubr.f32.gmra.mrb[30].mxu1 %v173_v23  ;;  %v77_v22 = vld [vmem:[%s5262_s0 + $0x1f8] sm:$0xff] }
  0x61   :  { %2508 = vmatprep.mubr.f32.mxu0 %v46_v24  ;;  %2700 = vmatprep.mubr.f32.mxu1 %v174_v25  ;;  %v205_v23 = vld [vmem:[%s5262_s0 + $0x5f8] sm:$0xff]  ;;  %v78_v24 = vld [vmem:[%s5262_s0 + $0x200] sm:$0xff] }
  0x62   :  { %v206_v25 = vld [vmem:[%s5262_s0 + $0x600] sm:$0xff] }
  0x64   :  { %2509 = vmatmul.mubr.f32.gmra.mrb[32].mxu0 %v47_v26  ;;  %2701 = vmatmul.mubr.f32.gmra.mrb[32].mxu1 %v175_v27  ;;  %v79_v26 = vld [vmem:[%s5262_s0 + $0x208] sm:$0xff] }
  0x65   :  { %2511 = vmatprep.mubr.f32.mxu0 %v48_v28  ;;  %2703 = vmatprep.mubr.f32.mxu1 %v176_v29  ;;  %v207_v27 = vld [vmem:[%s5262_s0 + $0x608] sm:$0xff]  ;;  %v80_v28 = vld [vmem:[%s5262_s0 + $0x210] sm:$0xff] }
  0x66   :  { %v208_v29 = vld [vmem:[%s5262_s0 + $0x610] sm:$0xff] }
  0x68   :  { %2512 = vmatmul.mubr.f32.gmra.mrb[34].mxu0 %v49_v30  ;;  %2704 = vmatmul.mubr.f32.gmra.mrb[34].mxu1 %v177_v31  ;;  %v81_v30 = vld [vmem:[%s5262_s0 + $0x218] sm:$0xff] }
  0x69   :  { %2514 = vmatprep.mubr.f32.mxu0 %v50_v32  ;;  %2706 = vmatprep.mubr.f32.mxu1 %v178_v33  ;;  %v209_v31 = vld [vmem:[%s5262_s0 + $0x618] sm:$0xff]  ;;  %v82_v32 = vld [vmem:[%s5262_s0 + $0x220] sm:$0xff] }
  0x6a   :  { %v210_v33 = vld [vmem:[%s5262_s0 + $0x620] sm:$0xff] }
  0x6c   :  { %2515 = vmatmul.mubr.f32.gmra.mrb[36].mxu0 %v51_v34  ;;  %2707 = vmatmul.mubr.f32.gmra.mrb[36].mxu1 %v179_v35  ;;  %v83_v34 = vld [vmem:[%s5262_s0 + $0x228] sm:$0xff] }
  0x6d   :  { %2517 = vmatprep.mubr.f32.mxu0 %v52_v36  ;;  %2709 = vmatprep.mubr.f32.mxu1 %v180_v37  ;;  %v211_v35 = vld [vmem:[%s5262_s0 + $0x628] sm:$0xff]  ;;  %v84_v36 = vld [vmem:[%s5262_s0 + $0x230] sm:$0xff] }
  0x6e   :  { %v212_v37 = vld [vmem:[%s5262_s0 + $0x630] sm:$0xff] }
  0x70   :  { %2518 = vmatmul.mubr.f32.gmra.mrb[38].mxu0 %v53_v38  ;;  %2710 = vmatmul.mubr.f32.gmra.mrb[38].mxu1 %v181_v39  ;;  %v85_v38 = vld [vmem:[%s5262_s0 + $0x238] sm:$0xff] }
  0x71   :  { %2520 = vmatprep.mubr.f32.mxu0 %v54_v40  ;;  %2712 = vmatprep.mubr.f32.mxu1 %v182_v41  ;;  %v213_v39 = vld [vmem:[%s5262_s0 + $0x638] sm:$0xff]  ;;  %v86_v40 = vld [vmem:[%s5262_s0 + $0x240] sm:$0xff] }
  0x72   :  { %v214_v41 = vld [vmem:[%s5262_s0 + $0x640] sm:$0xff] }
  0x74   :  { %2521 = vmatmul.mubr.f32.gmra.mrb[40].mxu0 %v55_v42  ;;  %2713 = vmatmul.mubr.f32.gmra.mrb[40].mxu1 %v183_v43  ;;  %v87_v42 = vld [vmem:[%s5262_s0 + $0x248] sm:$0xff] }
  0x75   :  { %2523 = vmatprep.mubr.f32.mxu0 %v56_v44  ;;  %2715 = vmatprep.mubr.f32.mxu1 %v184_v45  ;;  %v215_v43 = vld [vmem:[%s5262_s0 + $0x648] sm:$0xff]  ;;  %v88_v44 = vld [vmem:[%s5262_s0 + $0x250] sm:$0xff] }
  0x76   :  { %v216_v45 = vld [vmem:[%s5262_s0 + $0x650] sm:$0xff] }
  0x78   :  { %2524 = vmatmul.mubr.f32.gmra.mrb[42].mxu0 %v57_v46  ;;  %2716 = vmatmul.mubr.f32.gmra.mrb[42].mxu1 %v185_v47  ;;  %v89_v46 = vld [vmem:[%s5262_s0 + $0x258] sm:$0xff] }
  0x79   :  { %2526 = vmatprep.mubr.f32.mxu0 %v58_v48  ;;  %2718 = vmatprep.mubr.f32.mxu1 %v186_v49  ;;  %v217_v47 = vld [vmem:[%s5262_s0 + $0x658] sm:$0xff]  ;;  %v90_v48 = vld [vmem:[%s5262_s0 + $0x260] sm:$0xff] }
  0x7a   :  { %v218_v49 = vld [vmem:[%s5262_s0 + $0x660] sm:$0xff] }
  0x7c   :  { %2527 = vmatmul.mubr.f32.gmra.mrb[44].mxu0 %v59_v50  ;;  %2719 = vmatmul.mubr.f32.gmra.mrb[44].mxu1 %v187_v51  ;;  %v91_v50 = vld [vmem:[%s5262_s0 + $0x268] sm:$0xff] }
  0x7d   :  { %2529 = vmatprep.mubr.f32.mxu0 %v60_v52  ;;  %2721 = vmatprep.mubr.f32.mxu1 %v188_v53  ;;  %v219_v51 = vld [vmem:[%s5262_s0 + $0x668] sm:$0xff]  ;;  %v92_v52 = vld [vmem:[%s5262_s0 + $0x270] sm:$0xff] }
  0x7e   :  { %v220_v53 = vld [vmem:[%s5262_s0 + $0x670] sm:$0xff] }
  0x80   :  { %2530 = vmatmul.mubr.f32.gmra.mrb[46].mxu0 %v61_v54  ;;  %2722 = vmatmul.mubr.f32.gmra.mrb[46].mxu1 %v189_v55  ;;  %v93_v54 = vld [vmem:[%s5262_s0 + $0x278] sm:$0xff] }
  0x81   :  { %2532 = vmatprep.mubr.f32.mxu0 %v62_v56  ;;  %2724 = vmatprep.mubr.f32.mxu1 %v190_v57  ;;  %v221_v55 = vld [vmem:[%s5262_s0 + $0x678] sm:$0xff]  ;;  %v94_v56 = vld [vmem:[%s5262_s0 + $0x280] sm:$0xff] }
  0x82   :  { %v222_v57 = vld [vmem:[%s5262_s0 + $0x680] sm:$0xff] }
  0x84   :  { %2533 = vmatmul.mubr.f32.gmra.mrb[48].mxu0 %v63_v58  ;;  %2725 = vmatmul.mubr.f32.gmra.mrb[48].mxu1 %v191_v59  ;;  %v95_v58 = vld [vmem:[%s5262_s0 + $0x288] sm:$0xff] }
  0x85   :  { %2535 = vmatprep.mubr.f32.mxu0 %v64_v60  ;;  %2727 = vmatprep.mubr.f32.mxu1 %v192_v61  ;;  %v223_v59 = vld [vmem:[%s5262_s0 + $0x688] sm:$0xff]  ;;  %v96_v60 = vld [vmem:[%s5262_s0 + $0x290] sm:$0xff] }
  0x86   :  { %v224_v61 = vld [vmem:[%s5262_s0 + $0x690] sm:$0xff] }
  0x88   :  { %2536 = vmatmul.mubr.f32.gmra.mrb[50].mxu0 %v65_v62  ;;  %2728 = vmatmul.mubr.f32.gmra.mrb[50].mxu1 %v193_v63  ;;  %v97_v62 = vld [vmem:[%s5262_s0 + $0x298] sm:$0xff] }
  0x89   :  { %2538 = vmatprep.mubr.f32.mxu0 %v66_v0  ;;  %2730 = vmatprep.mubr.f32.mxu1 %v194_v1  ;;  %v225_v63 = vld [vmem:[%s5262_s0 + $0x698] sm:$0xff]  ;;  %v98_v0 = vld [vmem:[%s5262_s0 + $0x2a0] sm:$0xff] }
  0x8a   :  { %v226_v1 = vld [vmem:[%s5262_s0 + $0x6a0] sm:$0xff] }
  0x8c   :  { %2539 = vmatmul.mubr.f32.gmra.mrb[52].mxu0 %v67_v2  ;;  %2731 = vmatmul.mubr.f32.gmra.mrb[52].mxu1 %v195_v3  ;;  %v99_v2 = vld [vmem:[%s5262_s0 + $0x2a8] sm:$0xff] }
  0x8d   :  { %2541 = vmatprep.mubr.f32.mxu0 %v68_v4  ;;  %2733 = vmatprep.mubr.f32.mxu1 %v196_v5  ;;  %v227_v3 = vld [vmem:[%s5262_s0 + $0x6a8] sm:$0xff]  ;;  %v100_v4 = vld [vmem:[%s5262_s0 + $0x2b0] sm:$0xff] }
  0x8e   :  { %v228_v5 = vld [vmem:[%s5262_s0 + $0x6b0] sm:$0xff] }
  0x90   :  { %2542 = vmatmul.mubr.f32.gmra.mrb[54].mxu0 %v69_v6  ;;  %2734 = vmatmul.mubr.f32.gmra.mrb[54].mxu1 %v197_v7  ;;  %v101_v6 = vld [vmem:[%s5262_s0 + $0x2b8] sm:$0xff] }
  0x91   :  { %2544 = vmatprep.mubr.f32.mxu0 %v70_v8  ;;  %2736 = vmatprep.mubr.f32.mxu1 %v198_v9  ;;  %v229_v7 = vld [vmem:[%s5262_s0 + $0x6b8] sm:$0xff]  ;;  %v102_v8 = vld [vmem:[%s5262_s0 + $0x2c0] sm:$0xff] }
  0x92   :  { %v230_v9 = vld [vmem:[%s5262_s0 + $0x6c0] sm:$0xff] }
  0x94   :  { %2545 = vmatmul.mubr.f32.gmra.mrb[56].mxu0 %v71_v10  ;;  %2737 = vmatmul.mubr.f32.gmra.mrb[56].mxu1 %v199_v11  ;;  %v103_v10 = vld [vmem:[%s5262_s0 + $0x2c8] sm:$0xff] }
  0x95   :  { %2547 = vmatprep.mubr.f32.mxu0 %v72_v12  ;;  %2739 = vmatprep.mubr.f32.mxu1 %v200_v13  ;;  %v231_v11 = vld [vmem:[%s5262_s0 + $0x6c8] sm:$0xff]  ;;  %v104_v12 = vld [vmem:[%s5262_s0 + $0x2d0] sm:$0xff] }
  0x96   :  { %v232_v13 = vld [vmem:[%s5262_s0 + $0x6d0] sm:$0xff] }
  0x98   :  { %2548 = vmatmul.mubr.f32.gmra.mrb[58].mxu0 %v73_v14  ;;  %2740 = vmatmul.mubr.f32.gmra.mrb[58].mxu1 %v201_v15  ;;  %v105_v14 = vld [vmem:[%s5262_s0 + $0x2d8] sm:$0xff] }
  0x99   :  { %2550 = vmatprep.mubr.f32.mxu0 %v74_v16  ;;  %2742 = vmatprep.mubr.f32.mxu1 %v202_v17  ;;  %v233_v15 = vld [vmem:[%s5262_s0 + $0x6d8] sm:$0xff]  ;;  %v106_v16 = vld [vmem:[%s5262_s0 + $0x2e0] sm:$0xff] }
  0x9a   :  { %v234_v17 = vld [vmem:[%s5262_s0 + $0x6e0] sm:$0xff] }
  0x9c   :  { %2551 = vmatmul.mubr.f32.gmra.mrb[60].mxu0 %v75_v18  ;;  %2743 = vmatmul.mubr.f32.gmra.mrb[60].mxu1 %v203_v19  ;;  %v107_v18 = vld [vmem:[%s5262_s0 + $0x2e8] sm:$0xff] }
  0x9d   :  { %2553 = vmatprep.mubr.f32.mxu0 %v76_v20  ;;  %2745 = vmatprep.mubr.f32.mxu1 %v204_v21  ;;  %v235_v19 = vld [vmem:[%s5262_s0 + $0x6e8] sm:$0xff]  ;;  %v108_v20 = vld [vmem:[%s5262_s0 + $0x2f0] sm:$0xff] }
  0x9e   :  { %v236_v21 = vld [vmem:[%s5262_s0 + $0x6f0] sm:$0xff] }
  0xa0   :  { %2554 = vmatmul.mubr.f32.gmra.mrb[62].mxu0 %v77_v22  ;;  %2746 = vmatmul.mubr.f32.gmra.mrb[62].mxu1 %v205_v23  ;;  %v109_v22 = vld [vmem:[%s5262_s0 + $0x2f8] sm:$0xff] }
  0xa1   :  { %2556 = vmatprep.mubr.f32.mxu0 %v78_v24  ;;  %2748 = vmatprep.mubr.f32.mxu1 %v206_v25  ;;  %v237_v23 = vld [vmem:[%s5262_s0 + $0x6f8] sm:$0xff]  ;;  %v110_v24 = vld [vmem:[%s5262_s0 + $0x300] sm:$0xff] }
  0xa2   :  { %v238_v25 = vld [vmem:[%s5262_s0 + $0x700] sm:$0xff] }
  0xa4   :  { %2557 = vmatmul.mubr.f32.gmra.mrb[64].mxu0 %v79_v26  ;;  %2749 = vmatmul.mubr.f32.gmra.mrb[64].mxu1 %v207_v27  ;;  %v111_v26 = vld [vmem:[%s5262_s0 + $0x308] sm:$0xff] }
  0xa5   :  { %2559 = vmatprep.mubr.f32.mxu0 %v80_v28  ;;  %2751 = vmatprep.mubr.f32.mxu1 %v208_v29  ;;  %v239_v27 = vld [vmem:[%s5262_s0 + $0x708] sm:$0xff]  ;;  %v112_v28 = vld [vmem:[%s5262_s0 + $0x310] sm:$0xff] }
  0xa6   :  { %v240_v29 = vld [vmem:[%s5262_s0 + $0x710] sm:$0xff] }
  0xa8   :  { %2560 = vmatmul.mubr.f32.gmra.mrb[66].mxu0 %v81_v30  ;;  %2752 = vmatmul.mubr.f32.gmra.mrb[66].mxu1 %v209_v31  ;;  %v113_v30 = vld [vmem:[%s5262_s0 + $0x318] sm:$0xff] }
  0xa9   :  { %2562 = vmatprep.mubr.f32.mxu0 %v82_v32  ;;  %2754 = vmatprep.mubr.f32.mxu1 %v210_v33  ;;  %v241_v31 = vld [vmem:[%s5262_s0 + $0x718] sm:$0xff]  ;;  %v114_v32 = vld [vmem:[%s5262_s0 + $0x320] sm:$0xff] }
  0xaa   :  { %v242_v33 = vld [vmem:[%s5262_s0 + $0x720] sm:$0xff] }
  0xac   :  { %2563 = vmatmul.mubr.f32.gmra.mrb[68].mxu0 %v83_v34  ;;  %2755 = vmatmul.mubr.f32.gmra.mrb[68].mxu1 %v211_v35  ;;  %v115_v34 = vld [vmem:[%s5262_s0 + $0x328] sm:$0xff] }
  0xad   :  { %2565 = vmatprep.mubr.f32.mxu0 %v84_v36  ;;  %2757 = vmatprep.mubr.f32.mxu1 %v212_v37  ;;  %v243_v35 = vld [vmem:[%s5262_s0 + $0x728] sm:$0xff]  ;;  %v116_v36 = vld [vmem:[%s5262_s0 + $0x330] sm:$0xff] }
  0xae   :  { %v244_v37 = vld [vmem:[%s5262_s0 + $0x730] sm:$0xff] }
  0xb0   :  { %2566 = vmatmul.mubr.f32.gmra.mrb[70].mxu0 %v85_v38  ;;  %2758 = vmatmul.mubr.f32.gmra.mrb[70].mxu1 %v213_v39  ;;  %v117_v38 = vld [vmem:[%s5262_s0 + $0x338] sm:$0xff] }
  0xb1   :  { %2568 = vmatprep.mubr.f32.mxu0 %v86_v40  ;;  %2760 = vmatprep.mubr.f32.mxu1 %v214_v41  ;;  %v245_v39 = vld [vmem:[%s5262_s0 + $0x738] sm:$0xff]  ;;  %v118_v40 = vld [vmem:[%s5262_s0 + $0x340] sm:$0xff] }
  0xb2   :  { %v246_v41 = vld [vmem:[%s5262_s0 + $0x740] sm:$0xff] }
  0xb4   :  { %2569 = vmatmul.mubr.f32.gmra.mrb[72].mxu0 %v87_v42  ;;  %2761 = vmatmul.mubr.f32.gmra.mrb[72].mxu1 %v215_v43  ;;  %v119_v42 = vld [vmem:[%s5262_s0 + $0x348] sm:$0xff] }
  0xb5   :  { %2571 = vmatprep.mubr.f32.mxu0 %v88_v44  ;;  %2763 = vmatprep.mubr.f32.mxu1 %v216_v45  ;;  %v247_v43 = vld [vmem:[%s5262_s0 + $0x748] sm:$0xff]  ;;  %v120_v44 = vld [vmem:[%s5262_s0 + $0x350] sm:$0xff] }
  0xb6   :  { %v248_v45 = vld [vmem:[%s5262_s0 + $0x750] sm:$0xff] }
  0xb8   :  { %2572 = vmatmul.mubr.f32.gmra.mrb[74].mxu0 %v89_v46  ;;  %2764 = vmatmul.mubr.f32.gmra.mrb[74].mxu1 %v217_v47  ;;  %v121_v46 = vld [vmem:[%s5262_s0 + $0x358] sm:$0xff] }
  0xb9   :  { %2574 = vmatprep.mubr.f32.mxu0 %v90_v48  ;;  %2766 = vmatprep.mubr.f32.mxu1 %v218_v49  ;;  %v249_v47 = vld [vmem:[%s5262_s0 + $0x758] sm:$0xff]  ;;  %v122_v48 = vld [vmem:[%s5262_s0 + $0x360] sm:$0xff] }
  0xba   :  { %v250_v49 = vld [vmem:[%s5262_s0 + $0x760] sm:$0xff] }
  0xbc   :  { %2575 = vmatmul.mubr.f32.gmra.mrb[76].mxu0 %v91_v50  ;;  %2767 = vmatmul.mubr.f32.gmra.mrb[76].mxu1 %v219_v51 }
  0xbd   :  { %2577 = vmatprep.mubr.f32.mxu0 %v92_v52  ;;  %2769 = vmatprep.mubr.f32.mxu1 %v220_v53 }
  0xc0   :  { %2578 = vmatmul.mubr.f32.gmra.mrb[78].mxu0 %v93_v54  ;;  %2770 = vmatmul.mubr.f32.gmra.mrb[78].mxu1 %v221_v55  ;;  %v123_v54 = vld [vmem:[%s5262_s0 + $0x368] sm:$0xff] }
  0xc1   :  { %2580 = vmatprep.mubr.f32.mxu0 %v94_v56  ;;  %2772 = vmatprep.mubr.f32.mxu1 %v222_v57  ;;  %v251_v55 = vld [vmem:[%s5262_s0 + $0x768] sm:$0xff]  ;;  %v124_v56 = vld [vmem:[%s5262_s0 + $0x370] sm:$0xff] }
  0xc2   :  { %v252_v57 = vld [vmem:[%s5262_s0 + $0x770] sm:$0xff] }
  0xc4   :  { %2581 = vmatmul.mubr.f32.gmra.mrb[80].mxu0 %v95_v58  ;;  %2773 = vmatmul.mubr.f32.gmra.mrb[80].mxu1 %v223_v59 }
  0xc5   :  { %2583 = vmatprep.mubr.f32.mxu0 %v96_v60  ;;  %2775 = vmatprep.mubr.f32.mxu1 %v224_v61 }
  0xc8   :  { %2584 = vmatmul.mubr.f32.gmra.mrb[82].mxu0 %v97_v62  ;;  %2776 = vmatmul.mubr.f32.gmra.mrb[82].mxu1 %v225_v63  ;;  %v125_v62 = vld [vmem:[%s5262_s0 + $0x378] sm:$0xff] }
  0xc9   :  { %2586 = vmatprep.mubr.f32.mxu0 %v98_v0  ;;  %2778 = vmatprep.mubr.f32.mxu1 %v226_v1  ;;  %v253_v63 = vld [vmem:[%s5262_s0 + $0x778] sm:$0xff]  ;;  %v126_v0 = vld [vmem:[%s5262_s0 + $0x380] sm:$0xff] }
  0xca   :  { %v254_v1 = vld [vmem:[%s5262_s0 + $0x780] sm:$0xff] }
  0xcc   :  { %2587 = vmatmul.mubr.f32.gmra.mrb[84].mxu0 %v99_v2  ;;  %2779 = vmatmul.mubr.f32.gmra.mrb[84].mxu1 %v227_v3 }
  0xcd   :  { %2589 = vmatprep.mubr.f32.mxu0 %v100_v4  ;;  %2781 = vmatprep.mubr.f32.mxu1 %v228_v5 }
  0xd0   :  { %2590 = vmatmul.mubr.f32.gmra.mrb[86].mxu0 %v101_v6  ;;  %2782 = vmatmul.mubr.f32.gmra.mrb[86].mxu1 %v229_v7  ;;  %v127_v6 = vld [vmem:[%s5262_s0 + $0x388] sm:$0xff] }
  0xd1   :  { %2592 = vmatprep.mubr.f32.mxu0 %v102_v8  ;;  %2784 = vmatprep.mubr.f32.mxu1 %v230_v9  ;;  %v255_v7 = vld [vmem:[%s5262_s0 + $0x788] sm:$0xff]  ;;  %v128_v8 = vld [vmem:[%s5262_s0 + $0x390] sm:$0xff] }
  0xd2   :  { %v256_v9 = vld [vmem:[%s5262_s0 + $0x790] sm:$0xff] }
  0xd4   :  { %2593 = vmatmul.mubr.f32.gmra.mrb[88].mxu0 %v103_v10  ;;  %2785 = vmatmul.mubr.f32.gmra.mrb[88].mxu1 %v231_v11 }
  0xd5   :  { %2595 = vmatprep.mubr.f32.mxu0 %v104_v12  ;;  %2787 = vmatprep.mubr.f32.mxu1 %v232_v13 }
  0xd8   :  { %2596 = vmatmul.mubr.f32.gmra.mrb[90].mxu0 %v105_v14  ;;  %2788 = vmatmul.mubr.f32.gmra.mrb[90].mxu1 %v233_v15  ;;  %v129_v14 = vld [vmem:[%s5262_s0 + $0x398] sm:$0xff] }
  0xd9   :  { %2598 = vmatprep.mubr.f32.mxu0 %v106_v16  ;;  %2790 = vmatprep.mubr.f32.mxu1 %v234_v17  ;;  %v257_v15 = vld [vmem:[%s5262_s0 + $0x798] sm:$0xff]  ;;  %v130_v16 = vld [vmem:[%s5262_s0 + $0x3a0] sm:$0xff] }
  0xda   :  { %v258_v17 = vld [vmem:[%s5262_s0 + $0x7a0] sm:$0xff] }
  0xdc   :  { %2599 = vmatmul.mubr.f32.gmra.mrb[92].mxu0 %v107_v18  ;;  %2791 = vmatmul.mubr.f32.gmra.mrb[92].mxu1 %v235_v19 }
  0xdd   :  { %2601 = vmatprep.mubr.f32.mxu0 %v108_v20  ;;  %2793 = vmatprep.mubr.f32.mxu1 %v236_v21 }
  0xe0   :  { %2602 = vmatmul.mubr.f32.gmra.mrb[94].mxu0 %v109_v22  ;;  %2794 = vmatmul.mubr.f32.gmra.mrb[94].mxu1 %v237_v23  ;;  %v131_v22 = vld [vmem:[%s5262_s0 + $0x3a8] sm:$0xff] }
  0xe1   :  { %2604 = vmatprep.mubr.f32.mxu0 %v110_v24  ;;  %2796 = vmatprep.mubr.f32.mxu1 %v238_v25  ;;  %v259_v23 = vld [vmem:[%s5262_s0 + $0x7a8] sm:$0xff]  ;;  %v132_v24 = vld [vmem:[%s5262_s0 + $0x3b0] sm:$0xff] }
  0xe2   :  { %v260_v25 = vld [vmem:[%s5262_s0 + $0x7b0] sm:$0xff] }
  0xe4   :  { %2605 = vmatmul.mubr.f32.gmra.mrb[96].mxu0 %v111_v26  ;;  %2797 = vmatmul.mubr.f32.gmra.mrb[96].mxu1 %v239_v27 }
  0xe5   :  { %2607 = vmatprep.mubr.f32.mxu0 %v112_v28  ;;  %2799 = vmatprep.mubr.f32.mxu1 %v240_v29 }
  0xe8   :  { %2608 = vmatmul.mubr.f32.gmra.mrb[98].mxu0 %v113_v30  ;;  %2800 = vmatmul.mubr.f32.gmra.mrb[98].mxu1 %v241_v31  ;;  %v133_v30 = vld [vmem:[%s5262_s0 + $0x3b8] sm:$0xff] }
  0xe9   :  { %2610 = vmatprep.mubr.f32.mxu0 %v114_v32  ;;  %2802 = vmatprep.mubr.f32.mxu1 %v242_v33  ;;  %v261_v31 = vld [vmem:[%s5262_s0 + $0x7b8] sm:$0xff]  ;;  %v134_v32 = vld [vmem:[%s5262_s0 + $0x3c0] sm:$0xff] }
  0xea   :  { %v262_v33 = vld [vmem:[%s5262_s0 + $0x7c0] sm:$0xff] }
  0xec   :  { %2611 = vmatmul.mubr.f32.gmra.mrb[100].mxu0 %v115_v34  ;;  %2803 = vmatmul.mubr.f32.gmra.mrb[100].mxu1 %v243_v35 }
  0xed   :  { %2613 = vmatprep.mubr.f32.mxu0 %v116_v36  ;;  %2805 = vmatprep.mubr.f32.mxu1 %v244_v37 }
  0xf0   :  { %2614 = vmatmul.mubr.f32.gmra.mrb[102].mxu0 %v117_v38  ;;  %2806 = vmatmul.mubr.f32.gmra.mrb[102].mxu1 %v245_v39  ;;  %v135_v38 = vld [vmem:[%s5262_s0 + $0x3c8] sm:$0xff] }
  0xf1   :  { %2616 = vmatprep.mubr.f32.mxu0 %v118_v40  ;;  %2808 = vmatprep.mubr.f32.mxu1 %v246_v41  ;;  %v263_v39 = vld [vmem:[%s5262_s0 + $0x7c8] sm:$0xff]  ;;  %v136_v40 = vld [vmem:[%s5262_s0 + $0x3d0] sm:$0xff] }
  0xf2   :  { %v264_v41 = vld [vmem:[%s5262_s0 + $0x7d0] sm:$0xff] }
  0xf4   :  { %2617 = vmatmul.mubr.f32.gmra.mrb[104].mxu0 %v119_v42  ;;  %2809 = vmatmul.mubr.f32.gmra.mrb[104].mxu1 %v247_v43 }
  0xf5   :  { %2619 = vmatprep.mubr.f32.mxu0 %v120_v44  ;;  %2811 = vmatprep.mubr.f32.mxu1 %v248_v45 }
  0xf7   :  { %v3615_v50 = vpop.f32.mrb[0].mxu0  ;;  %v3617_v51 = vpop.f32.mrb[0].mxu1 }
  0xf8   :  { %v3619_v52 = vpop.f32.mrb[1].mxu0  ;;  %2620 = vmatmul.mubr.f32.gmra.mrb[106].mxu0 %v121_v46  ;;  %v3621_v53 = vpop.f32.mrb[1].mxu1  ;;  %2812 = vmatmul.mubr.f32.gmra.mrb[106].mxu1 %v249_v47  ;;  %v137_v46 = vld [vmem:[%s5262_s0 + $0x3d8] sm:$0xff] }
  0xf9   :  { %2622 = vmatprep.mubr.f32.mxu0 %v122_v48  ;;  %2814 = vmatprep.mubr.f32.mxu1 %v250_v49  ;;  %v265_v47 = vld [vmem:[%s5262_s0 + $0x7d8] sm:$0xff]  ;;  %v138_v48 = vld [vmem:[%s5262_s0 + $0x3e0] sm:$0xff] }
  0xfa   :  { %v266_v49 = vld [vmem:[%s5262_s0 + $0x7e0] sm:$0xff] }
  0xfb   :  { %v3635_v58 = vpop.f32.mrb[2].mxu0  ;;  %v3637_v59 = vpop.f32.mrb[2].mxu1 }
  0xfc   :  { %v3639_v60 = vpop.f32.mrb[3].mxu0  ;;  %2623 = vmatmul.mubr.f32.gmra.mrb[108].mxu0 %v123_v54  ;;  %v3641_v61 = vpop.f32.mrb[3].mxu1  ;;  %2815 = vmatmul.mubr.f32.gmra.mrb[108].mxu1 %v251_v55 }
  0xfd   :  { %2625 = vmatprep.mubr.f32.mxu0 %v124_v56  ;;  %2817 = vmatprep.mubr.f32.mxu1 %v252_v57 }
  0xff   :  { %v3655_v2 = vpop.f32.mrb[4].mxu0  ;;  %v3657_v3 = vpop.f32.mrb[4].mxu1 }
 0x100   :  { %v3659_v4 = vpop.f32.mrb[5].mxu0  ;;  %2626 = vmatmul.mubr.f32.gmra.mrb[110].mxu0 %v125_v62  ;;  %v3661_v5 = vpop.f32.mrb[5].mxu1  ;;  %2818 = vmatmul.mubr.f32.gmra.mrb[110].mxu1 %v253_v63  ;;  %v139_v62 = vld [vmem:[%s5262_s0 + $0x3e8] sm:$0xff] }
 0x101   :  { %2628 = vmatprep.mubr.f32.mxu0 %v126_v0  ;;  %2820 = vmatprep.mubr.f32.mxu1 %v254_v1  ;;  %v267_v63 = vld [vmem:[%s5262_s0 + $0x7e8] sm:$0xff]  ;;  %v140_v0 = vld [vmem:[%s5262_s0 + $0x3f0] sm:$0xff] }
 0x102   :  { %v268_v1 = vld [vmem:[%s5262_s0 + $0x7f0] sm:$0xff] }
 0x103   :  { %v3675_v10 = vpop.f32.mrb[6].mxu0  ;;  %v3677_v11 = vpop.f32.mrb[6].mxu1 }
 0x104   :  { %v3679_v12 = vpop.f32.mrb[7].mxu0  ;;  %2629 = vmatmul.mubr.f32.gmra.mrb[112].mxu0 %v127_v6  ;;  %v3681_v13 = vpop.f32.mrb[7].mxu1  ;;  %2821 = vmatmul.mubr.f32.gmra.mrb[112].mxu1 %v255_v7 }
 0x105   :  { %2631 = vmatprep.mubr.f32.mxu0 %v128_v8  ;;  %2823 = vmatprep.mubr.f32.mxu1 %v256_v9 }
 0x107   :  { %v3695_v18 = vpop.f32.mrb[8].mxu0  ;;  %v3697_v19 = vpop.f32.mrb[8].mxu1 }
 0x108   :  { %v3699_v20 = vpop.f32.mrb[9].mxu0  ;;  %2632 = vmatmul.mubr.f32.gmra.mrb[114].mxu0 %v129_v14  ;;  %v3701_v21 = vpop.f32.mrb[9].mxu1  ;;  %2824 = vmatmul.mubr.f32.gmra.mrb[114].mxu1 %v257_v15  ;;  %v141_v14 = vld [vmem:[%s5262_s0 + $0x3f8] sm:$0xff] }
 0x109   :  { %2634 = vmatprep.mubr.f32.mxu0 %v130_v16  ;;  %2826 = vmatprep.mubr.f32.mxu1 %v258_v17  ;;  %v269_v15 = vld [vmem:[%s5262_s0 + $0x7f8] sm:$0xff] }
 0x10b   :  { %v3715_v26 = vpop.f32.mrb[10].mxu0  ;;  %v3717_v27 = vpop.f32.mrb[10].mxu1 }
 0x10c   :  { %v3719_v28 = vpop.f32.mrb[11].mxu0  ;;  %2635 = vmatmul.mubr.f32.gmra.mrb[116].mxu0 %v131_v22  ;;  %v3721_v29 = vpop.f32.mrb[11].mxu1  ;;  %2827 = vmatmul.mubr.f32.gmra.mrb[116].mxu1 %v259_v23 }
 0x10d   :  { %2637 = vmatprep.mubr.f32.mxu0 %v132_v24  ;;  %2829 = vmatprep.mubr.f32.mxu1 %v260_v25 }
 0x10f   :  { %v3735_v34 = vpop.f32.mrb[12].mxu0  ;;  %v3737_v35 = vpop.f32.mrb[12].mxu1 }
 0x110   :  { %v3739_v36 = vpop.f32.mrb[13].mxu0  ;;  %2638 = vmatmul.mubr.f32.gmra.mrb[118].mxu0 %v133_v30  ;;  %v3741_v37 = vpop.f32.mrb[13].mxu1  ;;  %2830 = vmatmul.mubr.f32.gmra.mrb[118].mxu1 %v261_v31 }
 0x111   :  { %2640 = vmatprep.mubr.f32.mxu0 %v134_v32  ;;  %2832 = vmatprep.mubr.f32.mxu1 %v262_v33 }
 0x113   :  { %v3755_v42 = vpop.f32.mrb[14].mxu0  ;;  %v3757_v43 = vpop.f32.mrb[14].mxu1 }
 0x114   :  { %v3759_v44 = vpop.f32.mrb[15].mxu0  ;;  %2641 = vmatmul.mubr.f32.gmra.mrb[120].mxu0 %v135_v38  ;;  %v3761_v45 = vpop.f32.mrb[15].mxu1  ;;  %2833 = vmatmul.mubr.f32.gmra.mrb[120].mxu1 %v263_v39 }
 0x115   :  { %2643 = vmatprep.mubr.f32.mxu0 %v136_v40  ;;  %2835 = vmatprep.mubr.f32.mxu1 %v264_v41 }
 0x117   :  { %v3775_v54 = vpop.f32.mrb[16].mxu0  ;;  %v3777_v55 = vpop.f32.mrb[16].mxu1 }
 0x118   :  { %v3779_v56 = vpop.f32.mrb[17].mxu0  ;;  %2644 = vmatmul.mubr.f32.gmra.mrb[122].mxu0 %v137_v46  ;;  %v3781_v57 = vpop.f32.mrb[17].mxu1  ;;  %2836 = vmatmul.mubr.f32.gmra.mrb[122].mxu1 %v265_v47 }
 0x119   :  { %2646 = vmatprep.mubr.f32.mxu0 %v138_v48  ;;  %2838 = vmatprep.mubr.f32.mxu1 %v266_v49 }
 0x11b   :  { %v3795_v6 = vpop.f32.mrb[18].mxu0  ;;  %v3797_v7 = vpop.f32.mrb[18].mxu1 }
 0x11c   :  { %v3799_v8 = vpop.f32.mrb[19].mxu0  ;;  %2647 = vmatmul.mubr.f32.gmra.mrb[124].mxu0 %v139_v62  ;;  %v3801_v9 = vpop.f32.mrb[19].mxu1  ;;  %2839 = vmatmul.mubr.f32.gmra.mrb[124].mxu1 %v267_v63 }
 0x11d   :  { %2649 = vmatprep.mubr.f32.mxu0 %v140_v0  ;;  %2841 = vmatprep.mubr.f32.mxu1 %v268_v1 }
 0x11f   :  { %v3809_v16 = vpop.f32.mrb[20].mxu0  ;;  %v3811_v17 = vpop.f32.mrb[20].mxu1 }
 0x120   :  { %v3813_v22 = vpop.f32.mrb[21].mxu0  ;;  %2650 = vmatmul.mubr.f32.gmra.mrb[126].mxu0 %v141_v14  ;;  %v3815_v23 = vpop.f32.mrb[21].mxu1  ;;  %2842 = vmatmul.mubr.f32.gmra.mrb[126].mxu1 %v269_v15 }
 0x123   :  { %v3817_v24 = vpop.f32.mrb[22].mxu0  ;;  %v3819_v25 = vpop.f32.mrb[22].mxu1 }
 0x124   :  { %v3821_v30 = vpop.f32.mrb[23].mxu0  ;;  %v3823_v31 = vpop.f32.mrb[23].mxu1 }
 0x127   :  { %v3825_v32 = vpop.f32.mrb[24].mxu0  ;;  %v3827_v33 = vpop.f32.mrb[24].mxu1 }
 0x128   :  { %v3829_v38 = vpop.f32.mrb[25].mxu0  ;;  %v3831_v39 = vpop.f32.mrb[25].mxu1 }
 0x12b   :  { %v3833_v40 = vpop.f32.mrb[26].mxu0  ;;  %v3835_v41 = vpop.f32.mrb[26].mxu1 }
 0x12c   :  { %5332 = vst [vmem:[#allocation2_spill] sm:$0xff] %v3835_v41  ;;  %v3837_v46 = vpop.f32.mrb[27].mxu0  ;;  %v3839_v47 = vpop.f32.mrb[27].mxu1 }
 0x12d   :  { %5333 = vst [vmem:[#allocation3_spill] sm:$0xff] %v3837_v46  ;;  %5334 = vst [vmem:[#allocation4_spill] sm:$0xff] %v3839_v47 }
 0x12f   :  { %v3841_v48 = vpop.f32.mrb[28].mxu0  ;;  %v3843_v49 = vpop.f32.mrb[28].mxu1 }
 0x130   :  { %5335 = vst [vmem:[#allocation5_spill] sm:$0xff] %v3841_v48  ;;  %5336 = vst [vmem:[#allocation6_spill] sm:$0xff] %v3843_v49  ;;  %v3845_v62 = vpop.f32.mrb[29].mxu0  ;;  %v3847_v63 = vpop.f32.mrb[29].mxu1 }
 0x131   :  { %5337 = vst [vmem:[#allocation7_spill] sm:$0xff] %v3845_v62  ;;  %5338 = vst [vmem:[#allocation8_spill] sm:$0xff] %v3847_v63 }
 0x133   :  { %v3849_v0 = vpop.f32.mrb[30].mxu0  ;;  %v3851_v1 = vpop.f32.mrb[30].mxu1 }
 0x134   :  { %5339 = vst [vmem:[#allocation9_spill] sm:$0xff] %v3849_v0  ;;  %5340 = vst [vmem:[#allocation10_spill] sm:$0xff] %v3851_v1  ;;  %v3853_v14 = vpop.f32.mrb[31].mxu0  ;;  %v3855_v15 = vpop.f32.mrb[31].mxu1 }
 0x135   :  { %5341 = vst [vmem:[#allocation11_spill] sm:$0xff] %v3853_v14  ;;  %5342 = vst [vmem:[#allocation12_spill] sm:$0xff] %v3855_v15 }
 0x137   :  { %v3857_v41 = vpop.f32.mrb[32].mxu0  ;;  %v3859_v46 = vpop.f32.mrb[32].mxu1 }
 0x138   :  { %5343 = vst [vmem:[#allocation13_spill] sm:$0xff] %v3857_v41  ;;  %5344 = vst [vmem:[#allocation14_spill] sm:$0xff] %v3859_v46  ;;  %v3861_v47 = vpop.f32.mrb[33].mxu0  ;;  %v3863_v48 = vpop.f32.mrb[33].mxu1 }
 0x139   :  { %5345 = vst [vmem:[#allocation15_spill] sm:$0xff] %v3861_v47  ;;  %5346 = vst [vmem:[#allocation16_spill] sm:$0xff] %v3863_v48 }
 0x13b   :  { %v3865_v49 = vpop.f32.mrb[34].mxu0  ;;  %v3867_v62 = vpop.f32.mrb[34].mxu1 }
 0x13c   :  { %5347 = vst [vmem:[#allocation17_spill] sm:$0xff] %v3865_v49  ;;  %v3869_v63 = vpop.f32.mrb[35].mxu0  ;;  %v3871_v0 = vpop.f32.mrb[35].mxu1 }
 0x13d   :  { %5348 = vst [vmem:[#allocation18_spill] sm:$0xff] %v3871_v0  ;;  %v3892_v0 = vld [vmem:[%s5263_s2] ss:$0 sm:$0xff] }
 0x13f   :  { %v3873_v1 = vpop.f32.mrb[36].mxu0  ;;  %v3875_v14 = vpop.f32.mrb[36].mxu1 }
 0x140   :  { %5349 = vst [vmem:[#allocation19_spill] sm:$0xff] %v3873_v1  ;;  %5350 = vst [vmem:[#allocation20_spill] sm:$0xff] %v3875_v14  ;;  %v3877_v15 = vpop.f32.mrb[37].mxu0  ;;  %v3879_v41 = vpop.f32.mrb[37].mxu1 }
 0x141   :  { %5351 = vst [vmem:[#allocation21_spill] sm:$0xff] %v3877_v15  ;;  %5352 = vst [vmem:[#allocation22_spill] sm:$0xff] %v3879_v41  ;;  %v3900_v41 = vadd.f32 %v3615_v50, %v3892_v0  ;;  %v3920_v50 = vadd.f32 %v3635_v58, %v3892_v0  ;;  %v3940_v58 = vadd.f32 %v3657_v3, %v3892_v0 }
 0x143   :  { %v3881_v46 = vpop.f32.mrb[38].mxu0  ;;  %v3883_v47 = vpop.f32.mrb[38].mxu1  ;;  %5364 = vst [vmem:[#allocation34_spill] sm:$0xff] %v3940_v58  ;;  %v4060_v58 = vadd.f32 %v3755_v42, %v3892_v0 }
 0x144   :  { %5353 = vst [vmem:[#allocation23_spill] sm:$0xff] %v3881_v46  ;;  %5354 = vst [vmem:[#allocation24_spill] sm:$0xff] %v3883_v47  ;;  %v3885_v48 = vpop.f32.mrb[39].mxu0  ;;  %v3887_v49 = vpop.f32.mrb[39].mxu1  ;;  %v3904_v47 = vadd.f32 %v3617_v51, %v3892_v0  ;;  %v3912_v46 = vadd.f32 %v3892_v0, %v3619_v52  ;;  %v3924_v51 = vadd.f32 %v3637_v59, %v3892_v0 }
 0x145   :  { %5355 = vst [vmem:[#allocation25_spill] sm:$0xff] %v3885_v48  ;;  %5356 = vst [vmem:[#allocation26_spill] sm:$0xff] %v3887_v49  ;;  %v3932_v52 = vadd.f32 %v3892_v0, %v3641_v61  ;;  %v3950_v61 = vadd.f32 %v3892_v0, %v3659_v4  ;;  %v3968_v4 = vadd.f32 %v3677_v11, %v3892_v0 }
 0x146   :  { %5359 = vst [vmem:[#allocation29_spill] sm:$0xff] %v3904_v47  ;;  %5362 = vst [vmem:[#allocation32_spill] sm:$0xff] %v3912_v46  ;;  %v3974_v47 = vadd.f32 %v3892_v0, %v3679_v12  ;;  %v4020_v11 = vadd.f32 %v3717_v27, %v3892_v0  ;;  %v4032_v12 = vadd.f32 %v3735_v34, %v3892_v0 }
 0x147   :  { %v3894_v1 = vpop.f32.mrb[40].mxu0  ;;  %v3896_v14 = vpop.f32.mrb[40].mxu1  ;;  %5368 = vst [vmem:[#allocation38_spill] sm:$0xff] %v3968_v4  ;;  %v4050_v34 = vadd.f32 %v3892_v0, %v3741_v37  ;;  %v4092_v4 = vadd.f32 %v3777_v55, %v3892_v0  ;;  %v4102_v37 = vadd.f32 %v3892_v0, %v3779_v56  ;;  %v4120_v56 = vadd.f32 %v3892_v0, %v3799_v8 }
 0x148   :  { %5357 = vst [vmem:[#allocation27_spill] sm:$0xff] %v3894_v1  ;;  %5358 = vst [vmem:[#allocation28_spill] sm:$0xff] %v3896_v14  ;;  %v3906_v48 = vpop.f32.mrb[41].mxu0  ;;  %v3908_v49 = vpop.f32.mrb[41].mxu1  ;;  %v3916_v1 = vadd.f32 %v3892_v0, %v3621_v53  ;;  %v3936_v53 = vadd.f32 %v3655_v2, %v3892_v0  ;;  %v3954_v2 = vadd.f32 %v3892_v0, %v3661_v5 }
 0x149   :  { %5360 = vst [vmem:[#allocation30_spill] sm:$0xff] %v3906_v48  ;;  %5361 = vst [vmem:[#allocation31_spill] sm:$0xff] %v3908_v49  ;;  %v3928_v48 = vadd.f32 %v3892_v0, %v3639_v60  ;;  %v3964_v14 = vadd.f32 %v3675_v10, %v3892_v0  ;;  %v4006_v5 = vadd.f32 %v3892_v0, %v3699_v20 }
 0x14a   :  { %5363 = vst [vmem:[#allocation33_spill] sm:$0xff] %v3916_v1  ;;  %5367 = vst [vmem:[#allocation37_spill] sm:$0xff] %v3954_v2  ;;  %v4016_v2 = vadd.f32 %v3715_v26, %v3892_v0  ;;  %v4024_v20 = vadd.f32 %v3892_v0, %v3719_v28  ;;  %v4036_v26 = vadd.f32 %v3737_v35, %v3892_v0 }
 0x14b   :  { %v3942_v49 = vpop.f32.mrb[42].mxu0  ;;  %v3944_v59 = vpop.f32.mrb[42].mxu1  ;;  %5369 = vst [vmem:[#allocation39_spill] sm:$0xff] %v3974_v47  ;;  %5372 = vst [vmem:[#allocation42_spill] sm:$0xff] %v4006_v5  ;;  %v4074_v47 = vadd.f32 %v3892_v0, %v3761_v45  ;;  %v4088_v45 = vadd.f32 %v3775_v54, %v3892_v0  ;;  %v4106_v54 = vadd.f32 %v3892_v0, %v3781_v57 }
 0x14c   :  { %5365 = vst [vmem:[#allocation35_spill] sm:$0xff] %v3942_v49  ;;  %5366 = vst [vmem:[#allocation36_spill] sm:$0xff] %v3944_v59  ;;  %v3956_v15 = vpop.f32.mrb[43].mxu0  ;;  %v3958_v3 = vpop.f32.mrb[43].mxu1  ;;  %v3978_v49 = vadd.f32 %v3892_v0, %v3681_v13  ;;  %v3992_v13 = vadd.f32 %v3695_v18, %v3892_v0  ;;  %v3996_v59 = vadd.f32 %v3697_v19, %v3892_v0 }
 0x14d   :  { %v4010_v18 = vadd.f32 %v3892_v0, %v3701_v21  ;;  %v4028_v21 = vadd.f32 %v3892_v0, %v3721_v29  ;;  %5374 = vst [vmem:[#allocation44_spill] sm:$0xff] %v4036_v26  ;;  %v4046_v29 = vadd.f32 %v3892_v0, %v3739_v36  ;;  %5375 = vst [vmem:[#allocation45_spill] sm:$0xff] %v4050_v34 }
 0x14e   :  { %5370 = vst [vmem:[#allocation40_spill] sm:$0xff] %v3978_v49  ;;  %5371 = vst [vmem:[#allocation41_spill] sm:$0xff] %v3996_v59  ;;  %v4064_v36 = vadd.f32 %v3757_v43, %v3892_v0  ;;  %v4070_v59 = vadd.f32 %v3892_v0, %v3759_v44  ;;  %v4112_v34 = vadd.f32 %v3795_v6, %v3892_v0 }
 0x14f   :  { %v3984_v46 = vpop.f32.mrb[44].mxu0  ;;  %v3986_v60 = vpop.f32.mrb[44].mxu1  ;;  %5373 = vst [vmem:[#allocation43_spill] sm:$0xff] %v4010_v18  ;;  %5378 = vst [vmem:[#allocation48_spill] sm:$0xff] %v4074_v47  ;;  %v4116_v43 = vadd.f32 %v3797_v7, %v3892_v0  ;;  %v4124_v57 = vadd.f32 %v3892_v0, %v3801_v9  ;;  %v4128_v44 = vadd.f32 %v3809_v16, %v3892_v0 }
 0x150   :  { %v3998_v10 = vpop.f32.mrb[45].mxu0  ;;  %v4000_v1 = vpop.f32.mrb[45].mxu1  ;;  %5376 = vst [vmem:[#allocation46_spill] sm:$0xff] %v4064_v36  ;;  %5377 = vst [vmem:[#allocation47_spill] sm:$0xff] %v4070_v59  ;;  %v4132_v6 = vadd.f32 %v3811_v17, %v3892_v0  ;;  %v4142_v9 = vadd.f32 %v3892_v0, %v3813_v22  ;;  %v4146_v16 = vadd.f32 %v3892_v0, %v3815_v23 }
 0x151   :  { %5379 = vst [vmem:[#allocation49_spill] sm:$0xff] %v4092_v4  ;;  %5380 = vst [vmem:[#allocation50_spill] sm:$0xff] %v4102_v37  ;;  %v4156_v26 = vadd.f32 %v3817_v24, %v3892_v0  ;;  %v4160_v22 = vadd.f32 %v3819_v25, %v3892_v0  ;;  %v4166_v4 = vadd.f32 %v3892_v0, %v3821_v30  ;;  %v5397_v25 = vld [vmem:[#allocation2_spill] sm:$0xff]  ;;  %v5402_v30 = vld [vmem:[#allocation5_spill] sm:$0xff] }
 0x152   :  { %5381 = vst [vmem:[#allocation51_spill] sm:$0xff] %v4106_v54  ;;  %5382 = vst [vmem:[#allocation52_spill] sm:$0xff] %v4116_v43  ;;  %v4170_v59 = vadd.f32 %v3892_v0, %v3823_v31  ;;  %v4184_v31 = vadd.f32 %v3825_v32, %v3892_v0  ;;  %v4188_v36 = vadd.f32 %v3827_v33, %v3892_v0  ;;  %v5404_v33 = vld [vmem:[#allocation6_spill] sm:$0xff]  ;;  %v5418_v43 = vld [vmem:[#allocation11_spill] sm:$0xff] }
 0x153   :  { %v4038_v19 = vpop.f32.mrb[46].mxu0  ;;  %v4040_v27 = vpop.f32.mrb[46].mxu1  ;;  %5383 = vst [vmem:[#allocation53_spill] sm:$0xff] %v4120_v56  ;;  %5384 = vst [vmem:[#allocation54_spill] sm:$0xff] %v4124_v57  ;;  %v4198_v23 = vadd.f32 %v3892_v0, %v3829_v38  ;;  %v4202_v32 = vadd.f32 %v3892_v0, %v3831_v39  ;;  %v5410_v57 = vld [vmem:[#allocation8_spill] sm:$0xff] }
 0x154   :  { %v4052_v49 = vpop.f32.mrb[47].mxu0  ;;  %v4054_v35 = vpop.f32.mrb[47].mxu1  ;;  %5385 = vst [vmem:[#allocation55_spill] sm:$0xff] %v4128_v44  ;;  %5386 = vst [vmem:[#allocation56_spill] sm:$0xff] %v4132_v6  ;;  %v5399_v6 = vld [vmem:[#allocation3_spill] sm:$0xff] }
 0x155   :  { %5387 = vst [vmem:[#allocation57_spill] sm:$0xff] %v4142_v9  ;;  %5388 = vst [vmem:[#allocation58_spill] sm:$0xff] %v4146_v16  ;;  %v4208_v16 = vadd.f32 %v3833_v40, %v3892_v0  ;;  %v4216_v38 = vadd.f32 %v3892_v0, %v5399_v6  ;;  %v4228_v40 = vadd.f32 %v5404_v33, %v3892_v0  ;;  %v5408_v44 = vld [vmem:[#allocation7_spill] sm:$0xff]  ;;  %v5414_v9 = vld [vmem:[#allocation9_spill] sm:$0xff] }
 0x156   :  { %5389 = vst [vmem:[#allocation59_spill] sm:$0xff] %v4156_v26  ;;  %5390 = vst [vmem:[#allocation60_spill] sm:$0xff] %v4160_v22  ;;  %v4212_v26 = vadd.f32 %v5397_v25, %v3892_v0  ;;  %v5401_v22 = vld [vmem:[#allocation4_spill] sm:$0xff]  ;;  %v5416_v6 = vld [vmem:[#allocation10_spill] sm:$0xff] }
 0x157   :  { %v4080_v5 = vpop.f32.mrb[48].mxu0  ;;  %v4082_v28 = vpop.f32.mrb[48].mxu1  ;;  %5391 = vst [vmem:[#allocation61_spill] sm:$0xff] %v4166_v4  ;;  %5392 = vst [vmem:[#allocation62_spill] sm:$0xff] %v4170_v59  ;;  %v4220_v39 = vadd.f32 %v3892_v0, %v5401_v22  ;;  %v4224_v4 = vadd.f32 %v5402_v30, %v3892_v0  ;;  %v4238_v22 = vadd.f32 %v3892_v0, %v5408_v44 }
 0x158   :  { %v4094_v42 = vpop.f32.mrb[49].mxu0  ;;  %v4096_v18 = vpop.f32.mrb[49].mxu1  ;;  %5393 = vst [vmem:[#allocation63_spill] sm:$0xff] %v4184_v31  ;;  %5394 = vst [vmem:[#allocation64_spill] sm:$0xff] %v4188_v36  ;;  %v4242_v30 = vadd.f32 %v3892_v0, %v5410_v57  ;;  %v4252_v31 = vadd.f32 %v5414_v9, %v3892_v0  ;;  %v4256_v44 = vadd.f32 %v5416_v6, %v3892_v0 }
 0x159   :  { %5395 = vst [vmem:[#allocation65_spill] sm:$0xff] %v4198_v23  ;;  %5396 = vst [vmem:[#allocation66_spill] sm:$0xff] %v4202_v32  ;;  %v4308_v6 = vadd.f32 %v3867_v62, %v3892_v0 }
 0x15a   :  { %5398 = vst [vmem:[#allocation2_spill] sm:$0xff] %v4212_v26  ;;  %5400 = vst [vmem:[#allocation3_spill] sm:$0xff] %v4216_v38  ;;  %v5424_v26 = vld [vmem:[#allocation13_spill] sm:$0xff] }
 0x15b   :  { %v4134_v55 = vpop.f32.mrb[50].mxu0  ;;  %v4136_v7 = vpop.f32.mrb[50].mxu1  ;;  %5403 = vst [vmem:[#allocation4_spill] sm:$0xff] %v4224_v4  ;;  %5405 = vst [vmem:[#allocation5_spill] sm:$0xff] %v4228_v40  ;;  %v5450_v4 = vld [vmem:[#allocation25_spill] sm:$0xff] }
 0x15c   :  { %v4148_v47 = vpop.f32.mrb[51].mxu0  ;;  %v4150_v17 = vpop.f32.mrb[51].mxu1  ;;  %5409 = vst [vmem:[#allocation7_spill] sm:$0xff] %v4238_v22  ;;  %5411 = vst [vmem:[#allocation8_spill] sm:$0xff] %v4242_v30  ;;  %v5438_v30 = vld [vmem:[#allocation19_spill] sm:$0xff] }
 0x15d   :  { %5415 = vst [vmem:[#allocation9_spill] sm:$0xff] %v4252_v31  ;;  %5417 = vst [vmem:[#allocation10_spill] sm:$0xff] %v4256_v44  ;;  %v5442_v44 = vld [vmem:[#allocation21_spill] sm:$0xff]  ;;  %v5444_v31 = vld [vmem:[#allocation22_spill] sm:$0xff] }
 0x15f   :  { %v4176_v37 = vpop.f32.mrb[52].mxu0  ;;  %v4178_v8 = vpop.f32.mrb[52].mxu1 }
 0x160   :  { %v4190_v24 = vpop.f32.mrb[53].mxu0  ;;  %v4192_v54 = vpop.f32.mrb[53].mxu1 }
 0x163   :  { %v4230_v59 = vpop.f32.mrb[54].mxu0  ;;  %v4232_v25 = vpop.f32.mrb[54].mxu1 }
 0x164   :  { %5406 = vst [vmem:[#allocation6_spill] sm:$0xff] %v4230_v59  ;;  %5407 = vst [vmem:[#allocation67_spill] sm:$0xff] %v4232_v25  ;;  %v4244_v56 = vpop.f32.mrb[55].mxu0  ;;  %v4246_v33 = vpop.f32.mrb[55].mxu1  ;;  %v5426_v25 = vld [vmem:[#allocation14_spill] sm:$0xff] }
 0x165   :  { %5412 = vst [vmem:[#allocation68_spill] sm:$0xff] %v4244_v56  ;;  %5413 = vst [vmem:[#allocation69_spill] sm:$0xff] %v4246_v33  ;;  %v4262_v56 = vadd.f32 %v3892_v0, %v5418_v43  ;;  %v5420_v33 = vld [vmem:[#allocation12_spill] sm:$0xff]  ;;  %v4284_v38 = vadd.f32 %v5426_v25, %v3892_v0 }
 0x166   :  { %v4266_v59 = vadd.f32 %v3892_v0, %v5420_v33  ;;  %v4280_v33 = vadd.f32 %v5424_v26, %v3892_v0  ;;  %v5432_v43 = vld [vmem:[#allocation16_spill] sm:$0xff] }
 0x167   :  { %5419 = vst [vmem:[#allocation11_spill] sm:$0xff] %v4262_v56  ;;  %v4272_v23 = vpop.f32.mrb[56].mxu0  ;;  %v4274_v36 = vpop.f32.mrb[56].mxu1  ;;  %5427 = vst [vmem:[#allocation14_spill] sm:$0xff] %v4284_v38  ;;  %v4298_v26 = vadd.f32 %v3892_v0, %v5432_v43  ;;  %v5439_v25 = vld [vmem:[#allocation20_spill] sm:$0xff]  ;;  %v5448_v56 = vld [vmem:[#allocation23_spill] sm:$0xff] }
 0x168   :  { %5421 = vst [vmem:[#allocation12_spill] sm:$0xff] %v4266_v59  ;;  %5422 = vst [vmem:[#allocation70_spill] sm:$0xff] %v4272_v23  ;;  %v4286_v9 = vpop.f32.mrb[57].mxu0  ;;  %v4288_v32 = vpop.f32.mrb[57].mxu1  ;;  %v5430_v23 = vld [vmem:[#allocation15_spill] sm:$0xff] }
 0x169   :  { %5423 = vst [vmem:[#allocation71_spill] sm:$0xff] %v4274_v36  ;;  %5425 = vst [vmem:[#allocation13_spill] sm:$0xff] %v4280_v33  ;;  %v4294_v57 = vadd.f32 %v3892_v0, %v5430_v23  ;;  %v4312_v23 = vadd.f32 %v3892_v0, %v3869_v63  ;;  %v5437_v36 = vld [vmem:[#allocation18_spill] sm:$0xff]  ;;  %v4348_v33 = vadd.f32 %v5448_v56, %v3892_v0  ;;  %v5449_v63 = vld [vmem:[#allocation24_spill] sm:$0xff] }
 0x16a   :  { %5428 = vst [vmem:[#allocation72_spill] sm:$0xff] %v4286_v9  ;;  %5429 = vst [vmem:[#allocation73_spill] sm:$0xff] %v4288_v32  ;;  %v5434_v9 = vld [vmem:[#allocation17_spill] sm:$0xff]  ;;  %v4316_v43 = vadd.f32 %v3892_v0, %v5437_v36  ;;  %v4320_v32 = vadd.f32 %v5438_v30, %v3892_v0  ;;  %v4334_v36 = vadd.f32 %v3892_v0, %v5442_v44 }
 0x16b   :  { %5431 = vst [vmem:[#allocation15_spill] sm:$0xff] %v4294_v57  ;;  %5433 = vst [vmem:[#allocation16_spill] sm:$0xff] %v4298_v26  ;;  %v4304_v22 = vadd.f32 %v5434_v9, %v3892_v0  ;;  %v4324_v9 = vadd.f32 %v5439_v25, %v3892_v0  ;;  %v4326_v59 = vpop.f32.mrb[58].mxu0  ;;  %v4328_v62 = vpop.f32.mrb[58].mxu1  ;;  %v4338_v30 = vadd.f32 %v3892_v0, %v5444_v31 }
 0x16c   :  { %5435 = vst [vmem:[#allocation17_spill] sm:$0xff] %v4308_v6  ;;  %5436 = vst [vmem:[#allocation74_spill] sm:$0xff] %v4312_v23  ;;  %v4340_v40 = vpop.f32.mrb[59].mxu0  ;;  %v4342_v25 = vpop.f32.mrb[59].mxu1  ;;  %v4352_v44 = vadd.f32 %v5449_v63, %v3892_v0  ;;  %v5455_v6 = vld [vmem:[#allocation27_spill] sm:$0xff]  ;;  %v5465_v63 = vld [vmem:[#allocation36_spill] sm:$0xff] }
 0x16d   :  { %5440 = vst [vmem:[#allocation18_spill] sm:$0xff] %v4326_v59  ;;  %5441 = vst [vmem:[#allocation19_spill] sm:$0xff] %v4328_v62  ;;  %v5456_v62 = vld [vmem:[#allocation28_spill] sm:$0xff] }
 0x16e   :  { %5443 = vst [vmem:[#allocation20_spill] sm:$0xff] %v4334_v36  ;;  %5445 = vst [vmem:[#allocation21_spill] sm:$0xff] %v4338_v30  ;;  %v4380_v23 = vadd.f32 %v5456_v62, %v3892_v0  ;;  %v4416_v30 = vadd.f32 %v3984_v46, %v3892_v0  ;;  %v4434_v46 = vadd.f32 %v3892_v0, %v4000_v1 }
 0x16f   :  { %5446 = vst [vmem:[#allocation22_spill] sm:$0xff] %v4340_v40  ;;  %5447 = vst [vmem:[#allocation75_spill] sm:$0xff] %v4342_v25  ;;  %v4358_v40 = vadd.f32 %v3892_v0, %v5450_v4  ;;  %v5451_v25 = vld [vmem:[#allocation26_spill] sm:$0xff]  ;;  %v4368_v57 = vpop.f32.mrb[60].mxu0  ;;  %v4370_v38 = vpop.f32.mrb[60].mxu1  ;;  %v5461_v4 = vld [vmem:[#allocation31_spill] sm:$0xff] }
 0x170   :  { %v4362_v59 = vadd.f32 %v3892_v0, %v5451_v25  ;;  %5453 = vst [vmem:[#allocation24_spill] sm:$0xff] %v4368_v57  ;;  %5454 = vst [vmem:[#allocation25_spill] sm:$0xff] %v4370_v38  ;;  %v4376_v25 = vadd.f32 %v5455_v6, %v3892_v0  ;;  %v4382_v56 = vpop.f32.mrb[61].mxu0  ;;  %v4384_v26 = vpop.f32.mrb[61].mxu1  ;;  %v5459_v57 = vld [vmem:[#allocation30_spill] sm:$0xff]  ;;  %v4394_v6 = vadd.f32 %v3892_v0, %v5461_v4 }
 0x171   :  { %5457 = vst [vmem:[#allocation26_spill] sm:$0xff] %v4382_v56  ;;  %5458 = vst [vmem:[#allocation27_spill] sm:$0xff] %v4384_v26  ;;  %v4390_v31 = vadd.f32 %v3892_v0, %v5459_v57  ;;  %v5463_v56 = vld [vmem:[#allocation35_spill] sm:$0xff]  ;;  %v4404_v26 = vadd.f32 %v5465_v63, %v3892_v0  ;;  %v4408_v57 = vadd.f32 %v3892_v0, %v3956_v15 }
 0x172   :  { %5452 = vst [vmem:[#allocation23_spill] sm:$0xff] %v4362_v59  ;;  %5462 = vst [vmem:[#allocation30_spill] sm:$0xff] %v4394_v6  ;;  %v4400_v36 = vadd.f32 %v5463_v56, %v3892_v0  ;;  %v4412_v4 = vadd.f32 %v3892_v0, %v3958_v3  ;;  %v4420_v56 = vadd.f32 %v3986_v60, %v3892_v0 }
 0x173   :  { %5460 = vst [vmem:[#allocation28_spill] sm:$0xff] %v4390_v31  ;;  %5466 = vst [vmem:[#allocation35_spill] sm:$0xff] %v4404_v26  ;;  %v4422_v62 = vpop.f32.mrb[62].mxu0  ;;  %v4424_v63 = vpop.f32.mrb[62].mxu1  ;;  %v4430_v3 = vadd.f32 %v3892_v0, %v3998_v10  ;;  %v4444_v38 = vadd.f32 %v4038_v19, %v3892_v0  ;;  %v4448_v10 = vadd.f32 %v4040_v27, %v3892_v0 }
 0x174   :  { %5464 = vst [vmem:[#allocation31_spill] sm:$0xff] %v4400_v36  ;;  %5467 = vst [vmem:[#allocation36_spill] sm:$0xff] %v4408_v57  ;;  %v4436_v59 = vpop.f32.mrb[63].mxu0  ;;  %v4438_v60 = vpop.f32.mrb[63].mxu1 }
 0x175   :  { %5468 = vst [vmem:[#allocation76_spill] sm:$0xff] %v4412_v4  ;;  %5469 = vst [vmem:[#allocation77_spill] sm:$0xff] %v4416_v30  ;;  %v5486_v4 = vld [vmem:[#allocation33_spill] sm:$0xff] }
 0x176   :  { %5470 = vst [vmem:[#allocation78_spill] sm:$0xff] %v4420_v56  ;;  %5471 = vst [vmem:[#allocation79_spill] sm:$0xff] %v4422_v62  ;;  %v5482_v56 = vld [vmem:[#allocation29_spill] sm:$0xff] }
 0x177   :  { %5472 = vst [vmem:[#allocation80_spill] sm:$0xff] %v4424_v63  ;;  %5473 = vst [vmem:[#allocation81_spill] sm:$0xff] %v4430_v3  ;;  %v4458_v63 = vadd.f32 %v3892_v0, %v4054_v35  ;;  %v2558_v6 = vpop.f32.mrb[64].mxu0  ;;  %v2750_v1 = vpop.f32.mrb[64].mxu1 }
 0x178   :  { %5474 = vst [vmem:[#allocation82_spill] sm:$0xff] %v4434_v46  ;;  %5475 = vst [vmem:[#allocation83_spill] sm:$0xff] %v4436_v59  ;;  %v1325_v36 = vadd.f32 %v2750_v1, %v3892_v0  ;;  %v679_v35 = vpop.f32.mrb[65].mxu0  ;;  %v1319_v31 = vpop.f32.mrb[65].mxu1  ;;  %v4480_v1 = vadd.f32 %v4082_v28, %v3892_v0  ;;  %v5484_v46 = vld [vmem:[#allocation32_spill] sm:$0xff] }
 0x179   :  { %5476 = vst [vmem:[#allocation84_spill] sm:$0xff] %v4438_v60  ;;  %5477 = vst [vmem:[#allocation85_spill] sm:$0xff] %v4444_v38  ;;  %v4454_v60 = vadd.f32 %v3892_v0, %v4052_v49  ;;  %v685_v49 = vadd.f32 %v2558_v6, %v3892_v0  ;;  %v680_v27 = vadd.f32 %v3892_v0, %v679_v35  ;;  %v5485_v30 = vmax.f32 %v5484_v46, 0.0 }
 0x17a   :  { %5478 = vst [vmem:[#allocation86_spill] sm:$0xff] %v4448_v10  ;;  %5480 = vst [vmem:[#allocation88_spill] sm:$0xff] %v4458_v63  ;;  %v1320_v59 = vadd.f32 %v3892_v0, %v1319_v31  ;;  %v1831_v26 = vmax.f32 %v1325_v36, 0.0  ;;  %v4476_v6 = vadd.f32 %v4080_v5, %v3892_v0  ;;  %v5481_v31 = vmax.f32 %v3900_v41, 0.0 }
 0x17b   :  { %5479 = vst [vmem:[#allocation87_spill] sm:$0xff] %v4454_v60  ;;  %v1703_v3 = vmax.f32 %v685_v49, 0.0  ;;  %v1702_v19 = vmax.f32 %v680_v27, 0.0  ;;  %v2561_v10 = vpop.f32.mrb[66].mxu0  ;;  %v2753_v35 = vpop.f32.mrb[66].mxu1  ;;  %v5483_v60 = vmax.f32 %v5482_v56, 0.0  ;;  %v4496_v56 = vadd.f32 %v3892_v0, %v4094_v42 }
 0x17c   :  { %v1830_v62 = vmax.f32 %v1320_v59, 0.0  ;;  %v695_v36 = vadd.f32 %v2561_v10, %v3892_v0  ;;  %v1335_v49 = vadd.f32 %v2753_v35, %v3892_v0  ;;  %v689_v5 = vpop.f32.mrb[67].mxu0  ;;  %v1329_v63 = vpop.f32.mrb[67].mxu1  ;;  %v5487_v27 = vmax.f32 %v5486_v4, 0.0 }
 0x17d   :  { %v1895_v38 = vmax.f32 %v5481_v31, %v1703_v3  ;;  %v1959_v15 = vmax.f32 %v5483_v60, %v1831_v26  ;;  %v1894_v28 = vmax.f32 %v5485_v30, %v1702_v19  ;;  %v690_v57 = vadd.f32 %v3892_v0, %v689_v5 }
 0x17e   :  { %v1958_v59 = vmax.f32 %v5487_v27, %v1830_v62  ;;  %v1330_v41 = vadd.f32 %v3892_v0, %v1329_v63  ;;  %v1705_v3 = vmax.f32 %v695_v36, 0.0  ;;  %v1833_v60 = vmax.f32 %v1335_v49, 0.0 }
 0x17f   :  { %v2023_v26 = vmax.f32 %v1895_v38, %v1959_v15  ;;  %v4500_v10 = vadd.f32 %v3892_v0, %v4096_v18  ;;  %v1704_v30 = vmax.f32 %v690_v57, 0.0  ;;  %v2564_v4 = vpop.f32.mrb[68].mxu0  ;;  %v2756_v62 = vpop.f32.mrb[68].mxu1  ;;  %v5488_v42 = vmax.f32 %v3920_v50, 0.0 }
 0x180   :  { %v2022_v46 = vmax.f32 %v1894_v28, %v1958_v59  ;;  %v1832_v19 = vmax.f32 %v1330_v41, 0.0  ;;  %v5489_v38 = vmax.f32 %v3924_v51, 0.0  ;;  %v705_v35 = vadd.f32 %v2564_v4, %v3892_v0  ;;  %v699_v31 = vpop.f32.mrb[69].mxu0  ;;  %v1339_v57 = vpop.f32.mrb[69].mxu1 }
 0x181   :  { %2088 = vst.msk [vmem:[%s5264_s3 + $0x8] sm:$0xff] %vm2086_vm0, %v2023_v26  ;;  %v1897_v63 = vmax.f32 %v5488_v42, %v1705_v3  ;;  %v1345_v18 = vadd.f32 %v2756_v62, %v3892_v0  ;;  %v5490_v36 = vmax.f32 %v3928_v48, 0.0  ;;  %v5491_v50 = vmax.f32 %v3932_v52, 0.0 }
 0x182   :  { %v1961_v15 = vmax.f32 %v5489_v38, %v1833_v60  ;;  %2087 = vst.msk [vmem:[%s5264_s3] sm:$0xff] %vm2086_vm0, %v2022_v46  ;;  %v700_v51 = vadd.f32 %v3892_v0, %v699_v31  ;;  %v1340_v28 = vadd.f32 %v3892_v0, %v1339_v57  ;;  %v1687_v27 = vmax.f32 %v4476_v6, 0.0 }
 0x183   :  { %v1896_v49 = vmax.f32 %v5490_v36, %v1704_v30  ;;  %v1960_v5 = vmax.f32 %v5491_v50, %v1832_v19  ;;  %v1707_v41 = vmax.f32 %v705_v35, 0.0  ;;  %v1835_v26 = vmax.f32 %v1345_v18, 0.0  ;;  %v2567_v62 = vpop.f32.mrb[70].mxu0  ;;  %v2759_v48 = vpop.f32.mrb[70].mxu1  ;;  %v5493_v19 = vld [vmem:[#allocation34_spill] sm:$0xff]  ;;  %v5496_v36 = vld [vmem:[#allocation37_spill] sm:$0xff] }
 0x184   :  { %v2025_v59 = vmax.f32 %v1897_v63, %v1961_v15  ;;  %v1815_v3 = vmax.f32 %v4480_v1, 0.0  ;;  %v1706_v4 = vmax.f32 %v700_v51, 0.0  ;;  %v1834_v46 = vmax.f32 %v1340_v28, 0.0  ;;  %v709_v35 = vpop.f32.mrb[71].mxu0  ;;  %v1349_v18 = vpop.f32.mrb[71].mxu1 }
 0x185   :  { %v2024_v60 = vmax.f32 %v1896_v49, %v1960_v5  ;;  %v5492_v52 = vmax.f32 %v3936_v53, 0.0  ;;  %v5494_v42 = vmax.f32 %v5493_v19, 0.0  ;;  %v715_v38 = vadd.f32 %v2567_v62, %v3892_v0  ;;  %v5499_v19 = vld [vmem:[#allocation38_spill] sm:$0xff] }
 0x186   :  { %2090 = vst.msk [vmem:[%s5264_s3 + $0x18] sm:$0xff] %vm2086_vm0, %v2025_v59  ;;  %v1355_v15 = vadd.f32 %v2759_v48, %v3892_v0  ;;  %v5495_v31 = vmax.f32 %v3950_v61, 0.0  ;;  %v5497_v53 = vmax.f32 %v5496_v36, 0.0  ;;  %v710_v50 = vadd.f32 %v3892_v0, %v709_v35  ;;  %v5503_v36 = vld [vmem:[#allocation40_spill] sm:$0xff] }
 0x187   :  { %v1899_v30 = vmax.f32 %v5492_v52, %v1707_v41  ;;  %v1963_v63 = vmax.f32 %v5494_v42, %v1835_v26  ;;  %2089 = vst.msk [vmem:[%s5264_s3 + $0x10] sm:$0xff] %vm2086_vm0, %v2024_v60  ;;  %v1350_v5 = vadd.f32 %v3892_v0, %v1349_v18  ;;  %v1686_v51 = vmax.f32 %v4496_v56, 0.0  ;;  %v2570_v52 = vpop.f32.mrb[72].mxu0  ;;  %v2762_v61 = vpop.f32.mrb[72].mxu1  ;;  %v5501_v18 = vld [vmem:[#allocation39_spill] sm:$0xff] }
 0x188   :  { %v1898_v57 = vmax.f32 %v5495_v31, %v1706_v4  ;;  %v1962_v49 = vmax.f32 %v5497_v53, %v1834_v46  ;;  %v1709_v59 = vmax.f32 %v715_v38, 0.0  ;;  %v1837_v41 = vmax.f32 %v1355_v15, 0.0  ;;  %v719_v15 = vpop.f32.mrb[73].mxu0  ;;  %v1359_v35 = vpop.f32.mrb[73].mxu1 }
 0x189   :  { %v2027_v28 = vmax.f32 %v1899_v30, %v1963_v63  ;;  %v1814_v26 = vmax.f32 %v4500_v10, 0.0  ;;  %v1708_v48 = vmax.f32 %v710_v50, 0.0  ;;  %v1836_v60 = vmax.f32 %v1350_v5, 0.0 }
 0x18a   :  { %v2026_v62 = vmax.f32 %v1898_v57, %v1962_v49  ;;  %v5498_v4 = vmax.f32 %v3964_v14, 0.0  ;;  %v5500_v42 = vmax.f32 %v5499_v19, 0.0  ;;  %v725_v63 = vadd.f32 %v2570_v52, %v3892_v0 }
 0x18b   :  { %2092 = vst.msk [vmem:[%s5264_s3 + $0x28] sm:$0xff] %vm2086_vm0, %v2027_v28  ;;  %v1365_v38 = vadd.f32 %v2762_v61, %v3892_v0  ;;  %v5502_v31 = vmax.f32 %v5501_v18, 0.0  ;;  %v5504_v14 = vmax.f32 %v5503_v36, 0.0  ;;  %v720_v49 = vadd.f32 %v3892_v0, %v719_v15 }
 0x18c   :  { %v1901_v46 = vmax.f32 %v5498_v4, %v1709_v59  ;;  %v1965_v30 = vmax.f32 %v5500_v42, %v1837_v41  ;;  %2091 = vst.msk [vmem:[%s5264_s3 + $0x20] sm:$0xff] %vm2086_vm0, %v2026_v62  ;;  %v1360_v50 = vadd.f32 %v3892_v0, %v1359_v35  ;;  %v4568_v5 = vadd.f32 %v4134_v55, %v3892_v0  ;;  %v2573_v4 = vpop.f32.mrb[74].mxu0  ;;  %v5508_v35 = vld [vmem:[#allocation42_spill] sm:$0xff] }
 0x18d   :  { %v1900_v57 = vmax.f32 %v5502_v31, %v1708_v48  ;;  %v1964_v53 = vmax.f32 %v5504_v14, %v1836_v60  ;;  %v1711_v59 = vmax.f32 %v725_v63, 0.0  ;;  %v1839_v41 = vmax.f32 %v1365_v38, 0.0  ;;  %v2765_v60 = vpop.f32.mrb[74].mxu1  ;;  %v729_v38 = vpop.f32.mrb[75].mxu0 }
 0x18e   :  { %v2029_v28 = vmax.f32 %v1901_v46, %v1965_v30  ;;  %v4572_v62 = vadd.f32 %v4136_v7, %v3892_v0  ;;  %v1710_v48 = vmax.f32 %v720_v49, 0.0  ;;  %v1838_v61 = vmax.f32 %v1360_v50, 0.0  ;;  %v5506_v46 = vld [vmem:[#allocation41_spill] sm:$0xff]  ;;  %v1369_v15 = vpop.f32.mrb[75].mxu1 }
 0x18f   :  { %v2028_v52 = vmax.f32 %v1900_v57, %v1964_v53  ;;  %v5505_v55 = vmax.f32 %v3992_v13, 0.0  ;;  %v5507_v42 = vmax.f32 %v5506_v46, 0.0  ;;  %v735_v63 = vadd.f32 %v2573_v4, %v3892_v0  ;;  %v5510_v57 = vld [vmem:[#allocation43_spill] sm:$0xff] }
 0x190   :  { %2094 = vst.msk [vmem:[%s5264_s3 + $0x38] sm:$0xff] %vm2086_vm0, %v2029_v28  ;;  %v1375_v7 = vadd.f32 %v2765_v60, %v3892_v0  ;;  %v5509_v18 = vmax.f32 %v5508_v35, 0.0  ;;  %v5511_v13 = vmax.f32 %v5510_v57, 0.0  ;;  %v730_v14 = vadd.f32 %v3892_v0, %v729_v38  ;;  %v2576_v60 = vpop.f32.mrb[76].mxu0 }
 0x191   :  { %v1903_v19 = vmax.f32 %v5505_v55, %v1711_v59  ;;  %v1967_v30 = vmax.f32 %v5507_v42, %v1839_v41  ;;  %2093 = vst.msk [vmem:[%s5264_s3 + $0x30] sm:$0xff] %vm2086_vm0, %v2028_v52  ;;  %v1370_v53 = vadd.f32 %v3892_v0, %v1369_v15  ;;  %v4596_v49 = vadd.f32 %v3892_v0, %v4148_v47 }
 0x192   :  { %v1902_v31 = vmax.f32 %v5509_v18, %v1710_v48  ;;  %v1966_v36 = vmax.f32 %v5511_v13, %v1838_v61  ;;  %v1713_v28 = vmax.f32 %v735_v63, 0.0  ;;  %v1841_v59 = vmax.f32 %v1375_v7, 0.0  ;;  %v2768_v61 = vpop.f32.mrb[76].mxu1 }
 0x193   :  { %v2031_v50 = vmax.f32 %v1903_v19, %v1967_v30  ;;  %v4600_v41 = vadd.f32 %v3892_v0, %v4150_v17  ;;  %v1712_v48 = vmax.f32 %v730_v14, 0.0  ;;  %v1840_v4 = vmax.f32 %v1370_v53, 0.0  ;;  %v739_v30 = vpop.f32.mrb[77].mxu0  ;;  %v1379_v63 = vpop.f32.mrb[77].mxu1 }
 0x194   :  { %v2030_v52 = vmax.f32 %v1902_v31, %v1966_v36  ;;  %v5512_v47 = vmax.f32 %v4016_v2, 0.0  ;;  %v5513_v19 = vmax.f32 %v4020_v11, 0.0  ;;  %v745_v42 = vadd.f32 %v2576_v60, %v3892_v0 }
 0x195   :  { %2096 = vst.msk [vmem:[%s5264_s3 + $0x48] sm:$0xff] %vm2086_vm0, %v2031_v50  ;;  %v1385_v17 = vadd.f32 %v2768_v61, %v3892_v0  ;;  %v5514_v7 = vmax.f32 %v4024_v20, 0.0  ;;  %v5515_v2 = vmax.f32 %v4028_v21, 0.0  ;;  %v740_v11 = vadd.f32 %v3892_v0, %v739_v30  ;;  %v2771_v20 = vpop.f32.mrb[78].mxu1 }
 0x196   :  { %v1905_v55 = vmax.f32 %v5512_v47, %v1713_v28  ;;  %v1969_v46 = vmax.f32 %v5513_v19, %v1841_v59  ;;  %2095 = vst.msk [vmem:[%s5264_s3 + $0x40] sm:$0xff] %vm2086_vm0, %v2030_v52  ;;  %v1380_v35 = vadd.f32 %v3892_v0, %v1379_v63  ;;  %v1689_v18 = vmax.f32 %v4568_v5, 0.0  ;;  %v2579_v28 = vpop.f32.mrb[78].mxu0  ;;  %v5517_v52 = vld [vmem:[#allocation44_spill] sm:$0xff] }
 0x197   :  { %v1904_v38 = vmax.f32 %v5514_v7, %v1712_v48  ;;  %v1968_v15 = vmax.f32 %v5515_v2, %v1840_v4  ;;  %v1715_v57 = vmax.f32 %v745_v42, 0.0  ;;  %v1843_v13 = vmax.f32 %v1385_v17, 0.0  ;;  %v749_v47 = vpop.f32.mrb[79].mxu0  ;;  %v5520_v42 = vld [vmem:[#allocation45_spill] sm:$0xff] }
 0x198   :  { %v2033_v31 = vmax.f32 %v1905_v55, %v1969_v46  ;;  %v1817_v36 = vmax.f32 %v4572_v62, 0.0  ;;  %v1714_v53 = vmax.f32 %v740_v11, 0.0  ;;  %v1842_v50 = vmax.f32 %v1380_v35, 0.0  ;;  %v1389_v55 = vpop.f32.mrb[79].mxu1 }
 0x199   :  { %v2032_v14 = vmax.f32 %v1904_v38, %v1968_v15  ;;  %v5516_v21 = vmax.f32 %v4032_v12, 0.0  ;;  %v5518_v48 = vmax.f32 %v5517_v52, 0.0  ;;  %v755_v60 = vadd.f32 %v2579_v28, %v3892_v0 }
 0x19a   :  { %2098 = vst.msk [vmem:[%s5264_s3 + $0x58] sm:$0xff] %vm2086_vm0, %v2033_v31  ;;  %v1395_v61 = vadd.f32 %v2771_v20, %v3892_v0  ;;  %v5519_v19 = vmax.f32 %v4046_v29, 0.0  ;;  %v5521_v12 = vmax.f32 %v5520_v42, 0.0  ;;  %v750_v30 = vadd.f32 %v3892_v0, %v749_v47  ;;  %v2774_v29 = vpop.f32.mrb[80].mxu1  ;;  %v5527_v47 = vld [vmem:[#allocation48_spill] sm:$0xff] }
 0x19b   :  { %v1907_v59 = vmax.f32 %v5516_v21, %v1715_v57  ;;  %v1971_v4 = vmax.f32 %v5518_v48, %v1843_v13  ;;  %2097 = vst.msk [vmem:[%s5264_s3 + $0x50] sm:$0xff] %vm2086_vm0, %v2032_v14  ;;  %v1390_v63 = vadd.f32 %v3892_v0, %v1389_v55  ;;  %v1688_v7 = vmax.f32 %v4596_v49, 0.0  ;;  %v2582_v13 = vpop.f32.mrb[80].mxu0  ;;  %v1399_v48 = vpop.f32.mrb[81].mxu1 }
 0x19c   :  { %v1906_v46 = vmax.f32 %v5519_v19, %v1714_v53  ;;  %v1970_v17 = vmax.f32 %v5521_v12, %v1842_v50  ;;  %v1717_v2 = vmax.f32 %v755_v60, 0.0  ;;  %v1845_v15 = vmax.f32 %v1395_v61, 0.0  ;;  %v5523_v50 = vld [vmem:[#allocation46_spill] sm:$0xff]  ;;  %v759_v52 = vpop.f32.mrb[81].mxu0 }
 0x19d   :  { %v2035_v38 = vmax.f32 %v1907_v59, %v1971_v4  ;;  %v1816_v11 = vmax.f32 %v4600_v41, 0.0  ;;  %v1716_v31 = vmax.f32 %v750_v30, 0.0  ;;  %v1844_v57 = vmax.f32 %v1390_v63, 0.0  ;;  %v5525_v4 = vld [vmem:[#allocation47_spill] sm:$0xff] }
 0x19e   :  { %v2034_v35 = vmax.f32 %v1906_v46, %v1970_v17  ;;  %v5522_v14 = vmax.f32 %v4060_v58, 0.0  ;;  %v5524_v28 = vmax.f32 %v5523_v50, 0.0  ;;  %v765_v21 = vadd.f32 %v2582_v13, %v3892_v0  ;;  %v5530_v13 = vld [vmem:[#allocation49_spill] sm:$0xff] }
 0x19f   :  { %2100 = vst.msk [vmem:[%s5264_s3 + $0x68] sm:$0xff] %vm2086_vm0, %v2035_v38  ;;  %v1405_v59 = vadd.f32 %v2774_v29, %v3892_v0  ;;  %v5526_v60 = vmax.f32 %v5525_v4, 0.0  ;;  %v5528_v58 = vmax.f32 %v5527_v47, 0.0  ;;  %v760_v19 = vadd.f32 %v3892_v0, %v759_v52  ;;  %v5534_v52 = vld [vmem:[#allocation51_spill] sm:$0xff] }
 0x1a0   :  { %v1909_v53 = vmax.f32 %v5522_v14, %v1717_v2  ;;  %v1973_v20 = vmax.f32 %v5524_v28, %v1845_v15  ;;  %2099 = vst.msk [vmem:[%s5264_s3 + $0x60] sm:$0xff] %vm2086_vm0, %v2034_v35  ;;  %v1400_v46 = vadd.f32 %v3892_v0, %v1399_v48  ;;  %v4668_v42 = vadd.f32 %v4176_v37, %v3892_v0  ;;  %v2585_v35 = vpop.f32.mrb[82].mxu0 }
 0x1a1   :  { %v1908_v61 = vmax.f32 %v5526_v60, %v1716_v31  ;;  %v1972_v55 = vmax.f32 %v5528_v58, %v1844_v57  ;;  %v1719_v17 = vmax.f32 %v765_v21, 0.0  ;;  %v1847_v30 = vmax.f32 %v1405_v59, 0.0  ;;  %v2777_v31 = vpop.f32.mrb[82].mxu1  ;;  %v769_v50 = vpop.f32.mrb[83].mxu0 }
 0x1a2   :  { %v2037_v12 = vmax.f32 %v1909_v53, %v1973_v20  ;;  %v4672_v63 = vadd.f32 %v4178_v8, %v3892_v0  ;;  %v1718_v2 = vmax.f32 %v760_v19, 0.0  ;;  %v1846_v15 = vmax.f32 %v1400_v46, 0.0  ;;  %v1409_v28 = vpop.f32.mrb[83].mxu1  ;;  %v5532_v20 = vld [vmem:[#allocation50_spill] sm:$0xff] }
 0x1a3   :  { %v2036_v38 = vmax.f32 %v1908_v61, %v1972_v55  ;;  %v5529_v37 = vmax.f32 %v4088_v45, 0.0  ;;  %v5531_v29 = vmax.f32 %v5530_v13, 0.0  ;;  %v775_v53 = vadd.f32 %v2585_v35, %v3892_v0 }
 0x1a4   :  { %2102 = vst.msk [vmem:[%s5264_s3 + $0x78] sm:$0xff] %vm2086_vm0, %v2037_v12  ;;  %v1415_v8 = vadd.f32 %v2777_v31, %v3892_v0  ;;  %v5533_v21 = vmax.f32 %v5532_v20, 0.0  ;;  %v5535_v45 = vmax.f32 %v5534_v52, 0.0  ;;  %v770_v4 = vadd.f32 %v3892_v0, %v769_v50 }
 0x1a5   :  { %v1911_v57 = vmax.f32 %v5529_v37, %v1719_v17  ;;  %v1975_v14 = vmax.f32 %v5531_v29, %v1847_v30  ;;  %2101 = vst.msk [vmem:[%s5264_s3 + $0x70] sm:$0xff] %vm2086_vm0, %v2036_v38  ;;  %v1410_v60 = vadd.f32 %v3892_v0, %v1409_v28  ;;  %v4696_v61 = vadd.f32 %v3892_v0, %v4190_v24  ;;  %v2588_v30 = vpop.f32.mrb[84].mxu0  ;;  %v2780_v38 = vpop.f32.mrb[84].mxu1  ;;  %v5539_v29 = vld [vmem:[#allocation53_spill] sm:$0xff] }
 0x1a6   :  { %v1910_v59 = vmax.f32 %v5533_v21, %v1718_v2  ;;  %v1974_v48 = vmax.f32 %v5535_v45, %v1846_v15  ;;  %v1721_v58 = vmax.f32 %v775_v53, 0.0  ;;  %v1849_v55 = vmax.f32 %v1415_v8, 0.0  ;;  %v5537_v15 = vld [vmem:[#allocation52_spill] sm:$0xff]  ;;  %v1419_v13 = vpop.f32.mrb[85].mxu1  ;;  %v5541_v8 = vld [vmem:[#allocation54_spill] sm:$0xff] }
 0x1a7   :  { %v2039_v47 = vmax.f32 %v1911_v57, %v1975_v14  ;;  %v4700_v19 = vadd.f32 %v3892_v0, %v4192_v54  ;;  %v1720_v12 = vmax.f32 %v770_v4, 0.0  ;;  %v1848_v17 = vmax.f32 %v1410_v60, 0.0  ;;  %v779_v57 = vpop.f32.mrb[85].mxu0 }
 0x1a8   :  { %v2038_v46 = vmax.f32 %v1910_v59, %v1974_v48  ;;  %v5536_v24 = vmax.f32 %v4112_v34, 0.0  ;;  %v5538_v35 = vmax.f32 %v5537_v15, 0.0  ;;  %v785_v37 = vadd.f32 %v2588_v30, %v3892_v0  ;;  %v5545_v30 = vld [vmem:[#allocation56_spill] sm:$0xff] }
 0x1a9   :  { %2104 = vst.msk [vmem:[%s5264_s3 + $0x88] sm:$0xff] %vm2086_vm0, %v2039_v47  ;;  %v1425_v54 = vadd.f32 %v2780_v38, %v3892_v0  ;;  %v5540_v14 = vmax.f32 %v5539_v29, 0.0  ;;  %v5542_v34 = vmax.f32 %v5541_v8, 0.0  ;;  %v780_v28 = vadd.f32 %v3892_v0, %v779_v57 }
 0x1aa   :  { %v1913_v2 = vmax.f32 %v5536_v24, %v1721_v58  ;;  %v1977_v31 = vmax.f32 %v5538_v35, %v1849_v55  ;;  %2103 = vst.msk [vmem:[%s5264_s3 + $0x80] sm:$0xff] %vm2086_vm0, %v2038_v46  ;;  %v1420_v20 = vadd.f32 %v3892_v0, %v1419_v13  ;;  %v1691_v21 = vmax.f32 %v4668_v42, 0.0  ;;  %v2591_v58 = vpop.f32.mrb[86].mxu0  ;;  %v2783_v55 = vpop.f32.mrb[86].mxu1  ;;  %v5543_v46 = vld [vmem:[#allocation55_spill] sm:$0xff]  ;;  %v5549_v13 = vld [vmem:[#allocation58_spill] sm:$0xff] }
 0x1ab   :  { %v1912_v53 = vmax.f32 %v5540_v14, %v1720_v12  ;;  %v1976_v50 = vmax.f32 %v5542_v34, %v1848_v17  ;;  %v1723_v52 = vmax.f32 %v785_v37, 0.0  ;;  %v1851_v45 = vmax.f32 %v1425_v54, 0.0  ;;  %v789_v35 = vpop.f32.mrb[87].mxu0  ;;  %v5547_v37 = vld [vmem:[#allocation57_spill] sm:$0xff] }
 0x1ac   :  { %v2041_v59 = vmax.f32 %v1913_v2, %v1977_v31  ;;  %v1819_v48 = vmax.f32 %v4672_v63, 0.0  ;;  %v1722_v60 = vmax.f32 %v780_v28, 0.0  ;;  %v1850_v47 = vmax.f32 %v1420_v20, 0.0  ;;  %v1429_v31 = vpop.f32.mrb[87].mxu1 }
 0x1ad   :  { %v2040_v4 = vmax.f32 %v1912_v53, %v1976_v50  ;;  %v5544_v12 = vmax.f32 %v5543_v46, 0.0  ;;  %v5546_v38 = vmax.f32 %v5545_v30, 0.0  ;;  %v795_v2 = vadd.f32 %v2591_v58, %v3892_v0  ;;  %v2594_v58 = vpop.f32.mrb[88].mxu0 }
 0x1ae   :  { %2106 = vst.msk [vmem:[%s5264_s3 + $0x98] sm:$0xff] %vm2086_vm0, %v2041_v59  ;;  %v1435_v15 = vadd.f32 %v2783_v55, %v3892_v0  ;;  %v5548_v54 = vmax.f32 %v5547_v37, 0.0  ;;  %v5550_v29 = vmax.f32 %v5549_v13, 0.0  ;;  %v790_v53 = vadd.f32 %v3892_v0, %v789_v35  ;;  %v2786_v55 = vpop.f32.mrb[88].mxu1  ;;  %v5555_v35 = vld [vmem:[#allocation61_spill] sm:$0xff] }
 0x1af   :  { %v1915_v17 = vmax.f32 %v5544_v12, %v1723_v52  ;;  %v1979_v24 = vmax.f32 %v5546_v38, %v1851_v45  ;;  %2105 = vst.msk [vmem:[%s5264_s3 + $0x90] sm:$0xff] %vm2086_vm0, %v2040_v4  ;;  %v1430_v8 = vadd.f32 %v3892_v0, %v1429_v31  ;;  %v1690_v34 = vmax.f32 %v4696_v61, 0.0  ;;  %v5553_v12 = vld [vmem:[#allocation60_spill] sm:$0xff] }
 0x1b0   :  { %v1914_v57 = vmax.f32 %v5548_v54, %v1722_v60  ;;  %v1978_v14 = vmax.f32 %v5550_v29, %v1850_v47  ;;  %v1725_v28 = vmax.f32 %v795_v2, 0.0  ;;  %v1853_v20 = vmax.f32 %v1435_v15, 0.0  ;;  %v5551_v60 = vld [vmem:[#allocation59_spill] sm:$0xff]  ;;  %v799_v2 = vpop.f32.mrb[89].mxu0  ;;  %v1439_v15 = vpop.f32.mrb[89].mxu1  ;;  %v5557_v54 = vld [vmem:[#allocation62_spill] sm:$0xff] }
 0x1b1   :  { %v2043_v50 = vmax.f32 %v1915_v17, %v1979_v24  ;;  %v1724_v45 = vmax.f32 %v790_v53, 0.0  ;;  %v1852_v4 = vmax.f32 %v1430_v8, 0.0  ;;  %v5552_v47 = vmax.f32 %v5551_v60, 0.0  ;;  %v5559_v53 = vld [vmem:[#allocation6_spill] sm:$0xff] }
 0x1b2   :  { %v2042_v52 = vmax.f32 %v1914_v57, %v1978_v14  ;;  %v5554_v30 = vmax.f32 %v5553_v12, 0.0  ;;  %v805_v38 = vadd.f32 %v2594_v58, %v3892_v0  ;;  %v1445_v24 = vadd.f32 %v2786_v55, %v3892_v0  ;;  %v2789_v12 = vpop.f32.mrb[90].mxu1 }
 0x1b3   :  { %2108 = vst.msk [vmem:[%s5264_s3 + $0xa8] sm:$0xff] %vm2086_vm0, %v2043_v50  ;;  %v1917_v46 = vmax.f32 %v5552_v47, %v1725_v28  ;;  %v5556_v31 = vmax.f32 %v5555_v35, 0.0  ;;  %v5558_v57 = vmax.f32 %v5557_v54, 0.0  ;;  %v800_v29 = vadd.f32 %v3892_v0, %v799_v2  ;;  %v2597_v47 = vpop.f32.mrb[90].mxu0 }
 0x1b4   :  { %v1981_v17 = vmax.f32 %v5554_v30, %v1853_v20  ;;  %2107 = vst.msk [vmem:[%s5264_s3 + $0xa0] sm:$0xff] %vm2086_vm0, %v2042_v52  ;;  %v1440_v14 = vadd.f32 %v3892_v0, %v1439_v15  ;;  %v4768_v8 = vadd.f32 %v5559_v53, %v3892_v0  ;;  %v1727_v28 = vmax.f32 %v805_v38, 0.0  ;;  %v4773_v52 = vld [vmem:[%s5263_s2] ss:$0 sm:$0xff]  ;;  %v5561_v0 = vld [vmem:[#allocation63_spill] sm:$0xff]  ;;  %v809_v35 = vpop.f32.mrb[91].mxu0 }
 0x1b5   :  { %v1916_v37 = vmax.f32 %v5556_v31, %v1724_v45  ;;  %v1980_v13 = vmax.f32 %v5558_v57, %v1852_v4  ;;  %v1855_v20 = vmax.f32 %v1445_v24, 0.0  ;;  %v5560_v45 = vld [vmem:[#allocation67_spill] sm:$0xff]  ;;  %v1726_v55 = vmax.f32 %v800_v29, 0.0  ;;  %v1449_v31 = vpop.f32.mrb[91].mxu1 }
 0x1b6   :  { %v2045_v50 = vmax.f32 %v1917_v46, %v1981_v17  ;;  %v4777_v58 = vadd.f32 %v4773_v52, %v5560_v45  ;;  %v1854_v60 = vmax.f32 %v1440_v14, 0.0  ;;  %v5562_v46 = vmax.f32 %v5561_v0, 0.0  ;;  %v5563_v17 = vld [vmem:[#allocation64_spill] sm:$0xff]  ;;  %v5570_v0 = vld [vmem:[#allocation69_spill] sm:$0xff] }
 0x1b7   :  { %v2044_v4 = vmax.f32 %v1916_v37, %v1980_v13  ;;  %v5564_v38 = vmax.f32 %v5563_v17, 0.0  ;;  %v815_v2 = vadd.f32 %v4773_v52, %v2597_v47  ;;  %v1455_v15 = vadd.f32 %v4773_v52, %v2789_v12  ;;  %v5565_v37 = vld [vmem:[#allocation65_spill] sm:$0xff]  ;;  %v5567_v13 = vld [vmem:[#allocation66_spill] sm:$0xff] }
 0x1b8   :  { %2110 = vst.msk [vmem:[%s5264_s3 + $0xb8] sm:$0xff] %vm2086_vm0, %v2045_v50  ;;  %v1919_v30 = vmax.f32 %v5562_v46, %v1727_v28  ;;  %v5566_v54 = vmax.f32 %v5565_v37, 0.0  ;;  %v5568_v29 = vmax.f32 %v5567_v13, 0.0  ;;  %v810_v53 = vadd.f32 %v4773_v52, %v809_v35  ;;  %v5569_v28 = vld [vmem:[#allocation68_spill] sm:$0xff]  ;;  %v5574_v13 = vld [vmem:[#allocation3_spill] sm:$0xff] }
 0x1b9   :  { %v1983_v24 = vmax.f32 %v5564_v38, %v1855_v20  ;;  %2109 = vst.msk [vmem:[%s5264_s3 + $0xb0] sm:$0xff] %vm2086_vm0, %v2044_v4  ;;  %v1450_v50 = vadd.f32 %v4773_v52, %v1449_v31  ;;  %v4801_v20 = vadd.f32 %v4773_v52, %v5569_v28  ;;  %v1729_v47 = vmax.f32 %v815_v2, 0.0  ;;  %v2600_v38 = vpop.f32.mrb[92].mxu0 }
 0x1ba   :  { %v1918_v57 = vmax.f32 %v5566_v54, %v1726_v55  ;;  %v1982_v14 = vmax.f32 %v5568_v29, %v1854_v60  ;;  %v1857_v12 = vmax.f32 %v1455_v15, 0.0  ;;  %v4805_v4 = vadd.f32 %v4773_v52, %v5570_v0  ;;  %v2792_v60 = vpop.f32.mrb[92].mxu1  ;;  %v819_v54 = vpop.f32.mrb[93].mxu0 }
 0x1bb   :  { %v2047_v45 = vmax.f32 %v1919_v30, %v1983_v24  ;;  %v1728_v55 = vmax.f32 %v810_v53, 0.0  ;;  %v1856_v17 = vmax.f32 %v1450_v50, 0.0  ;;  %v5571_v35 = vmax.f32 %v4208_v16, 0.0  ;;  %v5572_v30 = vld [vmem:[#allocation2_spill] sm:$0xff] }
 0x1bc   :  { %v2046_v46 = vmax.f32 %v1918_v57, %v1982_v14  ;;  %v5573_v24 = vmax.f32 %v5572_v30, 0.0  ;;  %v825_v15 = vadd.f32 %v4773_v52, %v2600_v38  ;;  %v1465_v37 = vadd.f32 %v4773_v52, %v2792_v60  ;;  %v1459_v57 = vpop.f32.mrb[93].mxu1  ;;  %v2603_v30 = vpop.f32.mrb[94].mxu0 }
 0x1bd   :  { %2112 = vst.msk [vmem:[%s5264_s3 + $0xc8] sm:$0xff] %vm2086_vm0, %v2047_v45  ;;  %v1921_v31 = vmax.f32 %v5571_v35, %v1729_v47  ;;  %v5575_v29 = vmax.f32 %v5574_v13, 0.0  ;;  %v5576_v16 = vmax.f32 %v4220_v39, 0.0  ;;  %v820_v50 = vadd.f32 %v4773_v52, %v819_v54  ;;  %v5577_v39 = vld [vmem:[#allocation4_spill] sm:$0xff]  ;;  %v5579_v54 = vld [vmem:[#allocation5_spill] sm:$0xff] }
 0x1be   :  { %v1985_v2 = vmax.f32 %v5573_v24, %v1857_v12  ;;  %2111 = vst.msk [vmem:[%s5264_s3 + $0xc0] sm:$0xff] %vm2086_vm0, %v2046_v46  ;;  %v1460_v28 = vadd.f32 %v4773_v52, %v1459_v57  ;;  %v1731_v12 = vmax.f32 %v825_v15, 0.0  ;;  %v1859_v0 = vmax.f32 %v1465_v37, 0.0  ;;  %v2795_v24 = vpop.f32.mrb[94].mxu1  ;;  %v829_v37 = vpop.f32.mrb[95].mxu0 }
 0x1bf   :  { %v1920_v14 = vmax.f32 %v5575_v29, %v1728_v55  ;;  %v1984_v53 = vmax.f32 %v5576_v16, %v1856_v17  ;;  %v1730_v35 = vmax.f32 %v820_v50, 0.0  ;;  %v5578_v55 = vmax.f32 %v5577_v39, 0.0  ;;  %v1469_v13 = vpop.f32.mrb[95].mxu1  ;;  %v5581_v29 = vld [vmem:[#allocation7_spill] sm:$0xff]  ;;  %v2606_v38 = vpop.f32.mrb[96].mxu0 }
 0x1c0   :  { %v2049_v47 = vmax.f32 %v1921_v31, %v1985_v2  ;;  %v1858_v46 = vmax.f32 %v1460_v28, 0.0  ;;  %v5580_v57 = vmax.f32 %v5579_v54, 0.0  ;;  %v835_v2 = vadd.f32 %v4773_v52, %v2603_v30 }
 0x1c1   :  { %v2048_v60 = vmax.f32 %v1920_v14, %v1984_v53  ;;  %v1923_v17 = vmax.f32 %v5578_v55, %v1731_v12  ;;  %v1475_v15 = vadd.f32 %v4773_v52, %v2795_v24  ;;  %v5582_v14 = vmax.f32 %v5581_v29, 0.0  ;;  %v5583_v53 = vld [vmem:[#allocation8_spill] sm:$0xff]  ;;  %v2798_v29 = vpop.f32.mrb[96].mxu1 }
 0x1c2   :  { %2114 = vst.msk [vmem:[%s5264_s3 + $0xd8] sm:$0xff] %vm2086_vm0, %v2049_v47  ;;  %v1987_v31 = vmax.f32 %v5580_v57, %v1859_v0  ;;  %v5584_v50 = vmax.f32 %v5583_v53, 0.0  ;;  %v830_v47 = vadd.f32 %v4773_v52, %v829_v37  ;;  %v1470_v12 = vadd.f32 %v4773_v52, %v1469_v13  ;;  %v5587_v13 = vld [vmem:[#allocation10_spill] sm:$0xff]  ;;  %v5589_v53 = vld [vmem:[#allocation11_spill] sm:$0xff]  ;;  %v5604_v0 = vld [vmem:[#allocation73_spill] sm:$0xff] }
 0x1c3   :  { %2113 = vst.msk [vmem:[%s5264_s3 + $0xd0] sm:$0xff] %vm2086_vm0, %v2048_v60  ;;  %v1922_v16 = vmax.f32 %v5582_v14, %v1730_v35  ;;  %v1733_v24 = vmax.f32 %v835_v2, 0.0  ;;  %v1861_v39 = vmax.f32 %v1475_v15, 0.0  ;;  %v5585_v35 = vld [vmem:[#allocation9_spill] sm:$0xff]  ;;  %v5588_v14 = vmax.f32 %v5587_v13, 0.0  ;;  %v839_v15 = vpop.f32.mrb[97].mxu0 }
 0x1c4   :  { %v1986_v28 = vmax.f32 %v5584_v50, %v1858_v46  ;;  %v2051_v30 = vmax.f32 %v1923_v17, %v1987_v31  ;;  %v1732_v57 = vmax.f32 %v830_v47, 0.0  ;;  %v1860_v60 = vmax.f32 %v1470_v12, 0.0  ;;  %v5591_v47 = vld [vmem:[#allocation12_spill] sm:$0xff] }
 0x1c5   :  { %v5586_v46 = vmax.f32 %v5585_v35, 0.0  ;;  %v1989_v17 = vmax.f32 %v5588_v14, %v1861_v39  ;;  %v845_v31 = vadd.f32 %v4773_v52, %v2606_v38  ;;  %v1485_v2 = vadd.f32 %v4773_v52, %v2798_v29  ;;  %v5593_v38 = vld [vmem:[#allocation70_spill] sm:$0xff]  ;;  %v5594_v14 = vld [vmem:[#allocation71_spill] sm:$0xff] }
 0x1c6   :  { %v2050_v54 = vmax.f32 %v1922_v16, %v1986_v28  ;;  %2116 = vst.msk [vmem:[%s5264_s3 + $0xe8] sm:$0xff] %vm2086_vm0, %v2051_v30  ;;  %v1479_v16 = vpop.f32.mrb[97].mxu1  ;;  %v5590_v50 = vmax.f32 %v5589_v53, 0.0  ;;  %v5592_v12 = vmax.f32 %v5591_v47, 0.0  ;;  %v4873_v29 = vadd.f32 %v4773_v52, %v5593_v38  ;;  %v2609_v47 = vpop.f32.mrb[98].mxu0 }
 0x1c7   :  { %v1925_v37 = vmax.f32 %v5586_v46, %v1733_v24  ;;  %v840_v24 = vadd.f32 %v4773_v52, %v839_v15  ;;  %v1480_v39 = vadd.f32 %v4773_v52, %v1479_v16  ;;  %v1735_v46 = vmax.f32 %v845_v31, 0.0  ;;  %v5595_v15 = vld [vmem:[#allocation13_spill] sm:$0xff] }
 0x1c8   :  { %2115 = vst.msk [vmem:[%s5264_s3 + $0xe0] sm:$0xff] %vm2086_vm0, %v2050_v54  ;;  %v1924_v28 = vmax.f32 %v5590_v50, %v1732_v57  ;;  %v1988_v30 = vmax.f32 %v5592_v12, %v1860_v60  ;;  %v1863_v13 = vmax.f32 %v1485_v2, 0.0  ;;  %v4877_v54 = vadd.f32 %v4773_v52, %v5594_v14  ;;  %v2801_v60 = vpop.f32.mrb[98].mxu1  ;;  %v5601_v14 = vld [vmem:[#allocation16_spill] sm:$0xff] }
 0x1c9   :  { %v2053_v35 = vmax.f32 %v1925_v37, %v1989_v17  ;;  %v1734_v57 = vmax.f32 %v840_v24, 0.0  ;;  %v1862_v50 = vmax.f32 %v1480_v39, 0.0  ;;  %v5596_v16 = vmax.f32 %v5595_v15, 0.0  ;;  %v5597_v37 = vld [vmem:[#allocation14_spill] sm:$0xff]  ;;  %v5599_v24 = vld [vmem:[#allocation15_spill] sm:$0xff] }
 0x1ca   :  { %v2052_v53 = vmax.f32 %v1924_v28, %v1988_v30  ;;  %v5598_v17 = vmax.f32 %v5597_v37, 0.0  ;;  %v855_v2 = vadd.f32 %v4773_v52, %v2609_v47  ;;  %v1495_v38 = vadd.f32 %v4773_v52, %v2801_v60  ;;  %v849_v28 = vpop.f32.mrb[99].mxu0  ;;  %v1489_v30 = vpop.f32.mrb[99].mxu1  ;;  %v5603_v47 = vld [vmem:[#allocation72_spill] sm:$0xff] }
 0x1cb   :  { %2118 = vst.msk [vmem:[%s5264_s3 + $0xf8] sm:$0xff] %vm2086_vm0, %v2053_v35  ;;  %v1927_v12 = vmax.f32 %v5596_v16, %v1735_v46  ;;  %v5600_v39 = vmax.f32 %v5599_v24, 0.0  ;;  %v5602_v15 = vmax.f32 %v5601_v14, 0.0  ;;  %v850_v16 = vadd.f32 %v4773_v52, %v849_v28  ;;  %v2612_v14 = vpop.f32.mrb[100].mxu0 }
 0x1cc   :  { %v1991_v31 = vmax.f32 %v5598_v17, %v1863_v13  ;;  %2117 = vst.msk [vmem:[%s5264_s3 + $0xf0] sm:$0xff] %vm2086_vm0, %v2052_v53  ;;  %v1490_v13 = vadd.f32 %v4773_v52, %v1489_v30  ;;  %v4901_v60 = vadd.f32 %v4773_v52, %v5603_v47  ;;  %v1737_v17 = vmax.f32 %v855_v2, 0.0 }
 0x1cd   :  { %v1926_v35 = vmax.f32 %v5600_v39, %v1734_v57  ;;  %v1990_v46 = vmax.f32 %v5602_v15, %v1862_v50  ;;  %v1865_v55 = vmax.f32 %v1495_v38, 0.0  ;;  %v4905_v53 = vadd.f32 %v4773_v52, %v5604_v0  ;;  %v2804_v50 = vpop.f32.mrb[100].mxu1 }
 0x1ce   :  { %v2055_v37 = vmax.f32 %v1927_v12, %v1991_v31  ;;  %v1736_v57 = vmax.f32 %v850_v16, 0.0  ;;  %v1864_v39 = vmax.f32 %v1490_v13, 0.0  ;;  %v5605_v28 = vmax.f32 %v4304_v22, 0.0  ;;  %v5606_v12 = vld [vmem:[#allocation17_spill] sm:$0xff]  ;;  %v1499_v15 = vpop.f32.mrb[101].mxu1 }
 0x1cf   :  { %v2054_v24 = vmax.f32 %v1926_v35, %v1990_v46  ;;  %v5607_v31 = vmax.f32 %v5606_v12, 0.0  ;;  %v865_v38 = vadd.f32 %v4773_v52, %v2612_v14  ;;  %v1505_v0 = vadd.f32 %v4773_v52, %v2804_v50  ;;  %v859_v35 = vpop.f32.mrb[101].mxu0  ;;  %v5608_v46 = vld [vmem:[#allocation74_spill] sm:$0xff] }
 0x1d0   :  { %2120 = vst.msk [vmem:[%s5264_s3 + $0x108] sm:$0xff] %vm2086_vm0, %v2055_v37  ;;  %v1929_v30 = vmax.f32 %v5605_v28, %v1737_v17  ;;  %v5609_v16 = vmax.f32 %v5608_v46, 0.0  ;;  %v5610_v22 = vmax.f32 %v4316_v43, 0.0  ;;  %v860_v37 = vadd.f32 %v4773_v52, %v859_v35  ;;  %v2615_v59 = vpop.f32.mrb[102].mxu0  ;;  %v2807_v46 = vpop.f32.mrb[102].mxu1 }
 0x1d1   :  { %v1993_v2 = vmax.f32 %v5607_v31, %v1865_v55  ;;  %2119 = vst.msk [vmem:[%s5264_s3 + $0x100] sm:$0xff] %vm2086_vm0, %v2054_v24  ;;  %v1500_v55 = vadd.f32 %v4773_v52, %v1499_v15  ;;  %v1695_v17 = vmax.f32 %v4873_v29, 0.0  ;;  %v1739_v50 = vmax.f32 %v865_v38, 0.0  ;;  %v1509_v35 = vpop.f32.mrb[103].mxu1  ;;  %v5613_v15 = vld [vmem:[#allocation20_spill] sm:$0xff] }
 0x1d2   :  { %v1928_v13 = vmax.f32 %v5609_v16, %v1736_v57  ;;  %v1992_v47 = vmax.f32 %v5610_v22, %v1864_v39  ;;  %v1867_v28 = vmax.f32 %v1505_v0, 0.0  ;;  %v1823_v12 = vmax.f32 %v4877_v54, 0.0  ;;  %v869_v0 = vpop.f32.mrb[103].mxu0  ;;  %v5615_v22 = vld [vmem:[#allocation21_spill] sm:$0xff] }
 0x1d3   :  { %v2057_v14 = vmax.f32 %v1929_v30, %v1993_v2  ;;  %v1738_v45 = vmax.f32 %v860_v37, 0.0  ;;  %v1866_v24 = vmax.f32 %v1500_v55, 0.0  ;;  %v5611_v43 = vmax.f32 %v4320_v32, 0.0 }
 0x1d4   :  { %v2056_v31 = vmax.f32 %v1928_v13, %v1992_v47  ;;  %v5612_v39 = vmax.f32 %v4324_v9, 0.0  ;;  %v875_v2 = vadd.f32 %v4773_v52, %v2615_v59  ;;  %v1515_v38 = vadd.f32 %v4773_v52, %v2807_v46 }
 0x1d5   :  { %2122 = vst.msk [vmem:[%s5264_s3 + $0x118] sm:$0xff] %vm2086_vm0, %v2057_v14  ;;  %v1931_v57 = vmax.f32 %v5611_v43, %v1739_v50  ;;  %v5614_v16 = vmax.f32 %v5613_v15, 0.0  ;;  %v5616_v32 = vmax.f32 %v5615_v22, 0.0  ;;  %v870_v9 = vadd.f32 %v4773_v52, %v869_v0  ;;  %v2810_v15 = vpop.f32.mrb[104].mxu1  ;;  %v5620_v22 = vld [vmem:[#allocation23_spill] sm:$0xff] }
 0x1d6   :  { %v1995_v30 = vmax.f32 %v5612_v39, %v1867_v28  ;;  %2121 = vst.msk [vmem:[%s5264_s3 + $0x110] sm:$0xff] %vm2086_vm0, %v2056_v31  ;;  %v1510_v37 = vadd.f32 %v4773_v52, %v1509_v35  ;;  %v1694_v59 = vmax.f32 %v4901_v60, 0.0  ;;  %v1741_v14 = vmax.f32 %v875_v2, 0.0  ;;  %v2618_v39 = vpop.f32.mrb[104].mxu0  ;;  %v1519_v35 = vpop.f32.mrb[105].mxu1 }
 0x1d7   :  { %v1930_v13 = vmax.f32 %v5614_v16, %v1738_v45  ;;  %v1994_v47 = vmax.f32 %v5616_v32, %v1866_v24  ;;  %v1869_v50 = vmax.f32 %v1515_v38, 0.0  ;;  %v1740_v43 = vmax.f32 %v870_v9, 0.0  ;;  %v879_v38 = vpop.f32.mrb[105].mxu0  ;;  %v5622_v9 = vld [vmem:[#allocation18_spill] sm:$0xff] }
 0x1d8   :  { %v2059_v55 = vmax.f32 %v1931_v57, %v1995_v30  ;;  %v1868_v31 = vmax.f32 %v1510_v37, 0.0  ;;  %v5617_v45 = vmax.f32 %v4348_v33, 0.0  ;;  %v5618_v0 = vmax.f32 %v4352_v44, 0.0 }
 0x1d9   :  { %v2058_v46 = vmax.f32 %v1930_v13, %v1994_v47  ;;  %v885_v30 = vadd.f32 %v4773_v52, %v2618_v39  ;;  %v1525_v2 = vadd.f32 %v4773_v52, %v2810_v15  ;;  %v5619_v16 = vmax.f32 %v4358_v40, 0.0  ;;  %v5623_v39 = vld [vmem:[#allocation19_spill] sm:$0xff] }
 0x1da   :  { %2124 = vst.msk [vmem:[%s5264_s3 + $0x128] sm:$0xff] %vm2086_vm0, %v2059_v55  ;;  %v1933_v24 = vmax.f32 %v5617_v45, %v1741_v14  ;;  %v1997_v57 = vmax.f32 %v5618_v0, %v1869_v50  ;;  %v5621_v33 = vmax.f32 %v5620_v22, 0.0  ;;  %v880_v44 = vadd.f32 %v4773_v52, %v879_v38  ;;  %v2621_v45 = vpop.f32.mrb[106].mxu0 }
 0x1db   :  { %2123 = vst.msk [vmem:[%s5264_s3 + $0x120] sm:$0xff] %vm2086_vm0, %v2058_v46  ;;  %v1932_v13 = vmax.f32 %v5619_v16, %v1740_v43  ;;  %v1520_v47 = vadd.f32 %v4773_v52, %v1519_v35  ;;  %v4973_v37 = vadd.f32 %v4773_v52, %v5622_v9  ;;  %v1743_v14 = vmax.f32 %v885_v30, 0.0  ;;  %v889_v35 = vpop.f32.mrb[107].mxu0  ;;  %v5630_v9 = vld [vmem:[#allocation22_spill] sm:$0xff] }
 0x1dc   :  { %v1996_v32 = vmax.f32 %v5621_v33, %v1868_v31  ;;  %v2061_v55 = vmax.f32 %v1933_v24, %v1997_v57  ;;  %v1871_v50 = vmax.f32 %v1525_v2, 0.0  ;;  %v4977_v46 = vadd.f32 %v4773_v52, %v5623_v39  ;;  %v2813_v31 = vpop.f32.mrb[106].mxu1 }
 0x1dd   :  { %v1742_v43 = vmax.f32 %v880_v44, 0.0  ;;  %v1870_v15 = vmax.f32 %v1520_v47, 0.0  ;;  %v5624_v0 = vmax.f32 %v4376_v25, 0.0  ;;  %v5625_v24 = vmax.f32 %v4380_v23, 0.0  ;;  %v1529_v16 = vpop.f32.mrb[107].mxu1 }
 0x1de   :  { %v2060_v40 = vmax.f32 %v1932_v13, %v1996_v32  ;;  %2126 = vst.msk [vmem:[%s5264_s3 + $0x138] sm:$0xff] %vm2086_vm0, %v2061_v55  ;;  %v895_v30 = vadd.f32 %v4773_v52, %v2621_v45  ;;  %v1535_v2 = vadd.f32 %v4773_v52, %v2813_v31  ;;  %v5626_v13 = vld [vmem:[#allocation28_spill] sm:$0xff]  ;;  %v5628_v32 = vld [vmem:[#allocation30_spill] sm:$0xff]  ;;  %v890_v23 = vadd.f32 %v4773_v52, %v889_v35  ;;  %v5631_v45 = vld [vmem:[#allocation75_spill] sm:$0xff] }
 0x1df   :  { %v1935_v38 = vmax.f32 %v5624_v0, %v1743_v14  ;;  %v1999_v57 = vmax.f32 %v5625_v24, %v1871_v50  ;;  %v5627_v22 = vmax.f32 %v5626_v13, 0.0  ;;  %v5629_v25 = vmax.f32 %v5628_v32, 0.0  ;;  %v2624_v24 = vpop.f32.mrb[108].mxu0  ;;  %v5632_v35 = vld [vmem:[#allocation31_spill] sm:$0xff] }
 0x1e0   :  { %2125 = vst.msk [vmem:[%s5264_s3 + $0x130] sm:$0xff] %vm2086_vm0, %v2060_v40  ;;  %v1530_v47 = vadd.f32 %v4773_v52, %v1529_v16  ;;  %v5001_v55 = vadd.f32 %v4773_v52, %v5630_v9  ;;  %v1745_v50 = vmax.f32 %v895_v30, 0.0  ;;  %v1873_v39 = vmax.f32 %v1535_v2, 0.0 }
 0x1e1   :  { %v1934_v33 = vmax.f32 %v5627_v22, %v1742_v43  ;;  %v1998_v44 = vmax.f32 %v5629_v25, %v1870_v15  ;;  %v2063_v14 = vmax.f32 %v1935_v38, %v1999_v57  ;;  %v5005_v40 = vadd.f32 %v4773_v52, %v5631_v45  ;;  %v2816_v15 = vpop.f32.mrb[108].mxu1  ;;  %v5634_v38 = vld [vmem:[#allocation35_spill] sm:$0xff]  ;;  %v5636_v25 = vld [vmem:[#allocation36_spill] sm:$0xff] }
 0x1e2   :  { %v1744_v43 = vmax.f32 %v890_v23, 0.0  ;;  %v1872_v0 = vmax.f32 %v1530_v47, 0.0  ;;  %v5633_v16 = vmax.f32 %v5632_v35, 0.0  ;;  %v5635_v57 = vmax.f32 %v5634_v38, 0.0  ;;  %v1539_v32 = vpop.f32.mrb[109].mxu1  ;;  %v5638_v47 = vld [vmem:[#allocation76_spill] sm:$0xff] }
 0x1e3   :  { %v2062_v31 = vmax.f32 %v1934_v33, %v1998_v44  ;;  %2128 = vst.msk [vmem:[%s5264_s3 + $0x148] sm:$0xff] %vm2086_vm0, %v2063_v14  ;;  %v905_v2 = vadd.f32 %v4773_v52, %v2624_v24  ;;  %v1545_v22 = vadd.f32 %v4773_v52, %v2816_v15  ;;  %v899_v33 = vpop.f32.mrb[109].mxu0  ;;  %v5637_v44 = vmax.f32 %v5636_v25, 0.0  ;;  %v2819_v25 = vpop.f32.mrb[110].mxu1 }
 0x1e4   :  { %v1937_v13 = vmax.f32 %v5633_v16, %v1745_v50  ;;  %v2001_v30 = vmax.f32 %v5635_v57, %v1873_v39  ;;  %v5639_v9 = vmax.f32 %v5638_v47, 0.0  ;;  %v900_v50 = vadd.f32 %v4773_v52, %v899_v33  ;;  %v2627_v28 = vpop.f32.mrb[110].mxu0  ;;  %v5644_v47 = vld [vmem:[#allocation81_spill] sm:$0xff] }
 0x1e5   :  { %2127 = vst.msk [vmem:[%s5264_s3 + $0x140] sm:$0xff] %vm2086_vm0, %v2062_v31  ;;  %v1936_v23 = vmax.f32 %v5637_v44, %v1744_v43  ;;  %v1540_v39 = vadd.f32 %v4773_v52, %v1539_v32  ;;  %v1747_v15 = vmax.f32 %v905_v2, 0.0  ;;  %v1875_v35 = vmax.f32 %v1545_v22, 0.0  ;;  %v5640_v43 = vld [vmem:[#allocation77_spill] sm:$0xff]  ;;  %v5642_v32 = vld [vmem:[#allocation78_spill] sm:$0xff]  ;;  %v909_v22 = vpop.f32.mrb[111].mxu0 }
 0x1e6   :  { %v2000_v14 = vmax.f32 %v5639_v9, %v1872_v0  ;;  %v2065_v24 = vmax.f32 %v1937_v13, %v2001_v30  ;;  %v1746_v57 = vmax.f32 %v900_v50, 0.0  ;;  %v5641_v0 = vmax.f32 %v5640_v43, 0.0  ;;  %v5646_v50 = vld [vmem:[#allocation82_spill] sm:$0xff]  ;;  %v2630_v45 = vpop.f32.mrb[112].mxu0 }
 0x1e7   :  { %v1874_v31 = vmax.f32 %v1540_v39, 0.0  ;;  %v5643_v44 = vmax.f32 %v5642_v32, 0.0  ;;  %v915_v30 = vadd.f32 %v4773_v52, %v2627_v28  ;;  %v1555_v2 = vadd.f32 %v4773_v52, %v2819_v25 }
 0x1e8   :  { %v2064_v38 = vmax.f32 %v1936_v23, %v2000_v14  ;;  %2130 = vst.msk [vmem:[%s5264_s3 + $0x158] sm:$0xff] %vm2086_vm0, %v2065_v24  ;;  %v1939_v33 = vmax.f32 %v5641_v0, %v1747_v15  ;;  %v1549_v23 = vpop.f32.mrb[111].mxu1  ;;  %v5645_v9 = vmax.f32 %v5644_v47, 0.0  ;;  %v5647_v39 = vmax.f32 %v5646_v50, 0.0  ;;  %v5652_v50 = vld [vmem:[#allocation87_spill] sm:$0xff] }
 0x1e9   :  { %v2003_v13 = vmax.f32 %v5643_v44, %v1875_v35  ;;  %v910_v15 = vadd.f32 %v4773_v52, %v909_v22  ;;  %v1550_v35 = vadd.f32 %v4773_v52, %v1549_v23  ;;  %v1696_v28 = vmax.f32 %v5001_v55, 0.0  ;;  %v2822_v47 = vpop.f32.mrb[112].mxu1  ;;  %v5650_v23 = vld [vmem:[#allocation86_spill] sm:$0xff] }
 0x1ea   :  { %2129 = vst.msk [vmem:[%s5264_s3 + $0x150] sm:$0xff] %vm2086_vm0, %v2064_v38  ;;  %v1938_v14 = vmax.f32 %v5645_v9, %v1746_v57  ;;  %v2002_v24 = vmax.f32 %v5647_v39, %v1874_v31  ;;  %v1749_v43 = vmax.f32 %v915_v30, 0.0  ;;  %v1877_v0 = vmax.f32 %v1555_v2, 0.0  ;;  %v5648_v57 = vld [vmem:[#allocation85_spill] sm:$0xff]  ;;  %v919_v2 = vpop.f32.mrb[113].mxu0 }
 0x1eb   :  { %v2067_v25 = vmax.f32 %v1939_v33, %v2003_v13  ;;  %v1824_v32 = vmax.f32 %v5005_v40, 0.0  ;;  %v1748_v16 = vmax.f32 %v910_v15, 0.0  ;;  %v1876_v38 = vmax.f32 %v1550_v35, 0.0  ;;  %v5654_v15 = vld [vmem:[#allocation88_spill] sm:$0xff] }
 0x1ec   :  { %v2066_v44 = vmax.f32 %v1938_v14, %v2002_v24  ;;  %v5649_v31 = vmax.f32 %v5648_v57, 0.0  ;;  %v5651_v9 = vmax.f32 %v5650_v23, 0.0  ;;  %v925_v13 = vadd.f32 %v4773_v52, %v2630_v45  ;;  %v1559_v14 = vpop.f32.mrb[113].mxu1  ;;  %v5656_v45 = vld [vmem:[#allocation24_spill] sm:$0xff] }
 0x1ed   :  { %2132 = vst.msk [vmem:[%s5264_s3 + $0x168] sm:$0xff] %vm2086_vm0, %v2067_v25  ;;  %v1565_v30 = vadd.f32 %v4773_v52, %v2822_v47  ;;  %v5653_v39 = vmax.f32 %v5652_v50, 0.0  ;;  %v5655_v35 = vmax.f32 %v5654_v15, 0.0  ;;  %v5073_v47 = vadd.f32 %v4773_v52, %v5656_v45  ;;  %v2633_v15 = vpop.f32.mrb[114].mxu0  ;;  %v5659_v45 = vld [vmem:[#allocation27_spill] sm:$0xff] }
 0x1ee   :  { %v1941_v22 = vmax.f32 %v5649_v31, %v1749_v43  ;;  %v2005_v33 = vmax.f32 %v5651_v9, %v1877_v0  ;;  %2131 = vst.msk [vmem:[%s5264_s3 + $0x160] sm:$0xff] %vm2086_vm0, %v2066_v44  ;;  %v920_v43 = vadd.f32 %v4773_v52, %v919_v2  ;;  %v1560_v0 = vadd.f32 %v4773_v52, %v1559_v14  ;;  %v5657_v9 = vld [vmem:[#allocation25_spill] sm:$0xff] }
 0x1ef   :  { %v1940_v24 = vmax.f32 %v5653_v39, %v1748_v16  ;;  %v2004_v25 = vmax.f32 %v5655_v35, %v1876_v38  ;;  %v1751_v31 = vmax.f32 %v925_v13, 0.0  ;;  %v1879_v23 = vmax.f32 %v1565_v30, 0.0  ;;  %v2825_v38 = vpop.f32.mrb[114].mxu1  ;;  %v929_v30 = vpop.f32.mrb[115].mxu0 }
 0x1f0   :  { %v2069_v57 = vmax.f32 %v1941_v22, %v2005_v33  ;;  %v5077_v44 = vadd.f32 %v4773_v52, %v5657_v9  ;;  %v1750_v16 = vmax.f32 %v920_v43, 0.0  ;;  %v1878_v39 = vmax.f32 %v1560_v0, 0.0  ;;  %v1569_v14 = vpop.f32.mrb[115].mxu1  ;;  %v2636_v10 = vpop.f32.mrb[116].mxu0 }
 0x1f1   :  { %v2068_v50 = vmax.f32 %v1940_v24, %v2004_v25  ;;  %v1943_v2 = vmax.f32 %v1687_v27, %v1751_v31  ;;  %v2007_v22 = vmax.f32 %v1815_v3, %v1879_v23  ;;  %v935_v33 = vadd.f32 %v4773_v52, %v2633_v15  ;;  %v5658_v3 = vld [vmem:[#allocation26_spill] sm:$0xff] }
 0x1f2   :  { %2134 = vst.msk [vmem:[%s5264_s3 + $0x178] sm:$0xff] %vm2086_vm0, %v2069_v57  ;;  %v1575_v13 = vadd.f32 %v4773_v52, %v2825_v38  ;;  %v1942_v24 = vmax.f32 %v1686_v51, %v1750_v16  ;;  %v2006_v6 = vmax.f32 %v1814_v26, %v1878_v39  ;;  %v930_v1 = vadd.f32 %v4773_v52, %v929_v30  ;;  %v2828_v26 = vpop.f32.mrb[116].mxu1  ;;  %v939_v39 = vpop.f32.mrb[117].mxu0 }
 0x1f3   :  { %2133 = vst.msk [vmem:[%s5264_s3 + $0x170] sm:$0xff] %vm2086_vm0, %v2068_v50  ;;  %v1570_v27 = vadd.f32 %v4773_v52, %v1569_v14  ;;  %v5101_v35 = vadd.f32 %v4773_v52, %v5658_v3  ;;  %v2071_v25 = vmax.f32 %v1943_v2, %v2007_v22  ;;  %v1753_v43 = vmax.f32 %v935_v33, 0.0  ;;  %v1579_v15 = vpop.f32.mrb[117].mxu1 }
 0x1f4   :  { %v1881_v0 = vmax.f32 %v1575_v13, 0.0  ;;  %v5105_v57 = vadd.f32 %v4773_v52, %v5659_v45  ;;  %v2070_v56 = vmax.f32 %v1942_v24, %v2006_v6  ;;  %v1752_v51 = vmax.f32 %v930_v1, 0.0  ;;  %v2639_v6 = vpop.f32.mrb[118].mxu0  ;;  %v2831_v49 = vpop.f32.mrb[118].mxu1 }
 0x1f5   :  { %v1880_v31 = vmax.f32 %v1570_v27, 0.0  ;;  %2136 = vst.msk [vmem:[%s5264_s3 + $0x188] sm:$0xff] %vm2086_vm0, %v2071_v25  ;;  %v1945_v23 = vmax.f32 %v1689_v18, %v1753_v43  ;;  %v945_v50 = vadd.f32 %v4773_v52, %v2636_v10  ;;  %v1585_v16 = vadd.f32 %v4773_v52, %v2828_v26  ;;  %v949_v27 = vpop.f32.mrb[119].mxu0  ;;  %v1589_v3 = vpop.f32.mrb[119].mxu1 }
 0x1f6   :  { %v2009_v9 = vmax.f32 %v1817_v36, %v1881_v0  ;;  %2135 = vst.msk [vmem:[%s5264_s3 + $0x180] sm:$0xff] %vm2086_vm0, %v2070_v56  ;;  %v1944_v38 = vmax.f32 %v1688_v7, %v1752_v51  ;;  %v940_v62 = vadd.f32 %v4773_v52, %v939_v39  ;;  %v1580_v18 = vadd.f32 %v4773_v52, %v1579_v15  ;;  %v2834_v61 = vpop.f32.mrb[120].mxu1 }
 0x1f7   :  { %v2008_v5 = vmax.f32 %v1816_v11, %v1880_v31  ;;  %v1699_v36 = vmax.f32 %v5073_v47, 0.0  ;;  %v1755_v22 = vmax.f32 %v945_v50, 0.0  ;;  %v1883_v33 = vmax.f32 %v1585_v16, 0.0 }
 0x1f8   :  { %v2073_v2 = vmax.f32 %v1945_v23, %v2009_v9  ;;  %v1827_v13 = vmax.f32 %v5077_v44, 0.0  ;;  %v1754_v14 = vmax.f32 %v940_v62, 0.0  ;;  %v1882_v24 = vmax.f32 %v1580_v18, 0.0  ;;  %v2642_v23 = vpop.f32.mrb[120].mxu0 }
 0x1f9   :  { %v2072_v30 = vmax.f32 %v1944_v38, %v2008_v5  ;;  %v1947_v41 = vmax.f32 %v1691_v21, %v1755_v22  ;;  %v2011_v7 = vmax.f32 %v1819_v48, %v1883_v33  ;;  %v955_v11 = vadd.f32 %v4773_v52, %v2639_v6  ;;  %v959_v15 = vpop.f32.mrb[121].mxu0  ;;  %v1599_v38 = vpop.f32.mrb[121].mxu1  ;;  %v5665_v22 = vld [vmem:[#allocation79_spill] sm:$0xff]  ;;  %v5666_v6 = vld [vmem:[#allocation80_spill] sm:$0xff] }
 0x1fa   :  { %2138 = vst.msk [vmem:[%s5264_s3 + $0x198] sm:$0xff] %vm2086_vm0, %v2073_v2  ;;  %v1595_v1 = vadd.f32 %v4773_v52, %v2831_v49  ;;  %v1946_v25 = vmax.f32 %v1690_v34, %v1754_v14  ;;  %v5660_v42 = vmax.f32 %v4700_v19, 0.0  ;;  %v950_v63 = vadd.f32 %v4773_v52, %v949_v27 }
 0x1fb   :  { %2137 = vst.msk [vmem:[%s5264_s3 + $0x190] sm:$0xff] %vm2086_vm0, %v2072_v30  ;;  %v1590_v48 = vadd.f32 %v4773_v52, %v1589_v3  ;;  %v1698_v43 = vmax.f32 %v5101_v35, 0.0  ;;  %v2075_v0 = vmax.f32 %v1947_v41, %v2011_v7  ;;  %v1757_v45 = vmax.f32 %v955_v11, 0.0  ;;  %v2837_v11 = vpop.f32.mrb[122].mxu1 }
 0x1fc   :  { %v2010_v21 = vmax.f32 %v5660_v42, %v1882_v24  ;;  %v1885_v56 = vmax.f32 %v1595_v1, 0.0  ;;  %v1826_v51 = vmax.f32 %v5105_v57, 0.0  ;;  %v1756_v10 = vmax.f32 %v950_v63, 0.0 }
 0x1fd   :  { %v1884_v26 = vmax.f32 %v1590_v48, 0.0  ;;  %2140 = vst.msk [vmem:[%s5264_s3 + $0x1a8] sm:$0xff] %vm2086_vm0, %v2075_v0  ;;  %v5661_v19 = vmax.f32 %v4768_v8, 0.0  ;;  %v5662_v9 = vmax.f32 %v4777_v58, 0.0  ;;  %v965_v16 = vadd.f32 %v4773_v52, %v2642_v23  ;;  %v5668_v48 = vld [vmem:[#allocation83_spill] sm:$0xff] }
 0x1fe   :  { %v2074_v31 = vmax.f32 %v1946_v25, %v2010_v21  ;;  %v1605_v39 = vadd.f32 %v4773_v52, %v2834_v61  ;;  %v5663_v5 = vmax.f32 %v4801_v20, 0.0  ;;  %v5664_v8 = vmax.f32 %v4805_v4, 0.0  ;;  %v2645_v4 = vpop.f32.mrb[122].mxu0  ;;  %v1609_v21 = vpop.f32.mrb[123].mxu1 }
 0x1ff   :  { %v1949_v34 = vmax.f32 %v5661_v19, %v1757_v45  ;;  %v2013_v50 = vmax.f32 %v5662_v9, %v1885_v56  ;;  %v960_v58 = vadd.f32 %v4773_v52, %v959_v15  ;;  %v1600_v2 = vadd.f32 %v4773_v52, %v1599_v38  ;;  %v969_v42 = vpop.f32.mrb[123].mxu0  ;;  %v2840_v19 = vpop.f32.mrb[124].mxu1 }
 0x200   :  { %2139 = vst.msk [vmem:[%s5264_s3 + $0x1a0] sm:$0xff] %vm2086_vm0, %v2074_v31  ;;  %v1948_v62 = vmax.f32 %v5663_v5, %v1756_v10  ;;  %v2012_v18 = vmax.f32 %v5664_v8, %v1884_v26  ;;  %v5173_v33 = vadd.f32 %v4773_v52, %v5665_v22  ;;  %v1759_v14 = vmax.f32 %v965_v16, 0.0  ;;  %v5669_v10 = vld [vmem:[#allocation84_spill] sm:$0xff]  ;;  %v1619_v38 = vpop.f32.mrb[125].mxu1 }
 0x201   :  { %v2077_v30 = vmax.f32 %v1949_v34, %v2013_v50  ;;  %v1887_v24 = vmax.f32 %v1605_v39, 0.0  ;;  %v5177_v49 = vadd.f32 %v4773_v52, %v5666_v6  ;;  %v1758_v41 = vmax.f32 %v960_v58, 0.0  ;;  %v2843_v55 = vpop.f32.mrb[126].mxu1 }
 0x202   :  { %v2076_v20 = vmax.f32 %v1948_v62, %v2012_v18  ;;  %v1886_v7 = vmax.f32 %v1600_v2, 0.0  ;;  %v1951_v1 = vmax.f32 %v1695_v17, %v1759_v14  ;;  %v975_v3 = vadd.f32 %v4773_v52, %v2645_v4 }
 0x203   :  { %2142 = vst.msk [vmem:[%s5264_s3 + $0x1b8] sm:$0xff] %vm2086_vm0, %v2077_v30  ;;  %v2015_v27 = vmax.f32 %v1823_v12, %v1887_v24  ;;  %v1615_v25 = vadd.f32 %v4773_v52, %v2837_v11  ;;  %v1950_v63 = vmax.f32 %v1694_v59, %v1758_v41  ;;  %v5667_v29 = vmax.f32 %v4905_v53, 0.0  ;;  %v2648_v59 = vpop.f32.mrb[124].mxu0 }
 0x204   :  { %2141 = vst.msk [vmem:[%s5264_s3 + $0x1b0] sm:$0xff] %vm2086_vm0, %v2076_v20  ;;  %v970_v54 = vadd.f32 %v4773_v52, %v969_v42  ;;  %v1610_v12 = vadd.f32 %v4773_v52, %v1609_v21  ;;  %v670_v0 = vadd.f32 %v4773_v52, %v5668_v48  ;;  %v1761_v56 = vmax.f32 %v975_v3, 0.0  ;;  %v979_v15 = vpop.f32.mrb[125].mxu0  ;;  %v1629_v20 = vpop.f32.mrb[127].mxu1 }
 0x205   :  { %v2014_v17 = vmax.f32 %v5667_v29, %v1886_v7  ;;  %v2079_v45 = vmax.f32 %v1951_v1, %v2015_v27  ;;  %v1889_v31 = vmax.f32 %v1615_v25, 0.0  ;;  %v1310_v26 = vadd.f32 %v4773_v52, %v5669_v10  ;;  %v2651_v6 = vpop.f32.mrb[126].mxu0 }
 0x206   :  { %v1760_v61 = vmax.f32 %v970_v54, 0.0  ;;  %v1888_v60 = vmax.f32 %v1610_v12, 0.0  ;;  %v5670_v53 = vmax.f32 %v4973_v37, 0.0  ;;  %v5671_v9 = vmax.f32 %v4977_v46, 0.0 }
 0x207   :  { %v2078_v23 = vmax.f32 %v1950_v63, %v2014_v17  ;;  %2144 = vst.msk [vmem:[%s5264_s3 + $0x1c8] sm:$0xff] %vm2086_vm0, %v2079_v45  ;;  %v985_v16 = vadd.f32 %v4773_v52, %v2648_v59  ;;  %v1625_v39 = vadd.f32 %v4773_v52, %v2840_v19  ;;  %v980_v46 = vadd.f32 %v4773_v52, %v979_v15 }
 0x208   :  { %v1953_v34 = vmax.f32 %v5670_v53, %v1761_v56  ;;  %v2017_v50 = vmax.f32 %v5671_v9, %v1889_v31  ;;  %v1952_v5 = vmax.f32 %v1696_v28, %v1760_v61  ;;  %v2016_v37 = vmax.f32 %v1824_v32, %v1888_v60 }
 0x209   :  { %2143 = vst.msk [vmem:[%s5264_s3 + $0x1c0] sm:$0xff] %vm2086_vm0, %v2078_v23  ;;  %v1620_v62 = vadd.f32 %v4773_v52, %v1619_v38  ;;  %v1701_v8 = vmax.f32 %v5173_v33, 0.0  ;;  %v1763_v58 = vmax.f32 %v985_v16, 0.0  ;;  %v1891_v2 = vmax.f32 %v1625_v39, 0.0 }
 0x20a   :  { %v2081_v18 = vmax.f32 %v1953_v34, %v2017_v50  ;;  %v1829_v22 = vmax.f32 %v5177_v49, 0.0  ;;  %v2080_v30 = vmax.f32 %v1952_v5, %v2016_v37  ;;  %v1762_v14 = vmax.f32 %v980_v46, 0.0  ;;  %v989_v49 = vpop.f32.mrb[127].mxu0 }
 0x20b   :  { %v1890_v24 = vmax.f32 %v1620_v62, 0.0  ;;  %v1955_v40 = vmax.f32 %v1699_v36, %v1763_v58  ;;  %v2019_v28 = vmax.f32 %v1827_v13, %v1891_v2  ;;  %v995_v32 = vadd.f32 %v4773_v52, %v2651_v6 }
 0x20c   :  { %2146 = vst.msk [vmem:[%s5264_s3 + $0x1d8] sm:$0xff] %vm2086_vm0, %v2081_v18  ;;  %v1635_v33 = vadd.f32 %v4773_v52, %v2843_v55  ;;  %2145 = vst.msk [vmem:[%s5264_s3 + $0x1d0] sm:$0xff] %vm2086_vm0, %v2080_v30  ;;  %v1954_v41 = vmax.f32 %v1698_v43, %v1762_v14  ;;  %v990_v44 = vadd.f32 %v4773_v52, %v989_v49  ;;  %v1700_v13 = vmax.f32 %v670_v0, 0.0 }
 0x20d   :  { %v2018_v47 = vmax.f32 %v1826_v51, %v1890_v24  ;;  %v1630_v36 = vadd.f32 %v4773_v52, %v1629_v20  ;;  %v2083_v7 = vmax.f32 %v1955_v40, %v2019_v28  ;;  %v1765_v4 = vmax.f32 %v995_v32, 0.0 }
 0x20e   :  { %v1893_v11 = vmax.f32 %v1635_v33, 0.0  ;;  %v1828_v1 = vmax.f32 %v1310_v26, 0.0  ;;  %v1764_v3 = vmax.f32 %v990_v44, 0.0 }
 0x20f   :  { %v2082_v27 = vmax.f32 %v1954_v41, %v2018_v47  ;;  %v1892_v25 = vmax.f32 %v1630_v36, 0.0  ;;  %2148 = vst.msk [vmem:[%s5264_s3 + $0x1e8] sm:$0xff] %vm2086_vm0, %v2083_v7  ;;  %v1957_v35 = vmax.f32 %v1701_v8, %v1765_v4 }
 0x210   :  { %v2021_v57 = vmax.f32 %v1829_v22, %v1893_v11  ;;  %v1956_v52 = vmax.f32 %v1700_v13, %v1764_v3 }
 0x211   :  { %2147 = vst.msk [vmem:[%s5264_s3 + $0x1e0] sm:$0xff] %vm2086_vm0, %v2082_v27  ;;  %v2020_v43 = vmax.f32 %v1828_v1, %v1892_v25 }
 0x212   :  { %v2085_v51 = vmax.f32 %v1957_v35, %v2021_v57 }
 0x213   :  { %v2084_v42 = vmax.f32 %v1956_v52, %v2020_v43 }
 0x214   :  { %2150 = vst.msk [vmem:[%s5264_s3 + $0x1f8] sm:$0xff] %vm2086_vm0, %v2085_v51 }
 0x215   :  { %2149 = vst.msk [vmem:[%s5264_s3 + $0x1f0] sm:$0xff] %vm2086_vm0, %v2084_v42 }

// kernel: forward.3
= control target key start
LH: loop header
LB: loop body
LE: loop exit
PB: predicated region body
PF: predicated region fallthrough
CT: control target
= control target key end

     0   :  { %s1809_s0 = inlined_call_operand.vmem [shape: f32[128,512], index: 0, kind: input, shape index: {}]   ;;  %s1810_s1 = inlined_call_operand.vmem [shape: f32[512,64], index: 1, kind: input, shape index: {}]   ;;  %s1811_s2 = inlined_call_operand.vmem [shape: f32[1,64], index: 2, kind: input, shape index: {}]   ;;  %s1812_s3 = inlined_call_operand.vmem [shape: f32[64,512], index: 3, kind: input, shape index: {}]   ;;  %s1813_s4 = inlined_call_operand.vmem [shape: f32[1,32], index: 4, kind: input, shape index: {}]   ;;  %s1814_s5 = inlined_call_operand.vmem [shape: f32[32,2], index: 5, kind: input, shape index: {}]   ;;  %s1815_s6 = inlined_call_operand.vmem [shape: f32[1,2], index: 6, kind: input, shape index: {}]   ;;  %s1816_s7 = inlined_call_operand.hbm [shape: f32[2,2], index: 7, kind: output, shape index: {}]  }
   0x1   :  { %v107_v0 = vld [vmem:[%s1810_s1 + $0x80] sm:$0xff]  ;;  %v108_v1 = vld [vmem:[%s1810_s1 + $0x88] sm:$0xff]  ;;  %v109_v11 = vld [vmem:[%s1810_s1 + $0x90] sm:$0xff] }
   0x2   :  { %v91_v2 = vld [vmem:[%s1810_s1] sm:$0xff]  ;;  %v1057_v3 = vpack.c.bf16 %v108_v1, %v107_v0  ;;  %v92_v4 = vld [vmem:[%s1810_s1 + $0x8] sm:$0xff]  ;;  %v110_v13 = vld [vmem:[%s1810_s1 + $0x98] sm:$0xff] }
   0x3   :  { %v139_v5 = vld [vmem:[%s1810_s1 + $0x180] sm:$0xff]  ;;  %v140_v6 = vld [vmem:[%s1810_s1 + $0x188] sm:$0xff]  ;;  %v1059_v7 = vpack.c.bf16 %v92_v4, %v91_v2  ;;  %v93_v14 = vld [vmem:[%s1810_s1 + $0x10] sm:$0xff]  ;;  %v1061_v16 = vpack.c.bf16 %v110_v13, %v109_v11 }
   0x4   :  { %v1089_v8 = vpack.c.bf16 %v140_v6, %v139_v5  ;;  %v123_v9 = vld [vmem:[%s1810_s1 + $0x100] sm:$0xff]  ;;  %v124_v10 = vld [vmem:[%s1810_s1 + $0x108] sm:$0xff]  ;;  %1058 = vmatprep.subr.bf16.mxu0 %v1057_v3  ;;  %v94_v15 = vld [vmem:[%s1810_s1 + $0x18] sm:$0xff] }
   0x5   :  { %v1091_v12 = vpack.c.bf16 %v124_v10, %v123_v9  ;;  %1060 = vmatpush3.bf16.msra.mxu0 %v1059_v7  ;;  %v1063_v17 = vpack.c.bf16 %v94_v15, %v93_v14  ;;  %v141_v18 = vld [vmem:[%s1810_s1 + $0x190] sm:$0xff]  ;;  %v142_v19 = vld [vmem:[%s1810_s1 + $0x198] sm:$0xff]  ;;  %v111_v23 = vld [vmem:[%s1810_s1 + $0xa0] sm:$0xff] }
   0x6   :  { %1090 = vmatprep.subr.bf16.mxu1 %v1089_v8  ;;  %v125_v20 = vld [vmem:[%s1810_s1 + $0x110] sm:$0xff]  ;;  %v1093_v21 = vpack.c.bf16 %v142_v19, %v141_v18  ;;  %v126_v22 = vld [vmem:[%s1810_s1 + $0x118] sm:$0xff]  ;;  %v112_v24 = vld [vmem:[%s1810_s1 + $0xa8] sm:$0xff]  ;;  %1062 = vmatprep.subr.bf16.mxu0 %v1061_v16 }
   0x7   :  { %1092 = vmatpush3.bf16.msra.mxu1 %v1091_v12  ;;  %v1095_v25 = vpack.c.bf16 %v126_v22, %v125_v20  ;;  %v1065_v26 = vpack.c.bf16 %v112_v24, %v111_v23  ;;  %v95_v27 = vld [vmem:[%s1810_s1 + $0x20] sm:$0xff]  ;;  %v96_v28 = vld [vmem:[%s1810_s1 + $0x28] sm:$0xff]  ;;  %v113_v35 = vld [vmem:[%s1810_s1 + $0xb0] sm:$0xff] }
   0x8   :  { %v143_v29 = vld [vmem:[%s1810_s1 + $0x1a0] sm:$0xff]  ;;  %1094 = vmatprep.subr.bf16.mxu1 %v1093_v21  ;;  %v144_v30 = vld [vmem:[%s1810_s1 + $0x1a8] sm:$0xff]  ;;  %v1067_v33 = vpack.c.bf16 %v96_v28, %v95_v27  ;;  %v114_v36 = vld [vmem:[%s1810_s1 + $0xb8] sm:$0xff] }
   0x9   :  { %v127_v31 = vld [vmem:[%s1810_s1 + $0x120] sm:$0xff]  ;;  %v128_v32 = vld [vmem:[%s1810_s1 + $0x128] sm:$0xff]  ;;  %1064 = vmatpush3.bf16.msra.mxu0 %v1063_v17  ;;  %v1097_v34 = vpack.c.bf16 %v144_v30, %v143_v29  ;;  %v97_v37 = vld [vmem:[%s1810_s1 + $0x30] sm:$0xff]  ;;  %v1069_v39 = vpack.c.bf16 %v114_v36, %v113_v35 }
   0xa   :  { %1066 = vmatprep.subr.bf16.mxu0 %v1065_v26  ;;  %v1099_v38 = vpack.c.bf16 %v128_v32, %v127_v31  ;;  %v98_v40 = vld [vmem:[%s1810_s1 + $0x38] sm:$0xff]  ;;  %v145_v41 = vld [vmem:[%s1810_s1 + $0x1b0] sm:$0xff]  ;;  %v115_v46 = vld [vmem:[%s1810_s1 + $0xc0] sm:$0xff] }
   0xb   :  { %1096 = vmatpush3.bf16.msra.mxu1 %v1095_v25  ;;  %v146_v42 = vld [vmem:[%s1810_s1 + $0x1b8] sm:$0xff]  ;;  %v129_v44 = vld [vmem:[%s1810_s1 + $0x130] sm:$0xff]  ;;  %v116_v47 = vld [vmem:[%s1810_s1 + $0xc8] sm:$0xff]  ;;  %v1071_v48 = vpack.c.bf16 %v98_v40, %v97_v37 }
   0xc   :  { %1098 = vmatprep.subr.bf16.mxu1 %v1097_v34  ;;  %v1101_v43 = vpack.c.bf16 %v146_v42, %v145_v41  ;;  %v130_v45 = vld [vmem:[%s1810_s1 + $0x138] sm:$0xff]  ;;  %v147_v49 = vld [vmem:[%s1810_s1 + $0x1c0] sm:$0xff]  ;;  %v148_v50 = vld [vmem:[%s1810_s1 + $0x1c8] sm:$0xff]  ;;  %v1073_v52 = vpack.c.bf16 %v116_v47, %v115_v46 }
   0xd   :  { %1068 = vmatpush3.bf16.msra.mxu0 %v1067_v33  ;;  %v1103_v51 = vpack.c.bf16 %v130_v45, %v129_v44  ;;  %v99_v53 = vld [vmem:[%s1810_s1 + $0x40] sm:$0xff]  ;;  %v100_v54 = vld [vmem:[%s1810_s1 + $0x48] sm:$0xff]  ;;  %v1105_v56 = vpack.c.bf16 %v148_v50, %v147_v49  ;;  %v117_v58 = vld [vmem:[%s1810_s1 + $0xd0] sm:$0xff] }
   0xe   :  { %1070 = vmatprep.subr.bf16.mxu0 %v1069_v39  ;;  %v131_v55 = vld [vmem:[%s1810_s1 + $0x140] sm:$0xff]  ;;  %v132_v57 = vld [vmem:[%s1810_s1 + $0x148] sm:$0xff]  ;;  %v118_v59 = vld [vmem:[%s1810_s1 + $0xd8] sm:$0xff]  ;;  %v1075_v62 = vpack.c.bf16 %v100_v54, %v99_v53 }
   0xf   :  { %1100 = vmatpush3.bf16.msra.mxu1 %v1099_v38  ;;  %v149_v60 = vld [vmem:[%s1810_s1 + $0x1d0] sm:$0xff]  ;;  %v150_v61 = vld [vmem:[%s1810_s1 + $0x1d8] sm:$0xff]  ;;  %v1107_v63 = vpack.c.bf16 %v132_v57, %v131_v55  ;;  %v1077_v0 = vpack.c.bf16 %v118_v59, %v117_v58  ;;  %v119_v6 = vld [vmem:[%s1810_s1 + $0xe0] sm:$0xff] }
  0x10   :  { %1102 = vmatprep.subr.bf16.mxu1 %v1101_v43  ;;  %v101_v1 = vld [vmem:[%s1810_s1 + $0x50] sm:$0xff]  ;;  %v102_v2 = vld [vmem:[%s1810_s1 + $0x58] sm:$0xff]  ;;  %v1109_v4 = vpack.c.bf16 %v150_v61, %v149_v60  ;;  %v120_v7 = vld [vmem:[%s1810_s1 + $0xe8] sm:$0xff] }
  0x11   :  { %1072 = vmatpush3.bf16.msra.mxu0 %v1071_v48  ;;  %v133_v3 = vld [vmem:[%s1810_s1 + $0x150] sm:$0xff]  ;;  %v134_v5 = vld [vmem:[%s1810_s1 + $0x158] sm:$0xff]  ;;  %v151_v8 = vld [vmem:[%s1810_s1 + $0x1e0] sm:$0xff]  ;;  %v1079_v10 = vpack.c.bf16 %v102_v2, %v101_v1  ;;  %v1081_v14 = vpack.c.bf16 %v120_v7, %v119_v6 }
  0x12   :  { %1074 = vmatprep.subr.bf16.mxu0 %v1073_v52  ;;  %v152_v9 = vld [vmem:[%s1810_s1 + $0x1e8] sm:$0xff]  ;;  %v103_v11 = vld [vmem:[%s1810_s1 + $0x60] sm:$0xff]  ;;  %v1111_v13 = vpack.c.bf16 %v134_v5, %v133_v3  ;;  %v121_v19 = vld [vmem:[%s1810_s1 + $0xf0] sm:$0xff] }
  0x13   :  { %1104 = vmatpush3.bf16.msra.mxu1 %v1103_v51  ;;  %v104_v12 = vld [vmem:[%s1810_s1 + $0x68] sm:$0xff]  ;;  %v135_v15 = vld [vmem:[%s1810_s1 + $0x160] sm:$0xff]  ;;  %v1113_v18 = vpack.c.bf16 %v152_v9, %v151_v8  ;;  %v122_v20 = vld [vmem:[%s1810_s1 + $0xf8] sm:$0xff] }
  0x14   :  { %1106 = vmatprep.subr.bf16.mxu1 %v1105_v56  ;;  %v136_v16 = vld [vmem:[%s1810_s1 + $0x168] sm:$0xff]  ;;  %v30_v21 = vld [vmem:[%s1809_s0 + $0x18] sm:$0xff]  ;;  %v153_v22 = vld [vmem:[%s1810_s1 + $0x1f0] sm:$0xff]  ;;  %v1083_v24 = vpack.c.bf16 %v104_v12, %v103_v11  ;;  %v1085_v26 = vpack.c.bf16 %v122_v20, %v121_v19 }
  0x15   :  { %1076 = vmatpush3.bf16.msra.mxu0 %v1075_v62  ;;  %v28_v17 = vld [vmem:[%s1809_s0 + $0x8] sm:$0xff]  ;;  %v154_v23 = vld [vmem:[%s1810_s1 + $0x1f8] sm:$0xff]  ;;  %371 = vmatprep.mubr.f32.mxu1 %v30_v21  ;;  %v1115_v25 = vpack.c.bf16 %v136_v16, %v135_v15  ;;  %v105_v27 = vld [vmem:[%s1810_s1 + $0x70] sm:$0xff] }
  0x16   :  { %1078 = vmatprep.subr.bf16.mxu0 %v1077_v0  ;;  %226 = vmatprep.mubr.f32.mxu0 %v28_v17  ;;  %v106_v28 = vld [vmem:[%s1810_s1 + $0x78] sm:$0xff]  ;;  %v1117_v29 = vpack.c.bf16 %v154_v23, %v153_v22  ;;  %v137_v30 = vld [vmem:[%s1810_s1 + $0x170] sm:$0xff]  ;;  %v27_v34 = vld [vmem:[%s1809_s0] sm:$0xff] }
  0x17   :  { %1108 = vmatpush3.bf16.msra.mxu1 %v1107_v63  ;;  %v138_v31 = vld [vmem:[%s1810_s1 + $0x178] sm:$0xff]  ;;  %v1087_v32 = vpack.c.bf16 %v106_v28, %v105_v27  ;;  %v29_v35 = vld [vmem:[%s1809_s0 + $0x10] sm:$0xff]  ;;  %v32_v36 = vld [vmem:[%s1809_s0 + $0x28] sm:$0xff] }
  0x18   :  { %1110 = vmatprep.subr.bf16.mxu1 %v1109_v4  ;;  %v1119_v33 = vpack.c.bf16 %v138_v31, %v137_v30  ;;  %v34_v37 = vld [vmem:[%s1809_s0 + $0x38] sm:$0xff]  ;;  %v31_v38 = vld [vmem:[%s1809_s0 + $0x20] sm:$0xff]  ;;  %v33_v39 = vld [vmem:[%s1809_s0 + $0x30] sm:$0xff] }
  0x19   :  { %1080 = vmatpush3.bf16.msra.mxu0 %v1079_v10  ;;  %v36_v40 = vld [vmem:[%s1809_s0 + $0x48] sm:$0xff]  ;;  %v38_v41 = vld [vmem:[%s1809_s0 + $0x58] sm:$0xff]  ;;  %v35_v42 = vld [vmem:[%s1809_s0 + $0x40] sm:$0xff] }
  0x1a   :  { %1082 = vmatprep.subr.bf16.mxu0 %v1081_v14  ;;  %v37_v43 = vld [vmem:[%s1809_s0 + $0x50] sm:$0xff]  ;;  %v40_v44 = vld [vmem:[%s1809_s0 + $0x68] sm:$0xff]  ;;  %v42_v45 = vld [vmem:[%s1809_s0 + $0x78] sm:$0xff] }
  0x1b   :  { %1112 = vmatpush3.bf16.msra.mxu1 %v1111_v13  ;;  %v481_v46 = vld [vmem:[%s1812_s3 + $0x8] sm:$0xff]  ;;  %v480_v48 = vld [vmem:[%s1812_s3] sm:$0xff] }
  0x1c   :  { %1114 = vmatprep.subr.bf16.mxu1 %v1113_v18  ;;  %v485_v47 = vld [vmem:[%s1812_s3 + $0x28] sm:$0xff]  ;;  %v484_v49 = vld [vmem:[%s1812_s3 + $0x20] sm:$0xff] }
  0x1d   :  { %1084 = vmatpush3.bf16.msra.mxu0 %v1083_v24  ;;  %v39_v50 = vld [vmem:[%s1809_s0 + $0x60] sm:$0xff]  ;;  %v1121_v51 = vpack.c.bf16 %v485_v47, %v481_v46 }
  0x1e   :  { %1086 = vmatprep.subr.bf16.mxu0 %v1085_v26 }
  0x1f   :  { %1116 = vmatpush3.bf16.msra.mxu1 %v1115_v25 }
  0x20   :  { %1118 = vmatprep.subr.bf16.mxu1 %v1117_v29 }
  0x21   :  { %1088 = vmatpush3.bf16.msra.mxu0 %v1087_v32 }
  0x23   :  { %1120 = vmatpush3.bf16.msra.mxu1 %v1119_v33 }
  0x24   :  { %227 = vmatmul.mubr.f32.vlgmr.msra.gmra.mrb[0].mxu0 %v27_v34 }
  0x25   :  { %231 = vmatprep.mubr.f32.mxu0 %v32_v36 }
  0x26   :  { %372 = vmatmul.mubr.f32.vlgmr.msra.gmra.mrb[0].mxu1 %v29_v35 }
  0x27   :  { %376 = vmatprep.mubr.f32.mxu1 %v34_v37 }
  0x28   :  { %232 = vmatmul.mubr.f32.gmra.mrb[2].mxu0 %v31_v38 }
  0x29   :  { %236 = vmatprep.mubr.f32.mxu0 %v36_v40 }
  0x2a   :  { %377 = vmatmul.mubr.f32.gmra.mrb[2].mxu1 %v33_v39 }
  0x2b   :  { %381 = vmatprep.mubr.f32.mxu1 %v38_v41 }
  0x2c   :  { %237 = vmatmul.mubr.f32.gmra.mrb[4].mxu0 %v35_v42 }
  0x2d   :  { %241 = vmatprep.mubr.f32.mxu0 %v40_v44 }
  0x2e   :  { %382 = vmatmul.mubr.f32.gmra.mrb[4].mxu1 %v37_v43 }
  0x2f   :  { %12 = vsyncpa [#allocation3], 0  ;;  %386 = vmatprep.mubr.f32.mxu1 %v42_v45  ;;  %v41_v52 = vld [vmem:[%s1809_s0 + $0x70] sm:$0xff]  ;;  %v44_v53 = vld [vmem:[%s1809_s0 + $0x88] sm:$0xff]  ;;  %v1123_v54 = vpack.c.bf16 %v484_v49, %v480_v48  ;;  %1122 = vmatprep.subr.bf16.mxu0 %v1121_v51  ;;  %vm512_vm0 = vcmask 523264   ;;  %vm1195_vm1 = vmmov 0  }
  0x30   :  { %v46_v55 = vld [vmem:[%s1809_s0 + $0x98] sm:$0xff]  ;;  %242 = vmatmul.mubr.f32.gmra.mrb[6].mxu0 %v39_v50  ;;  %v43_v56 = vld [vmem:[%s1809_s0 + $0x80] sm:$0xff]  ;;  %v45_v57 = vld [vmem:[%s1809_s0 + $0x90] sm:$0xff]  ;;  %vm779_vm2 = vcmask 261120   ;;  %s1196_s24 = smov [#allocation2]   ;;  %vm853_vm3 = vcmask 9216  }
  0x31   :  { %246 = vmatprep.mubr.f32.mxu0 %v44_v53  ;;  %v48_v58 = vld [vmem:[%s1809_s0 + $0xa8] sm:$0xff]  ;;  %1124 = vmatpush1.bf16.msra.mxu0 %v1123_v54  ;;  %v50_v59 = vld [vmem:[%s1809_s0 + $0xb8] sm:$0xff]  ;;  %v47_v60 = vld [vmem:[%s1809_s0 + $0xa0] sm:$0xff]  ;;  %s861_s25 = sshll.u32 %s1196_s24, 4  ;;  %s862_s25 = int_to_ptr.vmem [resolvable:$true] %s861_s25 }
  0x32   :  { %387 = vmatmul.mubr.f32.gmra.mrb[6].mxu1 %v41_v52  ;;  %v49_v61 = vld [vmem:[%s1809_s0 + $0xb0] sm:$0xff]  ;;  %v52_v62 = vld [vmem:[%s1809_s0 + $0xc8] sm:$0xff]  ;;  %v54_v63 = vld [vmem:[%s1809_s0 + $0xd8] sm:$0xff]  ;;  %s1166_s26 = scalar_lea.vmem %s862_s25, 32  ;;  %p1171_p1 = scmp.lt.s32.totalorder %s862_s25, %s862_s25 }
  0x33   :  { %391 = vmatprep.mubr.f32.mxu1 %v46_v55  ;;  %v51_v0 = vld [vmem:[%s1809_s0 + $0xc0] sm:$0xff]  ;;  %v53_v1 = vld [vmem:[%s1809_s0 + $0xd0] sm:$0xff]  ;;  %v56_v2 = vld [vmem:[%s1809_s0 + $0xe8] sm:$0xff]  ;;  %p1167_p0 = scmp.ne.s32.totalorder %s862_s25, %s1166_s26  ;;  %p1172_p2 = scmp.lt.s32.totalorder %s1166_s26, %s1166_s26 }
  0x34   :  { %247 = vmatmul.mubr.f32.gmra.mrb[8].mxu0 %v43_v56  ;;  %v58_v3 = vld [vmem:[%s1809_s0 + $0xf8] sm:$0xff]  ;;  %v55_v4 = vld [vmem:[%s1809_s0 + $0xe0] sm:$0xff]  ;;  %v57_v5 = vld [vmem:[%s1809_s0 + $0xf0] sm:$0xff] }
  0x35   :  { %251 = vmatprep.mubr.f32.mxu0 %v48_v58  ;;  %v60_v6 = vld [vmem:[%s1809_s0 + $0x108] sm:$0xff]  ;;  %v62_v7 = vld [vmem:[%s1809_s0 + $0x118] sm:$0xff]  ;;  %v59_v8 = vld [vmem:[%s1809_s0 + $0x100] sm:$0xff]  ;;  %p1173_p3 = por %p1172_p2, %p1171_p1 }
  0x36   :  { %392 = vmatmul.mubr.f32.gmra.mrb[8].mxu1 %v45_v57  ;;  %v61_v9 = vld [vmem:[%s1809_s0 + $0x110] sm:$0xff]  ;;  %v64_v10 = vld [vmem:[%s1809_s0 + $0x128] sm:$0xff]  ;;  %v66_v11 = vld [vmem:[%s1809_s0 + $0x138] sm:$0xff] }
  0x37   :  { %396 = vmatprep.mubr.f32.mxu1 %v50_v59  ;;  %v63_v12 = vld [vmem:[%s1809_s0 + $0x120] sm:$0xff]  ;;  %v65_v13 = vld [vmem:[%s1809_s0 + $0x130] sm:$0xff]  ;;  %v68_v14 = vld [vmem:[%s1809_s0 + $0x148] sm:$0xff]  ;;  %p1174_p4 = pnand %p1173_p3, %p1167_p0 }
  0x38   :  { %252 = vmatmul.mubr.f32.gmra.mrb[10].mxu0 %v47_v60  ;;  %v70_v15 = vld [vmem:[%s1809_s0 + $0x158] sm:$0xff]  ;;  %v67_v16 = vld [vmem:[%s1809_s0 + $0x140] sm:$0xff]  ;;  %v69_v17 = vld [vmem:[%s1809_s0 + $0x150] sm:$0xff] }
  0x39   :  { %256 = vmatprep.mubr.f32.mxu0 %v52_v62  ;;  %v72_v18 = vld [vmem:[%s1809_s0 + $0x168] sm:$0xff]  ;;  %v74_v19 = vld [vmem:[%s1809_s0 + $0x178] sm:$0xff]  ;;  %v71_v20 = vld [vmem:[%s1809_s0 + $0x160] sm:$0xff] }
  0x3a   :  { %397 = vmatmul.mubr.f32.gmra.mrb[10].mxu1 %v49_v61  ;;  %v73_v21 = vld [vmem:[%s1809_s0 + $0x170] sm:$0xff]  ;;  %v76_v22 = vld [vmem:[%s1809_s0 + $0x188] sm:$0xff]  ;;  %v78_v23 = vld [vmem:[%s1809_s0 + $0x198] sm:$0xff] }
  0x3b   :  { %401 = vmatprep.mubr.f32.mxu1 %v54_v63  ;;  %v75_v24 = vld [vmem:[%s1809_s0 + $0x180] sm:$0xff]  ;;  %v77_v25 = vld [vmem:[%s1809_s0 + $0x190] sm:$0xff]  ;;  %v80_v26 = vld [vmem:[%s1809_s0 + $0x1a8] sm:$0xff] }
  0x3c   :  { %257 = vmatmul.mubr.f32.gmra.mrb[12].mxu0 %v51_v0  ;;  %v82_v27 = vld [vmem:[%s1809_s0 + $0x1b8] sm:$0xff]  ;;  %v79_v28 = vld [vmem:[%s1809_s0 + $0x1a0] sm:$0xff]  ;;  %v81_v29 = vld [vmem:[%s1809_s0 + $0x1b0] sm:$0xff] }
  0x3d   :  { %261 = vmatprep.mubr.f32.mxu0 %v56_v2  ;;  %v84_v30 = vld [vmem:[%s1809_s0 + $0x1c8] sm:$0xff]  ;;  %v86_v31 = vld [vmem:[%s1809_s0 + $0x1d8] sm:$0xff]  ;;  %v83_v32 = vld [vmem:[%s1809_s0 + $0x1c0] sm:$0xff] }
  0x3e   :  { %402 = vmatmul.mubr.f32.gmra.mrb[12].mxu1 %v53_v1  ;;  %v85_v33 = vld [vmem:[%s1809_s0 + $0x1d0] sm:$0xff]  ;;  %v88_v34 = vld [vmem:[%s1809_s0 + $0x1e8] sm:$0xff]  ;;  %v90_v35 = vld [vmem:[%s1809_s0 + $0x1f8] sm:$0xff] }
  0x3f   :  { %406 = vmatprep.mubr.f32.mxu1 %v58_v3  ;;  %v87_v36 = vld [vmem:[%s1809_s0 + $0x1e0] sm:$0xff]  ;;  %v89_v37 = vld [vmem:[%s1809_s0 + $0x1f0] sm:$0xff]  ;;  %v483_v38 = vld [vmem:[%s1812_s3 + $0x18] sm:$0xff]  ;;  %s1193_s0 = smov 64  }
  0x40   :  { %262 = vmatmul.mubr.f32.gmra.mrb[14].mxu0 %v55_v4  ;;  %v487_v39 = vld [vmem:[%s1812_s3 + $0x38] sm:$0xff]  ;;  %v482_v40 = vld [vmem:[%s1812_s3 + $0x10] sm:$0xff]  ;;  %v489_v44 = vld [vmem:[%s1812_s3 + $0x48] sm:$0xff] }
  0x41   :  { %266 = vmatprep.mubr.f32.mxu0 %v60_v6  ;;  %v1137_v41 = vpack.c.bf16 %v487_v39, %v483_v38  ;;  %v486_v42 = vld [vmem:[%s1812_s3 + $0x30] sm:$0xff]  ;;  %v493_v45 = vld [vmem:[%s1812_s3 + $0x68] sm:$0xff]  ;;  %v488_v47 = vld [vmem:[%s1812_s3 + $0x40] sm:$0xff] }
  0x42   :  { %407 = vmatmul.mubr.f32.gmra.mrb[14].mxu1 %v57_v5  ;;  %v1139_v43 = vpack.c.bf16 %v486_v42, %v482_v40  ;;  %v1125_v46 = vpack.c.bf16 %v493_v45, %v489_v44  ;;  %v492_v48 = vld [vmem:[%s1812_s3 + $0x60] sm:$0xff]  ;;  %v491_v50 = vld [vmem:[%s1812_s3 + $0x58] sm:$0xff]  ;;  %v490_v52 = vld [vmem:[%s1812_s3 + $0x50] sm:$0xff] }
  0x43   :  { %411 = vmatprep.mubr.f32.mxu1 %v62_v7  ;;  %1138 = vmatprep.subr.bf16.mxu1 %v1137_v41  ;;  %v1127_v49 = vpack.c.bf16 %v492_v48, %v488_v47  ;;  %v495_v51 = vld [vmem:[%s1812_s3 + $0x78] sm:$0xff]  ;;  %v494_v54 = vld [vmem:[%s1812_s3 + $0x70] sm:$0xff]  ;;  %v497_v56 = vld [vmem:[%s1812_s3 + $0x88] sm:$0xff] }
  0x44   :  { %267 = vmatmul.mubr.f32.gmra.mrb[16].mxu0 %v59_v8  ;;  %1140 = vmatpush1.bf16.msra.mxu1 %v1139_v43  ;;  %v1141_v53 = vpack.c.bf16 %v495_v51, %v491_v50  ;;  %v1143_v55 = vpack.c.bf16 %v494_v54, %v490_v52  ;;  %v501_v57 = vld [vmem:[%s1812_s3 + $0xa8] sm:$0xff]  ;;  %v496_v59 = vld [vmem:[%s1812_s3 + $0x80] sm:$0xff]  ;;  %v499_v62 = vld [vmem:[%s1812_s3 + $0x98] sm:$0xff] }
  0x45   :  { %271 = vmatprep.mubr.f32.mxu0 %v64_v10  ;;  %1126 = vmatprep.subr.bf16.mxu0 %v1125_v46  ;;  %v1129_v58 = vpack.c.bf16 %v501_v57, %v497_v56  ;;  %v500_v60 = vld [vmem:[%s1812_s3 + $0xa0] sm:$0xff]  ;;  %v503_v63 = vld [vmem:[%s1812_s3 + $0xb8] sm:$0xff]  ;;  %v498_v0 = vld [vmem:[%s1812_s3 + $0x90] sm:$0xff] }
  0x46   :  { %412 = vmatmul.mubr.f32.gmra.mrb[16].mxu1 %v61_v9  ;;  %1128 = vmatpush1.bf16.msra.mxu0 %v1127_v49  ;;  %v1131_v61 = vpack.c.bf16 %v500_v60, %v496_v59  ;;  %v1145_v1 = vpack.c.bf16 %v503_v63, %v499_v62  ;;  %v502_v2 = vld [vmem:[%s1812_s3 + $0xb0] sm:$0xff]  ;;  %v505_v4 = vld [vmem:[%s1812_s3 + $0xc8] sm:$0xff]  ;;  %v504_v7 = vld [vmem:[%s1812_s3 + $0xc0] sm:$0xff] }
  0x47   :  { %416 = vmatprep.mubr.f32.mxu1 %v66_v11  ;;  %1142 = vmatprep.subr.bf16.mxu1 %v1141_v53  ;;  %v1147_v3 = vpack.c.bf16 %v502_v2, %v498_v0  ;;  %v509_v5 = vld [vmem:[%s1812_s3 + $0xe8] sm:$0xff]  ;;  %v508_v8 = vld [vmem:[%s1812_s3 + $0xe0] sm:$0xff]  ;;  %v507_v10 = vld [vmem:[%s1812_s3 + $0xd8] sm:$0xff] }
  0x48   :  { %272 = vmatmul.mubr.f32.gmra.mrb[18].mxu0 %v63_v12  ;;  %1144 = vmatpush1.bf16.msra.mxu1 %v1143_v55  ;;  %v1133_v6 = vpack.c.bf16 %v509_v5, %v505_v4  ;;  %v1135_v9 = vpack.c.bf16 %v508_v8, %v504_v7  ;;  %v511_v11 = vld [vmem:[%s1812_s3 + $0xf8] sm:$0xff] }
  0x49   :  { %276 = vmatprep.mubr.f32.mxu0 %v68_v14  ;;  %1130 = vmatprep.subr.bf16.mxu0 %v1129_v58  ;;  %v1149_v12 = vpack.c.bf16 %v511_v11, %v507_v10  ;;  %v510_v14 = vld [vmem:[%s1812_s3 + $0xf0] sm:$0xff] }
  0x4a   :  { %417 = vmatmul.mubr.f32.gmra.mrb[18].mxu1 %v65_v13  ;;  %1132 = vmatpush1.bf16.msra.mxu0 %v1131_v61  ;;  %v506_v13 = vld [vmem:[%s1812_s3 + $0xd0] sm:$0xff]  ;;  %s1192_s3 = smov 96  }
  0x4b   :  { %421 = vmatprep.mubr.f32.mxu1 %v70_v15  ;;  %1146 = vmatprep.subr.bf16.mxu1 %v1145_v1  ;;  %v1151_v15 = vpack.c.bf16 %v510_v14, %v506_v13 }
  0x4c   :  { %277 = vmatmul.mubr.f32.gmra.mrb[20].mxu0 %v67_v16  ;;  %1148 = vmatpush1.bf16.msra.mxu1 %v1147_v3  ;;  %v1190_v16 = vmov 0.0  }
  0x4d   :  { %281 = vmatprep.mubr.f32.mxu0 %v72_v18  ;;  %1134 = vmatprep.subr.bf16.mxu0 %v1133_v6  ;;  %v1722_v18 = vld [vmem:[%s1811_s2] ss:$0 sm:$0xff]  ;;  %s1191_s2 = smov 32  }
  0x4e   :  { %422 = vmatmul.mubr.f32.gmra.mrb[20].mxu1 %v69_v17  ;;  %1136 = vmatpush1.bf16.msra.mxu0 %v1135_v9 }
  0x4f   :  { %426 = vmatprep.mubr.f32.mxu1 %v74_v19  ;;  %1150 = vmatprep.subr.bf16.mxu1 %v1149_v12 }
  0x50   :  { %282 = vmatmul.mubr.f32.gmra.mrb[22].mxu0 %v71_v20  ;;  %1152 = vmatpush1.bf16.msra.mxu1 %v1151_v15 }
  0x51   :  { %286 = vmatprep.mubr.f32.mxu0 %v76_v22 }
  0x52   :  { %427 = vmatmul.mubr.f32.gmra.mrb[22].mxu1 %v73_v21 }
  0x53   :  { %431 = vmatprep.mubr.f32.mxu1 %v78_v23 }
  0x54   :  { %287 = vmatmul.mubr.f32.gmra.mrb[24].mxu0 %v75_v24 }
  0x55   :  { %291 = vmatprep.mubr.f32.mxu0 %v80_v26 }
  0x56   :  { %432 = vmatmul.mubr.f32.gmra.mrb[24].mxu1 %v77_v25 }
  0x57   :  { %436 = vmatprep.mubr.f32.mxu1 %v82_v27 }
  0x58   :  { %292 = vmatmul.mubr.f32.gmra.mrb[26].mxu0 %v79_v28 }
  0x59   :  { %296 = vmatprep.mubr.f32.mxu0 %v84_v30 }
  0x5a   :  { %437 = vmatmul.mubr.f32.gmra.mrb[26].mxu1 %v81_v29 }
  0x5b   :  { %441 = vmatprep.mubr.f32.mxu1 %v86_v31 }
  0x5c   :  { %297 = vmatmul.mubr.f32.gmra.mrb[28].mxu0 %v83_v32 }
  0x5d   :  { %301 = vmatprep.mubr.f32.mxu0 %v88_v34 }
  0x5e   :  { %442 = vmatmul.mubr.f32.gmra.mrb[28].mxu1 %v85_v33 }
  0x5f   :  { %446 = vmatprep.mubr.f32.mxu1 %v90_v35 }
  0x60   :  { %302 = vmatmul.mubr.f32.gmra.mrb[30].mxu0 %v87_v36 }
  0x61   :  { %589 = vmatprep.mubr.f32.mxu0 %v1190_v16 }
  0x62   :  { %447 = vmatmul.mubr.f32.gmra.mrb[30].mxu1 %v89_v37 }
  0x63   :  { %672 = vmatprep.mubr.f32.mxu1 %v1190_v16 }
  0xf7   :  { %v913_v17 = vpop.f32.mrb[0].mxu0 }
  0xf8   :  { %v914_v19 = vpop.f32.mrb[1].mxu0 }
  0xf9   :  { %v993_v20 = vpop.f32.mrb[0].mxu1  ;;  %v915_v21 = vadd.f32 %v914_v19, %v913_v17 }
  0xfa   :  { %v994_v22 = vpop.f32.mrb[1].mxu1 }
  0xfb   :  { %v995_v23 = vadd.f32 %v994_v22, %v993_v20  ;;  %v229_v24 = vadd.f32 %v915_v21, %v1722_v18  ;;  %v916_v25 = vpop.f32.mrb[2].mxu0 }
  0xfc   :  { %v917_v26 = vpop.f32.mrb[3].mxu0 }
  0xfd   :  { %v996_v27 = vpop.f32.mrb[2].mxu1  ;;  %v374_v28 = vadd.f32 %v995_v23, %v229_v24  ;;  %v918_v29 = vadd.f32 %v917_v26, %v916_v25 }
  0xfe   :  { %v997_v30 = vpop.f32.mrb[3].mxu1 }
  0xff   :  { %v998_v31 = vadd.f32 %v997_v30, %v996_v27  ;;  %v234_v32 = vadd.f32 %v918_v29, %v1722_v18  ;;  %v919_v33 = vpop.f32.mrb[4].mxu0  ;;  %v452_v0 = vmax.f32 %v374_v28, 0.0 }
 0x100   :  { %v920_v34 = vpop.f32.mrb[5].mxu0 }
 0x101   :  { %v999_v35 = vpop.f32.mrb[4].mxu1  ;;  %v379_v36 = vadd.f32 %v998_v31, %v234_v32  ;;  %v921_v37 = vadd.f32 %v920_v34, %v919_v33 }
 0x102   :  { %v1000_v38 = vpop.f32.mrb[5].mxu1 }
 0x103   :  { %v1001_v39 = vadd.f32 %v1000_v38, %v999_v35  ;;  %v239_v40 = vadd.f32 %v921_v37, %v1722_v18  ;;  %v922_v41 = vpop.f32.mrb[6].mxu0  ;;  %v453_v11 = vmax.f32 %v379_v36, 0.0 }
 0x104   :  { %v923_v42 = vpop.f32.mrb[7].mxu0 }
 0x105   :  { %v1002_v43 = vpop.f32.mrb[6].mxu1  ;;  %v384_v44 = vadd.f32 %v1001_v39, %v239_v40  ;;  %v924_v45 = vadd.f32 %v923_v42, %v922_v41 }
 0x106   :  { %v1003_v46 = vpop.f32.mrb[7].mxu1 }
 0x107   :  { %v1004_v47 = vadd.f32 %v1003_v46, %v1002_v43  ;;  %v244_v48 = vadd.f32 %v924_v45, %v1722_v18  ;;  %v925_v49 = vpop.f32.mrb[8].mxu0  ;;  %v454_v24 = vmax.f32 %v384_v44, 0.0 }
 0x108   :  { %v926_v50 = vpop.f32.mrb[9].mxu0 }
 0x109   :  { %v1005_v51 = vpop.f32.mrb[8].mxu1  ;;  %v389_v52 = vadd.f32 %v1004_v47, %v244_v48  ;;  %v927_v53 = vadd.f32 %v926_v50, %v925_v49 }
 0x10a   :  { %v1006_v54 = vpop.f32.mrb[9].mxu1 }
 0x10b   :  { %v1007_v55 = vadd.f32 %v1006_v54, %v1005_v51  ;;  %v249_v56 = vadd.f32 %v927_v53, %v1722_v18  ;;  %v928_v57 = vpop.f32.mrb[10].mxu0  ;;  %v455_v35 = vmax.f32 %v389_v52, 0.0 }
 0x10c   :  { %v929_v58 = vpop.f32.mrb[11].mxu0 }
 0x10d   :  { %v1008_v59 = vpop.f32.mrb[10].mxu1  ;;  %v394_v60 = vadd.f32 %v1007_v55, %v249_v56  ;;  %v930_v61 = vadd.f32 %v929_v58, %v928_v57 }
 0x10e   :  { %v1009_v62 = vpop.f32.mrb[11].mxu1 }
 0x10f   :  { %v1010_v63 = vadd.f32 %v1009_v62, %v1008_v59  ;;  %v456_v1 = vmax.f32 %v394_v60, 0.0  ;;  %v254_v2 = vadd.f32 %v930_v61, %v1722_v18  ;;  %v931_v3 = vpop.f32.mrb[12].mxu0 }
 0x110   :  { %v932_v4 = vpop.f32.mrb[13].mxu0 }
 0x111   :  { %v1011_v5 = vpop.f32.mrb[12].mxu1  ;;  %v1730_v6 = vmax.f32 %v452_v0, %v456_v1  ;;  %v399_v7 = vadd.f32 %v1010_v63, %v254_v2  ;;  %v933_v8 = vadd.f32 %v932_v4, %v931_v3 }
 0x112   :  { %v1012_v9 = vpop.f32.mrb[13].mxu1 }
 0x113   :  { %v1013_v10 = vadd.f32 %v1012_v9, %v1011_v5  ;;  %v457_v12 = vmax.f32 %v399_v7, 0.0  ;;  %v259_v13 = vadd.f32 %v933_v8, %v1722_v18  ;;  %v934_v14 = vpop.f32.mrb[14].mxu0 }
 0x114   :  { %v935_v15 = vpop.f32.mrb[15].mxu0 }
 0x115   :  { %v1014_v17 = vpop.f32.mrb[14].mxu1  ;;  %v1733_v19 = vmax.f32 %v453_v11, %v457_v12  ;;  %v404_v20 = vadd.f32 %v1013_v10, %v259_v13  ;;  %v936_v21 = vadd.f32 %v935_v15, %v934_v14 }
 0x116   :  { %v1015_v22 = vpop.f32.mrb[15].mxu1 }
 0x117   :  { %v1016_v23 = vadd.f32 %v1015_v22, %v1014_v17  ;;  %v458_v25 = vmax.f32 %v404_v20, 0.0  ;;  %v264_v26 = vadd.f32 %v936_v21, %v1722_v18  ;;  %v937_v27 = vpop.f32.mrb[16].mxu0 }
 0x118   :  { %v938_v28 = vpop.f32.mrb[17].mxu0 }
 0x119   :  { %v1017_v29 = vpop.f32.mrb[16].mxu1  ;;  %v1736_v30 = vmax.f32 %v454_v24, %v458_v25  ;;  %v409_v31 = vadd.f32 %v1016_v23, %v264_v26  ;;  %v939_v32 = vadd.f32 %v938_v28, %v937_v27 }
 0x11a   :  { %v1018_v33 = vpop.f32.mrb[17].mxu1 }
 0x11b   :  { %v1019_v34 = vadd.f32 %v1018_v33, %v1017_v29  ;;  %v459_v36 = vmax.f32 %v409_v31, 0.0  ;;  %v269_v37 = vadd.f32 %v939_v32, %v1722_v18  ;;  %v940_v38 = vpop.f32.mrb[18].mxu0 }
 0x11c   :  { %v941_v39 = vpop.f32.mrb[19].mxu0 }
 0x11d   :  { %v1020_v40 = vpop.f32.mrb[18].mxu1  ;;  %v1739_v41 = vmax.f32 %v455_v35, %v459_v36  ;;  %v414_v42 = vadd.f32 %v1019_v34, %v269_v37  ;;  %v942_v43 = vadd.f32 %v941_v39, %v940_v38 }
 0x11e   :  { %v1021_v44 = vpop.f32.mrb[19].mxu1 }
 0x11f   :  { %v1022_v45 = vadd.f32 %v1021_v44, %v1020_v40  ;;  %v274_v46 = vadd.f32 %v942_v43, %v1722_v18  ;;  %v943_v47 = vpop.f32.mrb[20].mxu0  ;;  %v460_v15 = vmax.f32 %v414_v42, 0.0 }
 0x120   :  { %v944_v48 = vpop.f32.mrb[21].mxu0 }
 0x121   :  { %v1023_v49 = vpop.f32.mrb[20].mxu1  ;;  %v419_v50 = vadd.f32 %v1022_v45, %v274_v46  ;;  %v945_v51 = vadd.f32 %v944_v48, %v943_v47 }
 0x122   :  { %v1024_v52 = vpop.f32.mrb[21].mxu1 }
 0x123   :  { %v1025_v53 = vadd.f32 %v1024_v52, %v1023_v49  ;;  %v279_v54 = vadd.f32 %v945_v51, %v1722_v18  ;;  %v946_v55 = vpop.f32.mrb[22].mxu0  ;;  %v461_v29 = vmax.f32 %v419_v50, 0.0 }
 0x124   :  { %v947_v56 = vpop.f32.mrb[23].mxu0 }
 0x125   :  { %v1026_v57 = vpop.f32.mrb[22].mxu1  ;;  %v424_v58 = vadd.f32 %v1025_v53, %v279_v54  ;;  %v948_v59 = vadd.f32 %v947_v56, %v946_v55 }
 0x126   :  { %v1027_v60 = vpop.f32.mrb[23].mxu1 }
 0x127   :  { %v1028_v61 = vadd.f32 %v1027_v60, %v1026_v57  ;;  %v284_v62 = vadd.f32 %v948_v59, %v1722_v18  ;;  %v949_v63 = vpop.f32.mrb[24].mxu0 }
 0x128   :  { %v950_v0 = vpop.f32.mrb[25].mxu0 }
 0x129   :  { %v1029_v1 = vpop.f32.mrb[24].mxu1  ;;  %v429_v2 = vadd.f32 %v1028_v61, %v284_v62  ;;  %v951_v3 = vadd.f32 %v950_v0, %v949_v63 }
 0x12a   :  { %v1030_v4 = vpop.f32.mrb[25].mxu1 }
 0x12b   :  { %v1031_v5 = vadd.f32 %v1030_v4, %v1029_v1  ;;  %v289_v7 = vadd.f32 %v951_v3, %v1722_v18  ;;  %v952_v8 = vpop.f32.mrb[26].mxu0  ;;  %v463_v48 = vmax.f32 %v429_v2, 0.0 }
 0x12c   :  { %v953_v9 = vpop.f32.mrb[27].mxu0 }
 0x12d   :  { %v1032_v10 = vpop.f32.mrb[26].mxu1  ;;  %v434_v11 = vadd.f32 %v1031_v5, %v289_v7  ;;  %v954_v12 = vadd.f32 %v953_v9, %v952_v8 }
 0x12e   :  { %v1033_v13 = vpop.f32.mrb[27].mxu1 }
 0x12f   :  { %v1034_v14 = vadd.f32 %v1033_v13, %v1032_v10  ;;  %v464_v17 = vmax.f32 %v434_v11, 0.0  ;;  %v294_v20 = vadd.f32 %v954_v12, %v1722_v18  ;;  %v955_v21 = vpop.f32.mrb[28].mxu0  ;;  %v768_v10 = vld [vmem:[%s1814_s5] sm:$0xff]  ;;  %v769_v11 = vld [vmem:[%s1814_s5 + $0x8] sm:$0xff]  ;;  %v1194_v13 = vmov 0.0|0.0  }
 0x130   :  { %v956_v22 = vpop.f32.mrb[29].mxu0  ;;  %1153 = vmatprep.subr.bf16.mxu0 %v1194_v13 }
 0x131   :  { %v1035_v23 = vpop.f32.mrb[28].mxu1  ;;  %v472_v24 = vmax.f32 %v460_v15, %v464_v17  ;;  %v439_v25 = vadd.f32 %v1034_v14, %v294_v20  ;;  %v957_v26 = vadd.f32 %v956_v22, %v955_v21  ;;  %v1154_v14 = vpack.c.bf16 %v769_v11, %v768_v10  ;;  %v770_v17 = vld [vmem:[%s1814_s5 + $0x10] sm:$0xff]  ;;  %v771_v20 = vld [vmem:[%s1814_s5 + $0x18] sm:$0xff] }
 0x132   :  { %v1036_v27 = vpop.f32.mrb[29].mxu1  ;;  %v1157_v22 = vpack.c.bf16 %v771_v20, %v770_v17 }
 0x133   :  { %v1037_v28 = vadd.f32 %v1036_v27, %v1035_v23  ;;  %v476_v31 = vmax.f32 %v1730_v6, %v472_v24  ;;  %v465_v32 = vmax.f32 %v439_v25, 0.0  ;;  %v299_v33 = vadd.f32 %v957_v26, %v1722_v18  ;;  %v958_v34 = vpop.f32.mrb[30].mxu0 }
 0x134   :  { %v959_v35 = vpop.f32.mrb[31].mxu0  ;;  %v462_v6 = vmax.f32 %v424_v58, 0.0 }
 0x135   :  { %v1038_v36 = vpop.f32.mrb[30].mxu1  ;;  %v473_v37 = vmax.f32 %v461_v29, %v465_v32  ;;  %v444_v38 = vadd.f32 %v1037_v28, %v299_v33  ;;  %v960_v39 = vadd.f32 %v959_v35, %v958_v34  ;;  %870 = vmatmul.mubr.msk.f32.vlgmr.msra.gmra.mrb[32].mxu0 %vm512_vm0, %v476_v31  ;;  %874 = vmatmul.mubr.msk.f32.vlgmr.msra.gmra.mrb[32].mxu1 %vm512_vm0, %v476_v31 }
 0x136   :  { %v1039_v40 = vpop.f32.mrb[31].mxu1  ;;  %594 = vmatprep.mubr.f32.mxu0 %v1190_v16  ;;  %676 = vmatprep.mubr.f32.mxu1 %v1190_v16 }
 0x137   :  { %v1040_v42 = vadd.f32 %v1039_v40, %v1038_v36  ;;  %v477_v43 = vmax.f32 %v1733_v19, %v473_v37  ;;  %v466_v44 = vmax.f32 %v444_v38, 0.0  ;;  %v304_v45 = vadd.f32 %v960_v39, %v1722_v18  ;;  %1155 = vmatpush3.bf16.msra.mxu0 %v1154_v14 }
 0x138   :  { %1156 = vmatprep.subr.bf16.mxu0 %v1194_v13 }
 0x139   :  { %v474_v46 = vmax.f32 %v462_v6, %v466_v44  ;;  %v449_v47 = vadd.f32 %v1040_v42, %v304_v45  ;;  %871 = vmatmul.mubr.msk.f32.gmra.mrb[34].mxu0 %vm512_vm0, %v477_v43  ;;  %875 = vmatmul.mubr.msk.f32.gmra.mrb[34].mxu1 %vm512_vm0, %v477_v43 }
 0x13a   :  { %599 = vmatprep.mubr.f32.mxu0 %v1190_v16  ;;  %680 = vmatprep.mubr.f32.mxu1 %v1190_v16 }
 0x13b   :  { %v478_v49 = vmax.f32 %v1736_v30, %v474_v46  ;;  %v467_v50 = vmax.f32 %v449_v47, 0.0  ;;  %1158 = vmatpush3.bf16.msra.mxu0 %v1157_v22 }
 0x13d   :  { %v475_v51 = vmax.f32 %v463_v48, %v467_v50  ;;  %872 = vmatmul.mubr.msk.f32.gmra.mrb[36].mxu0 %vm512_vm0, %v478_v49  ;;  %876 = vmatmul.mubr.msk.f32.gmra.mrb[36].mxu1 %vm512_vm0, %v478_v49  ;;  %v878_v49 = vld [vmem:[%s1813_s4] ss:$0 sm:$0xff] }
 0x13e   :  { %603 = vmatprep.mubr.f32.mxu0 %v1190_v16  ;;  %685 = vmatprep.mubr.f32.mxu1 %v1190_v16 }
 0x13f   :  { %v479_v18 = vmax.f32 %v1739_v41, %v475_v51 }
 0x141   :  { %873 = vmatmul.mubr.msk.f32.gmra.mrb[38].mxu0 %vm512_vm0, %v479_v18  ;;  %877 = vmatmul.mubr.msk.f32.gmra.mrb[38].mxu1 %vm512_vm0, %v479_v18 }
 0x142   :  { %1054 = vmatprep.mubr.msk.f32.mxu0 %vm1195_vm1, %v1190_v16 }
 0x208   :  { %v591_v19 = vpop.f32.mrb[32].mxu0  ;;  %v674_v52 = vpop.f32.mrb[32].mxu1 }
 0x209   :  { %v593_v53 = vpop.f32.mrb[33].mxu0  ;;  %v675_v30 = vpop.f32.mrb[33].mxu1  ;;  %v703_v54 = vrot.slane %v591_v19, 6  ;;  %v693_v55 = vrot.slane %v591_v19, 2  ;;  %v698_v59 = vrot.slane %v591_v19, 4 }
 0x20a   :  { %v879_v52 = vld [vmem:[%s1815_s6] ss:$0 sm:$0xff] }
 0x20b   :  { %704 = vrot.lane.b32.xlu1 %v703_v54, %s1191_s2  ;;  %694 = vrot.lane.b32.xlu0 %v693_v55, %s1192_s3 }
 0x20c   :  { %v596_v56 = vpop.f32.mrb[34].mxu0  ;;  %v678_v57 = vpop.f32.mrb[34].mxu1 }
 0x20d   :  { %v597_v58 = vpop.f32.mrb[35].mxu0  ;;  %v679_v41 = vpop.f32.mrb[35].mxu1 }
 0x20e   :  { %v710_v60 = vrot.slane %v597_v58, 2  ;;  %v715_v1 = vrot.slane %v597_v58, 4  ;;  %v720_v2 = vrot.slane %v597_v58, 6 }
 0x20f   :  { %699 = vrot.lane.b32.xlu0 %v698_v59, %s1193_s0 }
 0x210   :  { %v682_v61 = vpop.f32.mrb[36].mxu1  ;;  %711 = vrot.lane.b32.xlu1 %v710_v60, %s1192_s3  ;;  %v601_v62 = vpop.f32.mrb[36].mxu0 }
 0x211   :  { %v602_v63 = vpop.f32.mrb[37].mxu0  ;;  %v684_v0 = vpop.f32.mrb[37].mxu1  ;;  %v727_v8 = vrot.slane %v682_v61, 2  ;;  %v732_v9 = vrot.slane %v682_v61, 4  ;;  %v737_v12 = vrot.slane %v682_v61, 6 }
 0x213   :  { %716 = vrot.lane.b32.xlu0 %v715_v1, %s1193_s0 }
 0x214   :  { %v687_v3 = vpop.f32.mrb[38].mxu1  ;;  %721 = vrot.lane.b32.xlu1 %v720_v2, %s1191_s2  ;;  %v605_v4 = vpop.f32.mrb[38].mxu0 }
 0x215   :  { %v606_v5 = vpop.f32.mrb[39].mxu0  ;;  %v688_v7 = vpop.f32.mrb[39].mxu1 }
 0x216   :  { %v744_v15 = vrot.slane %v688_v7, 2  ;;  %v749_v21 = vrot.slane %v688_v7, 4  ;;  %v754_v23 = vrot.slane %v688_v7, 6 }
 0x217   :  { %728 = vrot.lane.b32.xlu0 %v727_v8, %s1192_s3 }
 0x218   :  { %733 = vrot.lane.b32.xlu1 %v732_v9, %s1193_s0 }
 0x21b   :  { %738 = vrot.lane.b32.xlu0 %v737_v12, %s1191_s2 }
 0x21c   :  { %745 = vrot.lane.b32.xlu1 %v744_v15, %s1192_s3 }
 0x21f   :  { %750 = vrot.lane.b32.xlu0 %v749_v21, %s1193_s0 }
 0x220   :  { %755 = vrot.lane.b32.xlu1 %v754_v23, %s1191_s2 }
 0x27d   :  { %v705_v24 = vpop.permute.xlu1 %704  ;;  %v695_v25 = vpop.permute.xlu0 %694 }
 0x27e   :  { %v697_v26 = vadd.f32 %v695_v25, %v591_v19 }
 0x281   :  { %v700_v27 = vpop.permute.xlu0 %699 }
 0x282   :  { %v702_v28 = vadd.f32 %v700_v27, %v697_v26  ;;  %v712_v29 = vpop.permute.xlu1 %711 }
 0x284   :  { %v707_v31 = vadd.f32 %v705_v24, %v702_v28 }
 0x285   :  { %v717_v33 = vpop.permute.xlu0 %716 }
 0x286   :  { %v708_v32 = vadd.f32 %v707_v31, %v597_v58  ;;  %v722_v35 = vpop.permute.xlu1 %721 }
 0x288   :  { %v714_v34 = vadd.f32 %v712_v29, %v708_v32 }
 0x289   :  { %v729_v38 = vpop.permute.xlu0 %728 }
 0x28a   :  { %v719_v36 = vadd.f32 %v717_v33, %v714_v34  ;;  %v734_v40 = vpop.permute.xlu1 %733 }
 0x28c   :  { %v724_v37 = vadd.f32 %v722_v35, %v719_v36 }
 0x28d   :  { %v739_v43 = vpop.permute.xlu0 %738 }
 0x28e   :  { %v725_v39 = vadd.f32 %v724_v37, %v682_v61  ;;  %v746_v44 = vpop.permute.xlu1 %745 }
 0x290   :  { %v731_v42 = vadd.f32 %v729_v38, %v725_v39 }
 0x291   :  { %v751_v47 = vpop.permute.xlu0 %750 }
 0x292   :  { %v736_v6 = vadd.f32 %v734_v40, %v731_v42  ;;  %v756_v50 = vpop.permute.xlu1 %755 }
 0x294   :  { %v741_v16 = vadd.f32 %v739_v43, %v736_v6 }
 0x296   :  { %v742_v45 = vadd.f32 %v741_v16, %v688_v7 }
 0x298   :  { %v748_v46 = vadd.f32 %v746_v44, %v742_v45 }
 0x29a   :  { %v753_v48 = vadd.f32 %v751_v47, %v748_v46 }
 0x29c   :  { %v758_v51 = vadd.f32 %v756_v50, %v753_v48 }
 0x29e   :  { %v766_v18 = vadd.f32 %v878_v49, %v758_v51 }
 0x2a0   :  { %v767_v19 = vmax.f32 %v766_v18, 0.0 }
 0x2a2   :  { %1055 = vmatmul.mubr.msk.f32.vlgmr.msra.gmra.mrb[40].mxu0 %vm779_vm2, %v767_v19 }
 0x375   :  { %v849_v53 = vpop.f32.mrb[40].mxu0 }
 0x376   :  { %v850_v30 = vadd.f32 %v879_v52, %v849_v53  ;;  %v1056_v54 = vpop.f32.mrb[41].mxu0 }
 0x378   :  { %854 = vst.msk [vmem:[#allocation2] sm:$0x3] %vm853_vm3, %v850_v30 }
 0x379   :  { %1177 = shalt.err (!%p1174_p4)
}
 0x37a   :  { %s1178_s28 = scalar_lea.hbm %s1816_s7, 32 }
 0x37b   :  { %p1179_p5 = scmp.ne.s32.totalorder %s1816_s7, %s1178_s28  ;;  %p1182_p6 = scmp.lt.u32.totalorder %s1178_s28, %s1816_s7 }
 0x37d   :  { %p1184_p7 = pnand %p1182_p6, %p1179_p5 }
 0x37f   :  { %1187 = shalt.err (!%p1184_p7)
}
 0x380   :  { %864 = dma.vmem_to_hbm [thread:$0]  %s862_s25, 32, %s1816_s7, [#allocation3]  }
 0x381   :  { %1188 = dma.done.wait [#allocation3], 32  }
 0x382   :  { %1189 = vsyncadd [#allocation3], 4294967264 }
 0x383   :  { %868 = vsyncpa [#allocation3], 1 }

</bundles_post_ra>
